<compile_context>
chip_gen: v5e
topology: v5e:2x2
jax: 0.10.0
libtpu: 0.0.40
codegen_flags: <defaults>
</compile_context>

<pallas_src>
import functools

import jax
import jax.numpy as jnp
from jax.experimental import pallas as pl
from jax.experimental.pallas import tpu as pltpu


CFG = {"MODEL": {"CHANNEL_PER_GROUP": 16}}
INPUT_SHAPE = (64, 64)     # spatial size of img -> nc_input = 256 * 1 * 1
BOTT_SIZE = 256
NZ_FEAT = 100
FC_PAD = 128               # NZ_FEAT padded to a lane-dense 128
RESNET_C = 2048
KPOS = 16                  # 4x4 conv kernel positions
CONV_K = RESNET_C * KPOS   # im2col contraction dim = 32768


# ----------------------------------------------------------------------------
# Kernel A: enc_conv1 = Conv2d(2048->256, k4, s2, p1) as an im2col matmul
#           (K-tiled reduction) + GroupNorm + LeakyReLU(0.2), fused.
# Grid = (cout blocks, K blocks); cout axis is megacore-parallel.
# ----------------------------------------------------------------------------
def _enc_conv1_kernel(x_ref, w_ref, b_ref, gamma_ref, beta_ref, g_ref, gt_ref,
                      o_ref, acc_ref, *, cpg):
    k = pl.program_id(1)

    @pl.when(k == 0)
    def _init():
        acc_ref[...] = jnp.zeros_like(acc_ref)

    # bf16 x bf16 on the MXU, f32 accumulation.
    acc_ref[...] += jnp.dot(x_ref[...].astype(jnp.bfloat16), w_ref[...],
                            preferred_element_type=jnp.float32)

    @pl.when(k == pl.num_programs(1) - 1)
    def _finalize():
        z = acc_ref[...] + b_ref[...]            # (B, 128) conv output slice
        g = g_ref[...]                           # (128, n_groups) one-hot
        gt = gt_ref[...]                         # (n_groups, 128)
        inv_n = 1.0 / cpg
        # GroupNorm via one-hot group matmuls (lane-friendly), two-pass var.
        mean_c = jnp.dot(
            jnp.dot(z, g, preferred_element_type=jnp.float32) * inv_n,
            gt, preferred_element_type=jnp.float32)
        d = z - mean_c
        var_c = jnp.dot(
            jnp.dot(d * d, g, preferred_element_type=jnp.float32) * inv_n,
            gt, preferred_element_type=jnp.float32)
        zn = d * jax.lax.rsqrt(var_c + 1e-5)
        y = zn * gamma_ref[...] + beta_ref[...]
        o_ref[...] = jnp.where(y >= 0.0, y, 0.2 * y)     # LeakyReLU(0.2)


def enc_conv1(x_patches, w_mat, b, gamma, beta, gind, gind_t, cpg,
              tk=8192, cblk=128):
    rows, kdim = x_patches.shape
    cout = w_mat.shape[1]
    ngroups = gind.shape[1]
    assert kdim % tk == 0 and cout % cblk == 0 and cblk % cpg == 0
    nk = kdim // tk
    nc = cout // cblk
    kern = functools.partial(_enc_conv1_kernel, cpg=float(cpg))
    bytes_accessed = (kdim * cout * w_mat.dtype.itemsize    # streamed weight
                      + rows * kdim * 4 + rows * cout * 4   # activations
                      + 3 * cout * 4 + 2 * cout * ngroups * 4)
    return pl.pallas_call(
        kern,
        out_shape=jax.ShapeDtypeStruct((rows, cout), jnp.float32),
        grid_spec=pltpu.PrefetchScalarGridSpec(
            num_scalar_prefetch=0,
            grid=(nc, nk),
            in_specs=[
                pl.BlockSpec((rows, tk), lambda j, k: (0, k)),
                pl.BlockSpec((tk, cblk), lambda j, k: (k, j)),
                pl.BlockSpec((1, cblk), lambda j, k: (0, j)),
                pl.BlockSpec((1, cblk), lambda j, k: (0, j)),
                pl.BlockSpec((1, cblk), lambda j, k: (0, j)),
                pl.BlockSpec((cblk, ngroups), lambda j, k: (j, 0)),
                pl.BlockSpec((ngroups, cblk), lambda j, k: (0, j)),
            ],
            out_specs=pl.BlockSpec((rows, cblk), lambda j, k: (0, j)),
            scratch_shapes=[pltpu.VMEM((rows, cblk), jnp.float32)],
        ),
        compiler_params=pltpu.CompilerParams(
            dimension_semantics=("parallel", "arbitrary"),
            vmem_limit_bytes=32 * 1024 * 1024),
        cost_estimate=pl.CostEstimate(
            flops=2 * rows * kdim * cout,
            transcendentals=rows * cout,
            bytes_accessed=bytes_accessed),
    )(x_patches, w_mat, b, gamma, beta, gind, gind_t)


# ----------------------------------------------------------------------------
# Kernel B: fused fc_stack = 2 x [Linear + BatchNorm1d (training batch stats)
#           + LeakyReLU(0.2)] in a single kernel (whole arrays in VMEM).
#           Feature dim padded to 128 for lane-dense stores.
# ----------------------------------------------------------------------------
def _fc_stack_kernel(x_ref, w1_ref, b1_ref, g1_ref, be1_ref,
                     w2_ref, b2_ref, g2_ref, be2_ref, o_ref):
    def block(x, w_ref, b_ref, gm_ref, bt_ref):
        z = jnp.dot(x, w_ref[...], preferred_element_type=jnp.float32)
        z = z + b_ref[...]
        mu = jnp.mean(z, axis=0, keepdims=True)
        var = jnp.mean(jnp.square(z - mu), axis=0, keepdims=True)  # biased, as BN
        zn = (z - mu) * jax.lax.rsqrt(var + 1e-5)
        y = zn * gm_ref[...] + bt_ref[...]
        return jnp.where(y >= 0.0, y, 0.2 * y)

    h = block(x_ref[...], w1_ref, b1_ref, g1_ref, be1_ref)
    o_ref[...] = block(h, w2_ref, b2_ref, g2_ref, be2_ref)


def fc_stack(x, w1, b1, g1, be1, w2, b2, g2, be2):
    rows = x.shape[0]
    cout = w2.shape[1]
    return pl.pallas_call(
        _fc_stack_kernel,
        out_shape=jax.ShapeDtypeStruct((rows, cout), jnp.float32),
    )(x, w1, b1, g1, be1, w2, b2, g2, be2)


# ----------------------------------------------------------------------------
# Parameter init (deterministic, synthetic)
# ----------------------------------------------------------------------------
def init_encoder_params(key):
    ks = jax.random.split(key, 8)
    cpg = CFG["MODEL"]["CHANNEL_PER_GROUP"]
    num_groups = BOTT_SIZE // cpg
    p = {}
    # TODO(synk): stand-in ResNetConv trunk (32x avg-pool + 1x1 conv 6->2048 +
    # ReLU), not the layer-by-layer torchvision ResNet-50; shape/semantics match.
    p["rs_w"] = 0.02 * jax.random.normal(ks[0], (6, RESNET_C), jnp.float32)
    p["rs_b"] = jnp.zeros((RESNET_C,), jnp.float32)
    # enc_conv1 weight stored pre-reshaped as the im2col matrix, rows ordered
    # (kh, kw, cin)-major, columns = cout, streamed in bf16.
    p["c1_w"] = (0.02 * jax.random.normal(
        ks[1], (CONV_K, BOTT_SIZE), jnp.float32)).astype(jnp.bfloat16)
    p["c1_b"] = jnp.zeros((1, BOTT_SIZE), jnp.float32)
    p["gn_gamma"] = 1.0 + 0.02 * jax.random.normal(ks[2], (1, BOTT_SIZE),
                                                   jnp.float32)
    p["gn_beta"] = jnp.zeros((1, BOTT_SIZE), jnp.float32)
    # one-hot GroupNorm group matrices (constants, built once)
    gind = jax.nn.one_hot(jnp.arange(BOTT_SIZE) // cpg, num_groups,
                          dtype=jnp.float32)
    p["gind"] = gind
    p["gind_t"] = gind.T
    # fc_stack: 2 x (Linear + BatchNorm1d + LeakyReLU), NZ_FEAT padded to 128.
    nc_input = BOTT_SIZE * (INPUT_SHAPE[0] // 64) * (INPUT_SHAPE[1] // 64)
    w1 = 0.02 * jax.random.normal(ks[3], (nc_input, NZ_FEAT), jnp.float32)
    p["fc1_w"] = jnp.zeros((nc_input, FC_PAD), jnp.float32).at[:, :NZ_FEAT].set(w1)
    p["fc1_b"] = jnp.zeros((1, FC_PAD), jnp.float32)
    p["bn1_gamma"] = jnp.ones((1, FC_PAD), jnp.float32).at[:, :NZ_FEAT].set(
        1.0 + 0.02 * jax.random.normal(ks[4], (NZ_FEAT,), jnp.float32))
    p["bn1_beta"] = jnp.zeros((1, FC_PAD), jnp.float32)
    w2 = 0.02 * jax.random.normal(ks[5], (NZ_FEAT, NZ_FEAT), jnp.float32)
    p["fc2_w"] = jnp.zeros((FC_PAD, FC_PAD), jnp.float32).at[
        :NZ_FEAT, :NZ_FEAT].set(w2)
    p["fc2_b"] = jnp.zeros((1, FC_PAD), jnp.float32)
    p["bn2_gamma"] = jnp.ones((1, FC_PAD), jnp.float32).at[:, :NZ_FEAT].set(
        1.0 + 0.02 * jax.random.normal(ks[6], (NZ_FEAT,), jnp.float32))
    p["bn2_beta"] = jnp.zeros((1, FC_PAD), jnp.float32)
    return p


# ----------------------------------------------------------------------------
# Forward
# ----------------------------------------------------------------------------
def _trunk_and_patches(params, img, fg_img):
    """ResNetConv stand-in + im2col for the k4/s2/p1 conv on the 2x2 map.

    Kept in XLA: these ops are tiny (<= a few hundred KB) and a standalone
    Pallas matmul with K=6 would waste an MXU pass and a kernel launch.
    """
    B, _, H, W = img.shape
    x = jnp.concatenate([img, fg_img], axis=1)                     # (B, 6, H, W)
    hp, wp = H // 32, W // 32
    pooled = x.reshape(B, 6, hp, 32, wp, 32).mean(axis=(3, 5))     # (B, 6, hp, wp)
    pooled = pooled.transpose(0, 2, 3, 1)                          # (B, hp, wp, 6)
    feat = jnp.einsum("bhwc,cd->bhwd", pooled, params["rs_w"]) + params["rs_b"]
    feat = jnp.maximum(feat, 0.0)                                  # (B, hp, wp, 2048)
    # im2col: with a 2x2 feature map and k=4, s=2, p=1 the conv output is 1x1
    # and the single 4x4 window equals the zero-padded map -> pad + reshape.
    ho = (hp + 2 - 4) // 2 + 1
    wo = (wp + 2 - 4) // 2 + 1
    assert ho == 1 and wo == 1 and hp == 2 and wp == 2, \
        "config assumes 64x64 input (1x1 conv output)"
    # TODO(synk): general spatial sizes need a full strided im2col here.
    patches = jnp.pad(feat, ((0, 0), (1, 1), (1, 1), (0, 0)))      # (B, 4, 4, 2048)
    return patches.reshape(B, KPOS * RESNET_C)                     # (B, 32768)


def _pallas_head(params, patches):
    cpg = CFG["MODEL"]["CHANNEL_PER_GROUP"]
    B = patches.shape[0]
    out_enc_conv1 = enc_conv1(patches, params["c1_w"], params["c1_b"],
                              params["gn_gamma"], params["gn_beta"],
                              params["gind"], params["gind_t"], cpg)   # (B, 256)
    out_enc_conv1 = out_enc_conv1.reshape(B, -1)
    feat_pad = fc_stack(out_enc_conv1,
                        params["fc1_w"], params["fc1_b"],
                        params["bn1_gamma"], params["bn1_beta"],
                        params["fc2_w"], params["fc2_b"],
                        params["bn2_gamma"], params["bn2_beta"])       # (B, 128)
    return feat_pad[:, :NZ_FEAT], out_enc_conv1


def encoder_forward(params, img, fg_img):
    patches = _trunk_and_patches(params, img, fg_img)
    return _pallas_head(params, patches)


# ----------------------------------------------------------------------------
# Pure-JAX reference for the Pallas head (same bf16 conv weight)
# ----------------------------------------------------------------------------
def _reference_head(params, patches):
    cpg = CFG["MODEL"]["CHANNEL_PER_GROUP"]
    num_groups = BOTT_SIZE // cpg
    hi = jax.lax.Precision.HIGHEST
    B = patches.shape[0]
    w = params["c1_w"].astype(jnp.float32)
    z = jnp.dot(patches.astype(jnp.bfloat16).astype(jnp.float32), w,
                precision=hi) + params["c1_b"]
    zg = z.reshape(B, num_groups, cpg)
    mu = zg.mean(axis=2, keepdims=True)
    var = jnp.square(zg - mu).mean(axis=2, keepdims=True)
    zn = ((zg - mu) * jax.lax.rsqrt(var + 1e-5)).reshape(B, BOTT_SIZE)
    y = zn * params["gn_gamma"] + params["gn_beta"]
    out1 = jnp.where(y >= 0.0, y, 0.2 * y)

    def fc_block(x, w, b, gm, bt):
        zz = jnp.dot(x, w, precision=hi) + b
        m = zz.mean(axis=0, keepdims=True)
        v = jnp.square(zz - m).mean(axis=0, keepdims=True)
        yy = (zz - m) * jax.lax.rsqrt(v + 1e-5) * gm + bt
        return jnp.where(yy >= 0.0, yy, 0.2 * yy)

    h = fc_block(out1, params["fc1_w"], params["fc1_b"],
                 params["bn1_gamma"], params["bn1_beta"])
    feat = fc_block(h, params["fc2_w"], params["fc2_b"],
                    params["bn2_gamma"], params["bn2_beta"])[:, :NZ_FEAT]
    return feat, out1


if __name__ == "__main__":
    key = jax.random.PRNGKey(0)
    k_img, k_fg, k_par = jax.random.split(key, 3)
    img = jax.random.normal(k_img, (2, 3, 64, 64), jnp.float32)
    fg_img = jax.random.normal(k_fg, (2, 3, 64, 64), jnp.float32)
    params = init_encoder_params(k_par)

    feat, out_enc_conv1 = jax.jit(encoder_forward)(params, img, fg_img)
    jax.block_until_ready((feat, out_enc_conv1))

    assert feat.shape == (2, NZ_FEAT), feat.shape
    assert out_enc_conv1.shape == (2, BOTT_SIZE), out_enc_conv1.shape
    assert bool(jnp.all(jnp.isfinite(feat)))
    assert bool(jnp.all(jnp.isfinite(out_enc_conv1)))

    # Numerical check of the Pallas kernels against a pure-JAX reference,
    # starting from the same im2col patches.
    patches = jax.jit(_trunk_and_patches)(params, img, fg_img)
    p_feat, p_out1 = jax.jit(_pallas_head)(params, patches)
    r_feat, r_out1 = jax.jit(_reference_head)(params, patches)
    jax.block_until_ready((p_feat, p_out1, r_feat, r_out1))
    assert jnp.allclose(p_out1, r_out1, atol=1e-2, rtol=1e-2), \
        float(jnp.max(jnp.abs(p_out1 - r_out1)))
    assert jnp.allclose(p_feat, r_feat, atol=1e-2, rtol=1e-2), \
        float(jnp.max(jnp.abs(p_feat - r_feat)))

    print("KERNEL_OK")
</pallas_src>

<mosaic_0001>
module attributes {stable_mosaic.version = 11 : i64} {
  func.func @_enc_conv1_kernel(%arg0: i32, %arg1: i32, %arg2: memref<2x8192xf32, #tpu.memory_space<vmem>>, %arg3: memref<8192x128xbf16, #tpu.memory_space<vmem>>, %arg4: memref<1x128xf32, #tpu.memory_space<vmem>>, %arg5: memref<1x128xf32, #tpu.memory_space<vmem>>, %arg6: memref<1x128xf32, #tpu.memory_space<vmem>>, %arg7: memref<128x16xf32, #tpu.memory_space<vmem>>, %arg8: memref<16x128xf32, #tpu.memory_space<vmem>>, %arg9: memref<2x128xf32, #tpu.memory_space<vmem>>, %arg10: memref<2x128xf32, #tpu.memory_space<vmem>>) attributes {dimension_semantics = [#tpu.dimension_semantics<parallel>, #tpu.dimension_semantics<arbitrary>], iteration_bounds = array<i64: 2, 4>, scalar_prefetch = 0 : i64, scratch_operands = 1 : i64, tpu.core_type = #tpu.core_type<tc>, window_params = [{transform_indices = @transform_0, window_bounds = array<i64: 2, 8192>}, {transform_indices = @transform_1, window_bounds = array<i64: 8192, 128>}, {transform_indices = @transform_2, window_bounds = array<i64: 1, 128>}, {transform_indices = @transform_3, window_bounds = array<i64: 1, 128>}, {transform_indices = @transform_4, window_bounds = array<i64: 1, 128>}, {transform_indices = @transform_5, window_bounds = array<i64: 128, 16>}, {transform_indices = @transform_6, window_bounds = array<i64: 16, 128>}, {transform_indices = @transform_7, window_bounds = array<i64: 2, 128>}]} {
    %c0_i32 = arith.constant 0 : i32
    %0 = arith.cmpi eq, %arg1, %c0_i32 : i32
    %1 = arith.extui %0 : i1 to i32
    %c0_i32_0 = arith.constant 0 : i32
    %2 = arith.cmpi ne, %1, %c0_i32_0 : i32
    scf.if %2 {
      %cst_9 = arith.constant 0.000000e+00 : f32
      %13 = vector.broadcast %cst_9 : f32 to vector<2x128xf32>
      %c0_10 = arith.constant 0 : index
      %c0_11 = arith.constant 0 : index
      %14 = vector.load %arg10[%c0_10, %c0_11] : memref<2x128xf32, #tpu.memory_space<vmem>>, vector<2x128xf32>
      tpu.vector_store %arg10[%c0_10, %c0_11], %13 {strides = array<i32>} : memref<2x128xf32, #tpu.memory_space<vmem>>, vector<2x128xf32>,
    } else {
    }
    %c0 = arith.constant 0 : index
    %c0_1 = arith.constant 0 : index
    %3 = vector.load %arg10[%c0, %c0_1] : memref<2x128xf32, #tpu.memory_space<vmem>>, vector<2x128xf32>
    %c0_2 = arith.constant 0 : index
    %c0_3 = arith.constant 0 : index
    %4 = vector.load %arg2[%c0_2, %c0_3] : memref<2x8192xf32, #tpu.memory_space<vmem>>, vector<2x8192xf32>
    %5 = arith.truncf %4 : vector<2x8192xf32> to vector<2x8192xbf16>
    %c0_4 = arith.constant 0 : index
    %c0_5 = arith.constant 0 : index
    %6 = vector.load %arg3[%c0_4, %c0_5] : memref<8192x128xbf16, #tpu.memory_space<vmem>>, vector<8192x128xbf16>
    %cst = arith.constant dense<0.000000e+00> : vector<2x128xf32>
    %7 = tpu.matmul %5, %6, %cst {dimension_numbers = #tpu.dot_dimension_numbers<[1], [0], [0], [1], [0, 0, 1, 1], [], []>} : vector<2x8192xbf16>, vector<8192x128xbf16>, vector<2x128xf32> -> vector<2x128xf32>
    %8 = arith.addf %3, %7 : vector<2x128xf32>
    %c0_6 = arith.constant 0 : index
    %c0_7 = arith.constant 0 : index
    %9 = vector.load %arg10[%c0_6, %c0_7] : memref<2x128xf32, #tpu.memory_space<vmem>>, vector<2x128xf32>
    tpu.vector_store %arg10[%c0_6, %c0_7], %8 {strides = array<i32>} : memref<2x128xf32, #tpu.memory_space<vmem>>, vector<2x128xf32>,
    %c3_i32 = arith.constant 3 : i32
    %10 = arith.cmpi eq, %arg1, %c3_i32 : i32
    %11 = arith.extui %10 : i1 to i32
    %c0_i32_8 = arith.constant 0 : i32
    %12 = arith.cmpi ne, %11, %c0_i32_8 : i32
    scf.if %12 {
      %c0_9 = arith.constant 0 : index
      %c0_10 = arith.constant 0 : index
      %13 = vector.load %arg10[%c0_9, %c0_10] : memref<2x128xf32, #tpu.memory_space<vmem>>, vector<2x128xf32>
      %c0_11 = arith.constant 0 : index
      %c0_12 = arith.constant 0 : index
      %14 = vector.load %arg4[%c0_11, %c0_12] : memref<1x128xf32, #tpu.memory_space<vmem>>, vector<1x128xf32>
      %15 = vector.broadcast %14 : vector<1x128xf32> to vector<2x128xf32>
      %16 = arith.addf %13, %15 : vector<2x128xf32>
      %c0_13 = arith.constant 0 : index
      %c0_14 = arith.constant 0 : index
      %17 = vector.load %arg7[%c0_13, %c0_14] : memref<128x16xf32, #tpu.memory_space<vmem>>, vector<128x16xf32>
      %c0_15 = arith.constant 0 : index
      %c0_16 = arith.constant 0 : index
      %18 = vector.load %arg8[%c0_15, %c0_16] : memref<16x128xf32, #tpu.memory_space<vmem>>, vector<16x128xf32>
      %cst_17 = arith.constant dense<0.000000e+00> : vector<2x16xf32>
      %19 = tpu.matmul %16, %17, %cst_17 {dimension_numbers = #tpu.dot_dimension_numbers<[1], [0], [0], [1], [0, 0, 1, 1], [], []>} : vector<2x128xf32>, vector<128x16xf32>, vector<2x16xf32> -> vector<2x16xf32>
      %cst_18 = arith.constant 6.250000e-02 : f32
      %20 = vector.broadcast %cst_18 : f32 to vector<2x16xf32>
      %21 = arith.mulf %19, %20 : vector<2x16xf32>
      %cst_19 = arith.constant dense<0.000000e+00> : vector<2x128xf32>
      %22 = tpu.matmul %21, %18, %cst_19 {dimension_numbers = #tpu.dot_dimension_numbers<[1], [0], [0], [1], [0, 0, 1, 1], [], []>} : vector<2x16xf32>, vector<16x128xf32>, vector<2x128xf32> -> vector<2x128xf32>
      %23 = arith.subf %16, %22 : vector<2x128xf32>
      %24 = arith.mulf %23, %23 : vector<2x128xf32>
      %cst_20 = arith.constant dense<0.000000e+00> : vector<2x16xf32>
      %25 = tpu.matmul %24, %17, %cst_20 {dimension_numbers = #tpu.dot_dimension_numbers<[1], [0], [0], [1], [0, 0, 1, 1], [], []>} : vector<2x128xf32>, vector<128x16xf32>, vector<2x16xf32> -> vector<2x16xf32>
      %cst_21 = arith.constant 6.250000e-02 : f32
      %26 = vector.broadcast %cst_21 : f32 to vector<2x16xf32>
      %27 = arith.mulf %25, %26 : vector<2x16xf32>
      %cst_22 = arith.constant dense<0.000000e+00> : vector<2x128xf32>
      %28 = tpu.matmul %27, %18, %cst_22 {dimension_numbers = #tpu.dot_dimension_numbers<[1], [0], [0], [1], [0, 0, 1, 1], [], []>} : vector<2x16xf32>, vector<16x128xf32>, vector<2x128xf32> -> vector<2x128xf32>
      %cst_23 = arith.constant 9.99999974E-6 : f32
      %29 = vector.broadcast %cst_23 : f32 to vector<2x128xf32>
      %30 = arith.addf %28, %29 : vector<2x128xf32>
      %31 = math.rsqrt %30 : vector<2x128xf32>
      %32 = arith.mulf %23, %31 : vector<2x128xf32>
      %c0_24 = arith.constant 0 : index
      %c0_25 = arith.constant 0 : index
      %33 = vector.load %arg5[%c0_24, %c0_25] : memref<1x128xf32, #tpu.memory_space<vmem>>, vector<1x128xf32>
      %34 = vector.broadcast %33 : vector<1x128xf32> to vector<2x128xf32>
      %35 = arith.mulf %32, %34 : vector<2x128xf32>
      %c0_26 = arith.constant 0 : index
      %c0_27 = arith.constant 0 : index
      %36 = vector.load %arg6[%c0_26, %c0_27] : memref<1x128xf32, #tpu.memory_space<vmem>>, vector<1x128xf32>
      %37 = vector.broadcast %36 : vector<1x128xf32> to vector<2x128xf32>
      %38 = arith.addf %35, %37 : vector<2x128xf32>
      %cst_28 = arith.constant 0.000000e+00 : f32
      %39 = vector.broadcast %cst_28 : f32 to vector<2x128xf32>
      %40 = arith.cmpf oge, %38, %39 : vector<2x128xf32>
      %cst_29 = arith.constant 2.000000e-01 : f32
      %41 = vector.broadcast %cst_29 : f32 to vector<2x128xf32>
      %42 = arith.mulf %41, %38 : vector<2x128xf32>
      %43 = arith.select %40, %38, %42 : vector<2x128xi1>, vector<2x128xf32>
      %c0_30 = arith.constant 0 : index
      %c0_31 = arith.constant 0 : index
      %44 = vector.load %arg9[%c0_30, %c0_31] : memref<2x128xf32, #tpu.memory_space<vmem>>, vector<2x128xf32>
      tpu.vector_store %arg9[%c0_30, %c0_31], %43 {strides = array<i32>} : memref<2x128xf32, #tpu.memory_space<vmem>>, vector<2x128xf32>,
    } else {
    }
    return
  }
  func.func @transform_0(%arg0: i32, %arg1: i32) -> (i32, i32) {
    %c0_i32 = arith.constant 0 : i32
    %c0_i32_0 = arith.constant 0 : i32
    return %c0_i32, %arg1 : i32, i32
  }
  func.func @transform_1(%arg0: i32, %arg1: i32) -> (i32, i32) {
    %c0_i32 = arith.constant 0 : i32
    return %arg1, %arg0 : i32, i32
  }
  func.func @transform_2(%arg0: i32, %arg1: i32) -> (i32, i32) {
    %c0_i32 = arith.constant 0 : i32
    %c0_i32_0 = arith.constant 0 : i32
    return %c0_i32, %arg0 : i32, i32
  }
  func.func @transform_3(%arg0: i32, %arg1: i32) -> (i32, i32) {
    %c0_i32 = arith.constant 0 : i32
    %c0_i32_0 = arith.constant 0 : i32
    return %c0_i32, %arg0 : i32, i32
  }
  func.func @transform_4(%arg0: i32, %arg1: i32) -> (i32, i32) {
    %c0_i32 = arith.constant 0 : i32
    %c0_i32_0 = arith.constant 0 : i32
    return %c0_i32, %arg0 : i32, i32
  }
  func.func @transform_5(%arg0: i32, %arg1: i32) -> (i32, i32) {
    %c0_i32 = arith.constant 0 : i32
    %c0_i32_0 = arith.constant 0 : i32
    return %arg0, %c0_i32 : i32, i32
  }
  func.func @transform_6(%arg0: i32, %arg1: i32) -> (i32, i32) {
    %c0_i32 = arith.constant 0 : i32
    %c0_i32_0 = arith.constant 0 : i32
    return %c0_i32, %arg0 : i32, i32
  }
  func.func @transform_7(%arg0: i32, %arg1: i32) -> (i32, i32) {
    %c0_i32 = arith.constant 0 : i32
    %c0_i32_0 = arith.constant 0 : i32
    return %c0_i32, %arg0 : i32, i32
  }
}

module attributes {stable_mosaic.version = 11 : i64} {
  func.func @_fc_stack_kernel(%arg0: memref<2x256xf32, #tpu.memory_space<vmem>>, %arg1: memref<256x128xf32, #tpu.memory_space<vmem>>, %arg2: memref<1x128xf32, #tpu.memory_space<vmem>>, %arg3: memref<1x128xf32, #tpu.memory_space<vmem>>, %arg4: memref<1x128xf32, #tpu.memory_space<vmem>>, %arg5: memref<128x128xf32, #tpu.memory_space<vmem>>, %arg6: memref<1x128xf32, #tpu.memory_space<vmem>>, %arg7: memref<1x128xf32, #tpu.memory_space<vmem>>, %arg8: memref<1x128xf32, #tpu.memory_space<vmem>>, %arg9: memref<2x128xf32, #tpu.memory_space<vmem>>) attributes {dimension_semantics = [], scalar_prefetch = 0 : i64, scratch_operands = 0 : i64, tpu.core_type = #tpu.core_type<tc>} {
    %c0 = arith.constant 0 : index
    %c0_0 = arith.constant 0 : index
    %0 = vector.load %arg0[%c0, %c0_0] : memref<2x256xf32, #tpu.memory_space<vmem>>, vector<2x256xf32>
    %c0_1 = arith.constant 0 : index
    %c0_2 = arith.constant 0 : index
    %1 = vector.load %arg1[%c0_1, %c0_2] : memref<256x128xf32, #tpu.memory_space<vmem>>, vector<256x128xf32>
    %cst = arith.constant dense<0.000000e+00> : vector<2x128xf32>
    %2 = tpu.matmul %0, %1, %cst {dimension_numbers = #tpu.dot_dimension_numbers<[1], [0], [0], [1], [0, 0, 1, 1], [], []>} : vector<2x256xf32>, vector<256x128xf32>, vector<2x128xf32> -> vector<2x128xf32>
    %c0_3 = arith.constant 0 : index
    %c0_4 = arith.constant 0 : index
    %3 = vector.load %arg2[%c0_3, %c0_4] : memref<1x128xf32, #tpu.memory_space<vmem>>, vector<1x128xf32>
    %4 = vector.broadcast %3 : vector<1x128xf32> to vector<2x128xf32>
    %5 = arith.addf %2, %4 : vector<2x128xf32>
    %cst_5 = arith.constant dense<0.000000e+00> : vector<128xf32>
    %6 = vector.multi_reduction <add>, %5, %cst_5 [0] : vector<2x128xf32> to vector<128xf32>
    %7 = vector.shape_cast %6 : vector<128xf32> to vector<1x128xf32>
    %cst_6 = arith.constant 2.000000e+00 : f32
    %8 = vector.broadcast %cst_6 : f32 to vector<1x128xf32>
    %9 = arith.divf %7, %8 : vector<1x128xf32>
    %10 = vector.broadcast %9 : vector<1x128xf32> to vector<2x128xf32>
    %11 = arith.subf %5, %10 : vector<2x128xf32>
    %12 = arith.mulf %11, %11 : vector<2x128xf32>
    %cst_7 = arith.constant dense<0.000000e+00> : vector<128xf32>
    %13 = vector.multi_reduction <add>, %12, %cst_7 [0] : vector<2x128xf32> to vector<128xf32>
    %14 = vector.shape_cast %13 : vector<128xf32> to vector<1x128xf32>
    %cst_8 = arith.constant 2.000000e+00 : f32
    %15 = vector.broadcast %cst_8 : f32 to vector<1x128xf32>
    %16 = arith.divf %14, %15 : vector<1x128xf32>
    %17 = vector.broadcast %9 : vector<1x128xf32> to vector<2x128xf32>
    %18 = arith.subf %5, %17 : vector<2x128xf32>
    %cst_9 = arith.constant 9.99999974E-6 : f32
    %19 = vector.broadcast %cst_9 : f32 to vector<1x128xf32>
    %20 = arith.addf %16, %19 : vector<1x128xf32>
    %21 = math.rsqrt %20 : vector<1x128xf32>
    %22 = vector.broadcast %21 : vector<1x128xf32> to vector<2x128xf32>
    %23 = arith.mulf %18, %22 : vector<2x128xf32>
    %c0_10 = arith.constant 0 : index
    %c0_11 = arith.constant 0 : index
    %24 = vector.load %arg3[%c0_10, %c0_11] : memref<1x128xf32, #tpu.memory_space<vmem>>, vector<1x128xf32>
    %25 = vector.broadcast %24 : vector<1x128xf32> to vector<2x128xf32>
    %26 = arith.mulf %23, %25 : vector<2x128xf32>
    %c0_12 = arith.constant 0 : index
    %c0_13 = arith.constant 0 : index
    %27 = vector.load %arg4[%c0_12, %c0_13] : memref<1x128xf32, #tpu.memory_space<vmem>>, vector<1x128xf32>
    %28 = vector.broadcast %27 : vector<1x128xf32> to vector<2x128xf32>
    %29 = arith.addf %26, %28 : vector<2x128xf32>
    %cst_14 = arith.constant 0.000000e+00 : f32
    %30 = vector.broadcast %cst_14 : f32 to vector<2x128xf32>
    %31 = arith.cmpf oge, %29, %30 : vector<2x128xf32>
    %cst_15 = arith.constant 2.000000e-01 : f32
    %32 = vector.broadcast %cst_15 : f32 to vector<2x128xf32>
    %33 = arith.mulf %32, %29 : vector<2x128xf32>
    %34 = arith.select %31, %29, %33 : vector<2x128xi1>, vector<2x128xf32>
    %c0_16 = arith.constant 0 : index
    %c0_17 = arith.constant 0 : index
    %35 = vector.load %arg5[%c0_16, %c0_17] : memref<128x128xf32, #tpu.memory_space<vmem>>, vector<128x128xf32>
    %cst_18 = arith.constant dense<0.000000e+00> : vector<2x128xf32>
    %36 = tpu.matmul %34, %35, %cst_18 {dimension_numbers = #tpu.dot_dimension_numbers<[1], [0], [0], [1], [0, 0, 1, 1], [], []>} : vector<2x128xf32>, vector<128x128xf32>, vector<2x128xf32> -> vector<2x128xf32>
    %c0_19 = arith.constant 0 : index
    %c0_20 = arith.constant 0 : index
    %37 = vector.load %arg6[%c0_19, %c0_20] : memref<1x128xf32, #tpu.memory_space<vmem>>, vector<1x128xf32>
    %38 = vector.broadcast %37 : vector<1x128xf32> to vector<2x128xf32>
    %39 = arith.addf %36, %38 : vector<2x128xf32>
    %cst_21 = arith.constant dense<0.000000e+00> : vector<128xf32>
    %40 = vector.multi_reduction <add>, %39, %cst_21 [0] : vector<2x128xf32> to vector<128xf32>
    %41 = vector.shape_cast %40 : vector<128xf32> to vector<1x128xf32>
    %cst_22 = arith.constant 2.000000e+00 : f32
    %42 = vector.broadcast %cst_22 : f32 to vector<1x128xf32>
    %43 = arith.divf %41, %42 : vector<1x128xf32>
    %44 = vector.broadcast %43 : vector<1x128xf32> to vector<2x128xf32>
    %45 = arith.subf %39, %44 : vector<2x128xf32>
    %46 = arith.mulf %45, %45 : vector<2x128xf32>
    %cst_23 = arith.constant dense<0.000000e+00> : vector<128xf32>
    %47 = vector.multi_reduction <add>, %46, %cst_23 [0] : vector<2x128xf32> to vector<128xf32>
    %48 = vector.shape_cast %47 : vector<128xf32> to vector<1x128xf32>
    %cst_24 = arith.constant 2.000000e+00 : f32
    %49 = vector.broadcast %cst_24 : f32 to vector<1x128xf32>
    %50 = arith.divf %48, %49 : vector<1x128xf32>
    %51 = vector.broadcast %43 : vector<1x128xf32> to vector<2x128xf32>
    %52 = arith.subf %39, %51 : vector<2x128xf32>
    %cst_25 = arith.constant 9.99999974E-6 : f32
    %53 = vector.broadcast %cst_25 : f32 to vector<1x128xf32>
    %54 = arith.addf %50, %53 : vector<1x128xf32>
    %55 = math.rsqrt %54 : vector<1x128xf32>
    %56 = vector.broadcast %55 : vector<1x128xf32> to vector<2x128xf32>
    %57 = arith.mulf %52, %56 : vector<2x128xf32>
    %c0_26 = arith.constant 0 : index
    %c0_27 = arith.constant 0 : index
    %58 = vector.load %arg7[%c0_26, %c0_27] : memref<1x128xf32, #tpu.memory_space<vmem>>, vector<1x128xf32>
    %59 = vector.broadcast %58 : vector<1x128xf32> to vector<2x128xf32>
    %60 = arith.mulf %57, %59 : vector<2x128xf32>
    %c0_28 = arith.constant 0 : index
    %c0_29 = arith.constant 0 : index
    %61 = vector.load %arg8[%c0_28, %c0_29] : memref<1x128xf32, #tpu.memory_space<vmem>>, vector<1x128xf32>
    %62 = vector.broadcast %61 : vector<1x128xf32> to vector<2x128xf32>
    %63 = arith.addf %60, %62 : vector<2x128xf32>
    %cst_30 = arith.constant 0.000000e+00 : f32
    %64 = vector.broadcast %cst_30 : f32 to vector<2x128xf32>
    %65 = arith.cmpf oge, %63, %64 : vector<2x128xf32>
    %cst_31 = arith.constant 2.000000e-01 : f32
    %66 = vector.broadcast %cst_31 : f32 to vector<2x128xf32>
    %67 = arith.mulf %66, %63 : vector<2x128xf32>
    %68 = arith.select %65, %63, %67 : vector<2x128xi1>, vector<2x128xf32>
    %c0_32 = arith.constant 0 : index
    %c0_33 = arith.constant 0 : index
    %69 = vector.load %arg9[%c0_32, %c0_33] : memref<2x128xf32, #tpu.memory_space<vmem>>, vector<2x128xf32>
    tpu.vector_store %arg9[%c0_32, %c0_33], %68 {strides = array<i32>} : memref<2x128xf32, #tpu.memory_space<vmem>>, vector<2x128xf32>,
    return
  }
}

</mosaic_0001>

<bundles_post_ra>
// kernel: encoder_forward.3
= control target key start
LH: loop header
LB: loop body
LE: loop exit
PB: predicated region body
PF: predicated region fallthrough
CT: control target
= control target key end

     0   :  { %s537_s0 = inlined_call_operand.vmem [shape: f32[2,256], index: 0, kind: input, shape index: {}]   ;;  %s538_s1 = inlined_call_operand.vmem [shape: f32[256,128], index: 1, kind: input, shape index: {}]   ;;  %s539_s2 = inlined_call_operand.vmem [shape: f32[1,128], index: 2, kind: input, shape index: {}]   ;;  %s540_s3 = inlined_call_operand.vmem [shape: f32[1,128], index: 3, kind: input, shape index: {}]   ;;  %s541_s4 = inlined_call_operand.vmem [shape: f32[1,128], index: 4, kind: input, shape index: {}]   ;;  %s542_s5 = inlined_call_operand.vmem [shape: f32[128,128], index: 5, kind: input, shape index: {}]   ;;  %s543_s6 = inlined_call_operand.vmem [shape: f32[1,128], index: 6, kind: input, shape index: {}]   ;;  %s544_s7 = inlined_call_operand.vmem [shape: f32[1,128], index: 7, kind: input, shape index: {}]   ;;  %s545_s8 = inlined_call_operand.vmem [shape: f32[1,128], index: 8, kind: input, shape index: {}]   ;;  %s546_s9 = inlined_call_operand.hbm [shape: f32[2,128], index: 9, kind: output, shape index: {}]  }
   0x1   :  { %v49_v0 = vld [vmem:[%s538_s1 + $0x78] sm:$0xff]  ;;  %v48_v1 = vld [vmem:[%s538_s1 + $0x70] sm:$0xff]  ;;  %v47_v4 = vld [vmem:[%s538_s1 + $0x68] sm:$0xff] }
   0x2   :  { %v65_v2 = vld [vmem:[%s538_s1 + $0xf8] sm:$0xff]  ;;  %76 = vmatpush.msra.mxu0 %v49_v0  ;;  %v64_v3 = vld [vmem:[%s538_s1 + $0xf0] sm:$0xff]  ;;  %v63_v5 = vld [vmem:[%s538_s1 + $0xe8] sm:$0xff] }
   0x3   :  { %96 = vmatpush.msra.mxu1 %v65_v2  ;;  %v46_v6 = vld [vmem:[%s538_s1 + $0x60] sm:$0xff]  ;;  %v45_v8 = vld [vmem:[%s538_s1 + $0x58] sm:$0xff]  ;;  %v44_v10 = vld [vmem:[%s538_s1 + $0x50] sm:$0xff] }
   0x4   :  { %77 = vmatpush.msra.mxu0 %v48_v1  ;;  %v62_v7 = vld [vmem:[%s538_s1 + $0xe0] sm:$0xff]  ;;  %v61_v9 = vld [vmem:[%s538_s1 + $0xd8] sm:$0xff]  ;;  %v60_v11 = vld [vmem:[%s538_s1 + $0xd0] sm:$0xff] }
   0x5   :  { %97 = vmatpush.msra.mxu1 %v64_v3  ;;  %v43_v12 = vld [vmem:[%s538_s1 + $0x48] sm:$0xff]  ;;  %v33_v14 = vld [vmem:[%s537_s0] sm:$0xf] }
   0x6   :  { %78 = vmatpush.msra.mxu0 %v47_v4  ;;  %v59_v13 = vld [vmem:[%s538_s1 + $0xc8] sm:$0xff]  ;;  %v42_v15 = vld [vmem:[%s538_s1 + $0x40] sm:$0xff]  ;;  %71 = vst [vmem:[#allocation1] ss:$4 sm:$0xff] %v33_v14 }
   0x7   :  { %98 = vmatpush.msra.mxu1 %v63_v5  ;;  %v58_v16 = vld [vmem:[%s538_s1 + $0xc0] sm:$0xff] }
   0x8   :  { %79 = vmatpush.msra.mxu0 %v46_v6 }
   0x9   :  { %99 = vmatpush.msra.mxu1 %v62_v7 }
   0xa   :  { %80 = vmatpush.msra.mxu0 %v45_v8 }
   0xb   :  { %100 = vmatpush.msra.mxu1 %v61_v9 }
   0xc   :  { %81 = vmatpush.msra.mxu0 %v44_v10 }
   0xd   :  { %101 = vmatpush.msra.mxu1 %v60_v11 }
   0xe   :  { %82 = vmatpush.msra.mxu0 %v43_v12 }
   0xf   :  { %102 = vmatpush.msra.mxu1 %v59_v13 }
  0x10   :  { %14 = vsyncpa [#allocation3], 0  ;;  %v41_v17 = vld [vmem:[%s538_s1 + $0x38] sm:$0xff]  ;;  %83 = vmatpush.msra.mxu0 %v42_v15  ;;  %v40_v19 = vld [vmem:[%s538_s1 + $0x30] sm:$0xff]  ;;  %v307_v35 = vmov 2.0   ;;  %vm116_vm0 = vcmask 1041408  }
  0x11   :  { %v57_v18 = vld [vmem:[%s538_s1 + $0xb8] sm:$0xff]  ;;  %103 = vmatpush.msra.mxu1 %v58_v16  ;;  %v56_v20 = vld [vmem:[%s538_s1 + $0xb0] sm:$0xff]  ;;  %v39_v21 = vld [vmem:[%s538_s1 + $0x28] sm:$0xff]  ;;  %275 = vrcp.f32 %v307_v35  ;;  %s308_s24 = smov [#allocation2]   ;;  %s258_s27 = sshll.u32 %s546_s9, 4  ;;  %s259_s27 = int_to_ptr.hbm [resolvable:$true] %s258_s27 }
  0x12   :  { %84 = vmatpush.msra.mxu0 %v41_v17  ;;  %v55_v22 = vld [vmem:[%s538_s1 + $0xa8] sm:$0xff]  ;;  %v38_v23 = vld [vmem:[%s538_s1 + $0x20] sm:$0xff]  ;;  %v37_v25 = vld [vmem:[%s538_s1 + $0x18] sm:$0xff]  ;;  %s256_s0 = sshll.u32 %s308_s24, 4  ;;  %s257_s0 = int_to_ptr.vmem [resolvable:$true] %s256_s0 }
  0x13   :  { %104 = vmatpush.msra.mxu1 %v57_v18  ;;  %v54_v24 = vld [vmem:[%s538_s1 + $0xa0] sm:$0xff]  ;;  %v53_v26 = vld [vmem:[%s538_s1 + $0x98] sm:$0xff]  ;;  %v36_v27 = vld [vmem:[%s538_s1 + $0x10] sm:$0xff] }
  0x14   :  { %85 = vmatpush.msra.mxu0 %v40_v19  ;;  %v52_v28 = vld [vmem:[%s538_s1 + $0x90] sm:$0xff]  ;;  %v35_v29 = vld [vmem:[%s538_s1 + $0x8] sm:$0xff]  ;;  %v34_v31 = vld [vmem:[%s538_s1] sm:$0xff] }
  0x15   :  { %105 = vmatpush.msra.mxu1 %v56_v20  ;;  %v51_v30 = vld [vmem:[%s538_s1 + $0x88] sm:$0xff]  ;;  %v50_v32 = vld [vmem:[%s538_s1 + $0x80] sm:$0xff]  ;;  %v182_v44 = vld [vmem:[%s542_s5 + $0x78] sm:$0xff] }
  0x16   :  { %86 = vmatpush.msra.mxu0 %v39_v21  ;;  %v72_v33 = vld.sshfl [vmem:[#allocation1] sm:$0xff pattern:$0x73625140]  ;;  %v73_v34 = vld.sshfl [vmem:[#allocation1 + $0x8] sm:$0xff pattern:$0x73625140]  ;;  %187 = vmatpush.msra.mxu2 %v182_v44 }
  0x17   :  { %106 = vmatpush.msra.mxu1 %v55_v22  ;;  %v276_v36 = vpop.eup %275  ;;  %v269_v37 = vld [vmem:[%s539_s2] ss:$0 sm:$0xff]  ;;  %v181_v47 = vld [vmem:[%s542_s5 + $0x70] sm:$0xff]  ;;  %v180_v50 = vld [vmem:[%s542_s5 + $0x68] sm:$0xff] }
  0x18   :  { %87 = vmatpush.msra.mxu0 %v38_v23  ;;  %v125_v38 = vmul.f32 2.0, %v276_v36  ;;  %188 = vmatpush.msra.mxu2 %v181_v47  ;;  %v179_v52 = vld [vmem:[%s542_s5 + $0x60] sm:$0xff]  ;;  %vm129_vm1 = vweird.f32 %v276_v36  ;;  %v178_v55 = vld [vmem:[%s542_s5 + $0x58] sm:$0xff]  ;;  %v177_v57 = vld [vmem:[%s542_s5 + $0x50] sm:$0xff] }
  0x19   :  { %107 = vmatpush.msra.mxu1 %v54_v24  ;;  %v176_v60 = vld [vmem:[%s542_s5 + $0x48] sm:$0xff]  ;;  %v175_v62 = vld [vmem:[%s542_s5 + $0x40] sm:$0xff]  ;;  %v174_v0 = vld [vmem:[%s542_s5 + $0x38] sm:$0xff] }
  0x1a   :  { %88 = vmatpush.msra.mxu0 %v37_v25  ;;  %v126_v43 = vsub.f32 1.0, %v125_v38  ;;  %189 = vmatpush.msra.mxu2 %v180_v50  ;;  %v173_v2 = vld [vmem:[%s542_s5 + $0x30] sm:$0xff]  ;;  %v172_v4 = vld [vmem:[%s542_s5 + $0x28] sm:$0xff]  ;;  %v171_v6 = vld [vmem:[%s542_s5 + $0x20] sm:$0xff] }
  0x1b   :  { %108 = vmatpush.msra.mxu1 %v53_v26  ;;  %v170_v8 = vld [vmem:[%s542_s5 + $0x18] sm:$0xff]  ;;  %v169_v10 = vld [vmem:[%s542_s5 + $0x10] sm:$0xff]  ;;  %v168_v11 = vld [vmem:[%s542_s5 + $0x8] sm:$0xff] }
  0x1c   :  { %89 = vmatpush.msra.mxu0 %v36_v27  ;;  %v127_v48 = vmul.f32 %v276_v36, %v126_v43  ;;  %190 = vmatpush.msra.mxu2 %v179_v52  ;;  %v167_v13 = vld [vmem:[%s542_s5] sm:$0xff] }
  0x1d   :  { %109 = vmatpush.msra.mxu1 %v52_v28  ;;  %v270_v24 = vld [vmem:[%s540_s3] ss:$0 sm:$0xff] }
  0x1e   :  { %90 = vmatpush.msra.mxu0 %v35_v29  ;;  %v128_v53 = vadd.f32 %v276_v36, %v127_v48  ;;  %191 = vmatpush.msra.mxu2 %v178_v55  ;;  %v271_v27 = vld [vmem:[%s541_s4] ss:$0 sm:$0xff] }
  0x1f   :  { %110 = vmatpush.msra.mxu1 %v51_v30 }
  0x20   :  { %91 = vmatpush.msra.mxu0 %v34_v31  ;;  %v480_v58 = vsel %vm129_vm1, %v276_v36, %v128_v53  ;;  %192 = vmatpush.msra.mxu2 %v177_v57 }
  0x21   :  { %111 = vmatpush.msra.mxu1 %v50_v32  ;;  %92 = vmatmul.f32.vlgmr.msra.gmra.mxu0 %v72_v33  ;;  %v272_v32 = vld [vmem:[%s543_s6] ss:$0 sm:$0xff] }
  0x22   :  { %112 = vmatmul.f32.vlgmr.msra.gmra.mxu1 %v73_v34  ;;  %193 = vmatpush.msra.mxu2 %v176_v60 }
  0x24   :  { %194 = vmatpush.msra.mxu2 %v175_v62 }
  0x26   :  { %195 = vmatpush.msra.mxu2 %v174_v0 }
  0x28   :  { %196 = vmatpush.msra.mxu2 %v173_v2 }
  0x2a   :  { %197 = vmatpush.msra.mxu2 %v172_v4 }
  0x2c   :  { %198 = vmatpush.msra.mxu2 %v171_v6 }
  0x2e   :  { %199 = vmatpush.msra.mxu2 %v170_v8 }
  0x30   :  { %200 = vmatpush.msra.mxu2 %v169_v10 }
  0x32   :  { %201 = vmatpush.msra.mxu2 %v168_v11 }
  0x34   :  { %202 = vmatpush.msra.mxu2 %v167_v13 }
  0x9e   :  { %v93_v39 = vpop.f32.mrf.mxu0 }
  0x9f   :  { %v113_v40 = vpop.f32.mrf.mxu1  ;;  %v94_v41 = vadd.f32 %v269_v37, %v93_v39 }
  0xa1   :  { %v114_v42 = vadd.f32 %v113_v40, %v94_v41 }
  0xa3   :  { %v117_v45 = vsel %vm116_vm0, %v114_v42, 0.0 }
  0xa4   :  { %v118_v46 = vrot.slane %v117_v45, 4 }
  0xa6   :  { %v119_v49 = vadd.f32 %v118_v46, %v117_v45 }
  0xa8   :  { %v120_v51 = vrot.slane %v119_v49, 2 }
  0xaa   :  { %v121_v54 = vadd.f32 %v120_v51, %v119_v49 }
  0xac   :  { %v122_v56 = vrot.slane %v121_v54, 1 }
  0xae   :  { %v123_v59 = vadd.f32 %v122_v56, %v121_v54 }
  0xb0   :  { %v131_v61 = vmul.f32 %v480_v58, %v123_v59 }
  0xb2   :  { %v132_v63 = vsub.f32 %v114_v42, %v131_v61  ;;  %v273_v61 = vld [vmem:[%s544_s7] ss:$0 sm:$0xff] }
  0xb4   :  { %v133_v1 = vmul.f32 %v132_v63, %v132_v63 }
  0xb6   :  { %v134_v3 = vsel %vm116_vm0, %v133_v1, 0.0 }
  0xb7   :  { %v135_v5 = vrot.slane %v134_v3, 4 }
  0xb9   :  { %v136_v7 = vadd.f32 %v135_v5, %v134_v3 }
  0xbb   :  { %v137_v9 = vrot.slane %v136_v7, 2 }
  0xbd   :  { %v138_v12 = vadd.f32 %v137_v9, %v136_v7 }
  0xbf   :  { %v139_v14 = vrot.slane %v138_v12, 1 }
  0xc1   :  { %v140_v15 = vadd.f32 %v139_v14, %v138_v12 }
  0xc3   :  { %v141_v16 = vmul.f32 %v140_v15, %v480_v58 }
  0xc5   :  { %v142_v17 = vadd.f32 1e-05, %v141_v16 }
  0xc7   :  { %277 = vrsqrt.f32 %v142_v17  ;;  %vm149_vm3 = vweird.f32 %v142_v17 }
  0xcd   :  { %v278_v18 = vpop.eup %277 }
  0xce   :  { %v144_v19 = vmul.f32 %v278_v18, %v142_v17  ;;  %vm150_vm2 = vweird.f32 %v278_v18 }
  0xcf   :  { %vm151_vm4 = vmor %vm149_vm3, %vm150_vm2 }
  0xd0   :  { %v145_v20 = vmul.f32 %v278_v18, %v144_v19 }
  0xd2   :  { %v146_v21 = vmul.f32 0.5, %v145_v20 }
  0xd4   :  { %v147_v22 = vsub.f32 1.5, %v146_v21 }
  0xd6   :  { %v148_v23 = vmul.f32 %v278_v18, %v147_v22 }
  0xd8   :  { %v152_v25 = vsel %vm151_vm4, %v278_v18, %v148_v23 }
  0xd9   :  { %v153_v26 = vmul.f32 %v152_v25, %v132_v63 }
  0xdb   :  { %v158_v28 = vmul.f32 %v270_v24, %v153_v26 }
  0xdd   :  { %v163_v29 = vadd.f32 %v271_v27, %v158_v28 }
  0xdf   :  { %vm164_vm5 = vcmp.ge.f32.partialorder %v163_v29, 0.0  ;;  %v165_v30 = vmul.f32 0.2, %v163_v29 }
  0xe1   :  { %v166_v31 = vsel %vm164_vm5, %v163_v29, %v165_v30 }
  0xe2   :  { %203 = vmatmul.f32.vlgmr.msra.gmra.mxu2 %v166_v31 }
 0x165   :  { %v204_v33 = vpop.f32.mrf.mxu2 }
 0x166   :  { %v205_v34 = vadd.f32 %v272_v32, %v204_v33 }
 0x168   :  { %v207_v35 = vsel %vm116_vm0, %v205_v34, 0.0 }
 0x169   :  { %v208_v36 = vrot.slane %v207_v35, 4 }
 0x16b   :  { %v209_v37 = vadd.f32 %v208_v36, %v207_v35 }
 0x16d   :  { %v210_v38 = vrot.slane %v209_v37, 2 }
 0x16f   :  { %v211_v39 = vadd.f32 %v210_v38, %v209_v37 }
 0x171   :  { %v212_v40 = vrot.slane %v211_v39, 1 }
 0x173   :  { %v213_v41 = vadd.f32 %v212_v40, %v211_v39 }
 0x175   :  { %v214_v42 = vmul.f32 %v213_v41, %v480_v58 }
 0x177   :  { %v215_v43 = vsub.f32 %v205_v34, %v214_v42 }
 0x179   :  { %v216_v44 = vmul.f32 %v215_v43, %v215_v43 }
 0x17b   :  { %v217_v45 = vsel %vm116_vm0, %v216_v44, 0.0 }
 0x17c   :  { %v218_v46 = vrot.slane %v217_v45, 4 }
 0x17e   :  { %v219_v47 = vadd.f32 %v218_v46, %v217_v45 }
 0x180   :  { %v220_v48 = vrot.slane %v219_v47, 2 }
 0x182   :  { %v221_v49 = vadd.f32 %v220_v48, %v219_v47 }
 0x184   :  { %v222_v50 = vrot.slane %v221_v49, 1 }
 0x186   :  { %v223_v51 = vadd.f32 %v222_v50, %v221_v49 }
 0x188   :  { %v224_v52 = vmul.f32 %v223_v51, %v480_v58  ;;  %v274_v58 = vld [vmem:[%s545_s8] ss:$0 sm:$0xff] }
 0x18a   :  { %v225_v53 = vadd.f32 1e-05, %v224_v52 }
 0x18c   :  { %279 = vrsqrt.f32 %v225_v53  ;;  %vm232_vm7 = vweird.f32 %v225_v53 }
 0x192   :  { %v280_v54 = vpop.eup %279 }
 0x193   :  { %v227_v55 = vmul.f32 %v280_v54, %v225_v53  ;;  %vm233_vm6 = vweird.f32 %v280_v54 }
 0x194   :  { %vm234_vm8 = vmor %vm232_vm7, %vm233_vm6 }
 0x195   :  { %v228_v56 = vmul.f32 %v280_v54, %v227_v55 }
 0x197   :  { %v229_v57 = vmul.f32 0.5, %v228_v56 }
 0x199   :  { %v230_v59 = vsub.f32 1.5, %v229_v57 }
 0x19b   :  { %v231_v60 = vmul.f32 %v280_v54, %v230_v59 }
 0x19d   :  { %v235_v62 = vsel %vm234_vm8, %v280_v54, %v231_v60 }
 0x19e   :  { %v236_v63 = vmul.f32 %v235_v62, %v215_v43 }
 0x1a0   :  { %v241_v0 = vmul.f32 %v273_v61, %v236_v63 }
 0x1a2   :  { %v246_v1 = vadd.f32 %v274_v58, %v241_v0 }
 0x1a4   :  { %vm247_vm9 = vcmp.ge.f32.partialorder %v246_v1, 0.0  ;;  %v248_v2 = vmul.f32 0.2, %v246_v1 }
 0x1a6   :  { %v249_v3 = vsel %vm247_vm9, %v246_v1, %v248_v2 }
 0x1a7   :  { %250 = vst [vmem:[#allocation2] sm:$0x3] %v249_v3 }
 0x1a8   :  { %261 = dma.vmem_to_hbm [thread:$0]  %s257_s0, 32, %s259_s27, [#allocation3]  }
 0x1a9   :  { %305 = dma.done.wait [#allocation3], 32  }
 0x1aa   :  { %306 = vsyncadd [#allocation3], 4294967264 }
 0x1ab   :  { %266 = vsyncpa [#allocation3], 1 }

// kernel: encoder_forward.2
= control target key start
LH: loop header
LB: loop body
LE: loop exit
PB: predicated region body
PF: predicated region fallthrough
CT: control target
= control target key end

     0   :  { %s9898_s0 = inlined_call_operand.vmem [shape: f32[2,32768], index: 0, kind: input, shape index: {}]   ;;  %s9899_s1 = inlined_call_operand.hbm [shape: bf16[32768,256], index: 1, kind: input, shape index: {}]   ;;  %s9900_s2 = inlined_call_operand.hbm [shape: f32[1,256], index: 2, kind: input, shape index: {}]   ;;  %s9901_s3 = inlined_call_operand.hbm [shape: f32[1,256], index: 3, kind: input, shape index: {}]   ;;  %s9902_s4 = inlined_call_operand.hbm [shape: f32[1,256], index: 4, kind: input, shape index: {}]   ;;  %s9903_s5 = inlined_call_operand.vmem [shape: f32[256,16], index: 5, kind: input, shape index: {}]   ;;  %s9904_s6 = inlined_call_operand.hbm [shape: f32[16,256], index: 6, kind: input, shape index: {}]   ;;  %s9905_s7 = inlined_call_operand.vmem [shape: f32[2,256], index: 7, kind: output, shape index: {}]  }
   0x1   :  { %9916 = sst [smem:[#allocation24_spill]] %s9898_s0 }
   0x2   :  { %9917 = sst [smem:[#allocation25_spill]] %s9899_s1 }
   0x3   :  { %9918 = sst [smem:[#allocation26_spill]] %s9900_s2 }
   0x4   :  { %9919 = sst [smem:[#allocation27_spill]] %s9902_s4 }
   0x5   :  { %9920 = sst [smem:[#allocation28_spill]] %s9903_s5 }
   0x6   :  { %9921 = sst [smem:[#allocation29_spill]] %s9905_s7 }
   0x7   :  { %12 = vsyncpa [#allocation4], 0 }
   0x8   :  { %14 = vsyncpa [#allocation4 + $0x1], 0 }
   0x9   :  { %15 = vsyncpa [#allocation6], 0 }
   0xa   :  { %17 = vsyncpa [#allocation6 + $0x1], 0 }
   0xb   :  { %18 = vsyncpa [#allocation9], 0 }
   0xc   :  { %20 = vsyncpa [#allocation9 + $0x1], 0  ;;  %s9004_s24 = smov 0   ;;  %s9006_s25 = smov 0  }
   0xd   :  { %s9008_s26 = smov 0   ;;  %s9010_s27 = smov 0  }
   0xe   :  { %s9012_s28 = smov 0   ;;  %s9014_s29 = smov 0  }
   0xf   :  { %s9016_s30 = smov 0   ;;  %s9018_s8 = smov 0  }
  0x10   :  { %s9020_s9 = smov 0   ;;  %s9022_s10 = smov 0  }
  0x11   :  { %s9024_s11 = smov 0  }
  0x12 LB: > { %9922 = sst [smem:[#allocation14_spill]] %s8924_s26  ;;  %s9906_s12 = sadd.s32 4294967295, %s8956_s11   ;;  %s8956_s11 = sphi %s9024_s11, %s26_s11   ;;  %s8952_s10 = sphi %s9022_s10, %s9963_s10   ;;  %s8948_s9 = sphi %s9020_s9, %s9956_s9   ;;  %s8944_s8 = sphi %s9018_s8, %s9962_s8   ;;  %s8940_s30 = sphi %s9016_s30, %s9955_s30   ;;  %s8936_s29 = sphi %s9014_s29, %s9954_s29   ;;  %s8932_s28 = sphi %s9012_s28, %s9961_s28   ;;  %s8928_s27 = sphi %s9010_s27, %s9960_s27   ;;  %s8924_s26 = sphi %s9008_s26, %s9952_s26   ;;  %s8920_s25 = sphi %s9006_s25, %s9959_s25   ;;  %s8916_s24 = sphi %s9004_s24, %s9958_s24  }
  0x13   : > { %9923 = sst [smem:[#allocation15_spill]] %s8936_s29  ;;  %s35_s13 = sadd.s32 1, %s8948_s9 }
  0x14   : > { %9924 = sst [smem:[#allocation16_spill]] %s8940_s30  ;;  %p36_p0 = scmp.ge.s32.totalorder %s35_s13, 4 }
  0x15   : > { %9925 = sst [smem:[#allocation17_spill]] %s8944_s8  ;;  %s38_s14 = sadd.s32 1, %s8952_s10 }
  0x16   : > { %9926 = sst [smem:[#allocation18_spill]] %s8948_s9  ;;  %s73_s15 = sadd.s32 1, %s8936_s29 }
  0x17   : > { %p80_p1 = scmp.ne.s32.totalorder %s8936_s29, %s8932_s28  ;;  %s9965_s13 = smov (%p36_p0, %s35_s13), 0 }
  0x18   : > { %9927 = sst [smem:[#allocation19_spill]] %s9965_s13  ;;  %s9967_s14 = smov (!%p36_p0, %s38_s14), %s8952_s10 }
  0x19   : > { %s68_s16 = ssub.s32 %s8948_s9, %s9965_s13  ;;  %p81_p2 = scmp.eq.s32.totalorder %s8956_s11, 0 }
  0x1a   : > { %p40_p3 = scmp.ge.s32.totalorder %s9967_s14, 2  ;;  %p86_p4 = scmp.ne.s32.totalorder %s8932_s28, %s8928_s27 }
  0x1b   : > { %p9072_p5 = por %p81_p2, %p80_p1  ;;  %p9078_p6 = scmp.eq.s32.totalorder %s9906_s12, 0 }
  0x1c   : > { %s9969_s14 = smov (%p40_p3, %s9967_s14), 0  ;;  %s99_s20 = sadd.s32 1, %s8924_s26 }
  0x1d   : > { %9930 = sst [smem:[#allocation20_spill]] %s9969_s14  ;;  %p9086_p7 = por %p9078_p6, %p86_p4 }
  0x1e   : > { %s69_s21 = ssub.s32 %s8952_s10, %s9969_s14  ;;  %p106_p8 = scmp.ne.s32.totalorder %s8924_s26, %s8920_s25 }
  0x1f   : > { %s70_s22 = sor.u32 %s69_s21, %s68_s16  ;;  %p97_p9 = scmp.eq.s32.totalorder %s69_s21, 0 }
  0x20   : > { %p71_p10 = scmp.eq.s32.totalorder %s70_s22, 0  ;;  %p9097_p11 = por %p106_p8, %p81_p2 }
  0x21   : > { %s9102_s27 = scalar_select %p97_p9, %s8924_s26, %s99_s20  }
  0x22   : > { %s9105_s12 = scalar_select %p71_p10, %s8936_s29, %s73_s15  }
  0x23   : > { %9933 = sst [smem:[#allocation21_spill]] %s9102_s27  ;;  %p112_p12 = scmp.ne.s32.totalorder %s8920_s25, %s8916_s24 }
  0x24   : > { %9934 = sst [smem:[#allocation22_spill]] %s9105_s12  ;;  %p8608_p13 = scmp.lt.s32.totalorder %s8956_s11, 8 }
  0x25   : > { %s299_s13 = sand.u32 1, %s8956_s11   ;;  %p9113_p0 = por %p112_p12, %p9078_p6 }
  0x26   : > { %p9119_p1 = pnand %p8608_p13, %p9072_p5  ;;  %s9124_s21 = sand.u32 1, %s8924_s26  }
  0x27   : > { %s9935_s14 = scalar_select %p9113_p0, 1, 0 }
  0x28   : > { %s9938_s2 = sld [smem:[#allocation26_spill]]  ;;  %s302_s18 = scalar_lea.vmem [#allocation5], %s9124_s21 }
  0x29   : > { %9936 = sst [smem:[#allocation23_spill]] %s9935_s14  ;;  %s309_s12 = sshll.u32 %s302_s18, 4  ;;  %s310_s12 = int_to_ptr.vmem [resolvable:$true] %s309_s12 }
  0x2a   : > { %p9133_p2 = pnand %p8608_p13, %p9097_p11  ;;  %s6005_s27 = sshll.u32 %s9124_s21, 4 }
  0x2b   : > { %p6007_p3 = scmp.ge.s32.totalorder %s8956_s11, 1  ;;  %s9139_s20 = scalar_lea.sflag [#allocation6], %s299_s13 }
  0x2c   : > { %s363_s22 = scalar_lea.vmem [#allocation10], %s6005_s27  ;;  %p378_p4 = scmp.lt.s32.totalorder %s8956_s11, 9 }
  0x2d   : > { %s9941_s4 = sld [smem:[#allocation27_spill]]  ;;  %s336_s7 = scalar_lea.vmem [#allocation8], %s9124_s21 }
  0x2e   : > { %s305_s24 = scalar_lea.hbm %s9938_s2, %s8952_s10  ;;  %p9147_p5 = pnand %p6007_p3, %p378_p4 }
  0x2f   : > { %s307_s15 = sshll.u32 %s305_s24, 4  ;;  %s370_s24 = sshll.u32 %s363_s22, 4  ;;  %s308_s15 = int_to_ptr.hbm [resolvable:$true] %s307_s15  ;;  %s9145_s24 = int_to_ptr.vmem [resolvable:$true] %s370_s24 }
  0x30   : > { %8598 = dma.hbm_to_vmem [thread:$0]  (!%p9133_p2), %s308_s15, 16, %s310_s12, %s9139_s20  }
  0x31   : > { %s343_s5 = sshll.u32 %s336_s7, 4  ;;  %s9156_s12 = scalar_lea.sflag [#allocation9], %s299_s13  ;;  %s344_s5 = int_to_ptr.vmem [resolvable:$true] %s343_s5 }
  0x32   : > { %s275_s27 = sand.u32 1, %s8936_s29   ;;  %s8069_s22 = sshll.u32 %s8948_s9, 11 }
  0x33   : > { %s339_s26 = scalar_lea.hbm %s9941_s4, %s8952_s10  ;;  %s6001_s15 = sshll.u32 %s275_s27, 12 }
  0x34   : > { %s341_s0 = sshll.u32 %s339_s26, 4  ;;  %s284_s8 = sadd.s32 %s8952_s10, %s8069_s22  ;;  %s342_s0 = int_to_ptr.hbm [resolvable:$true] %s341_s0 }
  0x35   : > { %8604 = dma.hbm_to_vmem [thread:$0]  (!%p9133_p2), %s342_s0, 16, %s344_s5, %s9156_s12  }
  0x36   : > { %s279_s30 = scalar_lea.vmem [#allocation3], %s6001_s15  ;;  %s6004_s18 = sshll.u32 %s284_s8, 2 }
  0x37   : > { %s289_s2 = sshll.u32 %s279_s30, 4  ;;  %s9942_s1 = sld [smem:[#allocation25_spill]]  ;;  %s290_s2 = int_to_ptr.vmem [resolvable:$true] %s289_s2 }
  0x38   : > { %s276_s0 = scalar_lea.sflag [#allocation4], %s275_s27  ;;  %s8958_s5 = smov 128  }
  0x39   : > { %s8959_s29 = smov 64   ;;  %s8960_s22 = smov 4  }
  0x3a   : > { %s322_s15 = scalar_lea.hbm %s9901_s3, %s8952_s10  ;;  %s319_s14 = scalar_lea.vmem [#allocation7], %s9124_s21 }
  0x3b   : > { %s324_s9 = sshll.u32 %s322_s15, 4  ;;  %s326_s7 = sshll.u32 %s319_s14, 4  ;;  %s325_s9 = int_to_ptr.hbm [resolvable:$true] %s324_s9  ;;  %s327_s7 = int_to_ptr.vmem [resolvable:$true] %s326_s7 }
  0x3c   : > { %8601 = dma.hbm_to_vmem [thread:$0]  (!%p9133_p2), %s325_s9, 16, %s327_s7, %s9139_s20  }
  0x3d   : > { %s286_s13 = scalar_lea.hbm %s9942_s1, %s6004_s18  ;;  %s6006_s27 = sshll.u32 %s8952_s10, 3 }
  0x3e   : > { %s287_s4 = sshll.u32 %s286_s13, 4  ;;  %s367_s13 = scalar_lea.hbm %s9904_s6, %s6006_s27  ;;  %s288_s4 = int_to_ptr.hbm [resolvable:$true] %s287_s4 }
  0x3f   : > { %8595 = dma.hbm_to_vmem [thread:$0]  (!%p9119_p1), %s288_s4, 65536, %s290_s2, %s276_s0, %s8958_s5, %s8959_s29, %s8960_s22  }
  0x40   : > { %s368_s1 = sshll.u32 %s367_s13, 4  ;;  %s8961_s16 = smov 256   ;;  %s369_s1 = int_to_ptr.hbm [resolvable:$true] %s368_s1 }
  0x41   : > { %s8962_s4 = smov 8   ;;  %382 = sbr.rel (%p9147_p5) target bundleno = 1340 (0x53c), region = 48 }
  0x42   : > { %8607 = dma.hbm_to_vmem [thread:$0]  (!%p9133_p2), %s369_s1, 256, %s9145_s24, %s9156_s12, %s8961_s16, %s8958_s5, %s8962_s4  }
  0x43   : > { %s384_s29 = sand.u32 (!%p9147_p5), 1, %s8932_s28  }
  0x44   : > { %s6008_s14 = sshll.u32 (!%p9147_p5), %s384_s29, 12  ;;  %s385_s21 = scalar_lea.sflag (!%p9147_p5), [#allocation4], %s384_s29 }
  0x45   : > { %s9188_s9 = scalar_lea.vmem (!%p9147_p5), [#allocation3], %s6008_s14 }
  0x46   : > { %8903 = dma.done.wait (%p9086_p7), %s385_s21, 65536  }
  0x47   : > { %8905 = vsyncadd (%p9086_p7), %s385_s21, 4294901760  ;;  %s9943_s20 = sadd.s32 4294967295, %s8956_s11   ;;  %s9197_s24 = sand.u32 1, %s8920_s25  }
  0x48   : > { %s394_s1 = sand.u32 1, %s9943_s20   ;;  %s397_s12 = scalar_lea.vmem [#allocation5], %s9197_s24 }
  0x49   : > { %s395_s23 = scalar_lea.sflag [#allocation6], %s394_s1 }
  0x4a   : > { %8907 = dma.done.wait (%p9113_p0), %s395_s23, 32  }
  0x4b   : > { %8909 = vsyncadd (%p9113_p0), %s395_s23, 4294967264  ;;  %s406_s19 = scalar_lea.vmem [#allocation7], %s9197_s24  ;;  %s413_s2 = scalar_lea.sflag [#allocation9], %s394_s1 }
  0x4c   : > { %s415_s0 = scalar_lea.vmem [#allocation8], %s9197_s24 }
  0x4d   : > { %8911 = dma.done.wait (%p9113_p0), %s413_s2, 272  }
  0x4e   : > { %8913 = vsyncadd (%p9113_p0), %s413_s2, 4294967024  ;;  %s9945_s5 = sld [smem:[#allocation16_spill]]  ;;  %s6009_s30 = sshll.u32 %s9197_s24, 4 }
  0x4f   : > { %s9946_s22 = sld [smem:[#allocation17_spill]] }
  0x50   : > { %s9947_s26 = sld [smem:[#allocation24_spill]] }
  0x51   : > { %s9948_s14 = sld [smem:[#allocation28_spill]] }
  0x52   : > { %s9949_s23 = sld [smem:[#allocation29_spill]] }
  0x54   : > { %s6010_s8 = sshll.u32 %s9945_s5, 6  ;;  %p6015_p9 = scmp.ne.s32.totalorder %s9945_s5, 0 }
  0x55   : > { %p484_p6 = scmp.lt.s32.totalorder %s6010_s8, 255  ;;  %s6012_s15 = sshll.u32 %s9946_s22, 4 }
  0x56   : > { %p491_p7 = scmp.lt.s32.totalorder %s6012_s15, 31  ;;  %p496_p8 = scmp.lt.s32.totalorder %s9946_s22, 1 }
  0x57   : > { %s9971_s8 = smov (!%p484_p6, %s6010_s8), 255 }
  0x58   : > { %s6011_s7 = sshll.u32 %s9971_s8, 1  ;;  %s9973_s15 = smov (!%p491_p7, %s6012_s15), 31 }
  0x59   : > { %s9217_s13 = scalar_lea.vmem %s9947_s26, %s6011_s7  ;;  %s9975_s22 = smov (!%p496_p8, %s9946_s22), 1 }
  0x5a   : > { %s6013_s16 = sshll.u32 %s9973_s15, 3  ;;  %s6014_s20 = sshll.u32 %s9975_s22, 1 }
  0x5b   : > { %s9223_s21 = scalar_lea.vmem %s9948_s14, %s6013_s16  ;;  %s9228_s2 = scalar_lea.vmem %s9949_s23, %s6014_s20 }
  0x5c   : > { %s9230_s8 = scalar_lea.vmem [#allocation10], %s6009_s30  ;;  %503 = sbr.rel (%p6015_p9) target bundleno = 99 (0x63), region = 72 }
  0x61   : > { %v8963_v0 = vmov 0.0  }
  0x62   : > { %504 = vst [vmem:[#allocation2] sm:$0x3] %v8963_v0 }
  0x63 PF: > { %v8077_v1 = vld [vmem:[%s9188_s9 + $0x38] sm:$0xff]  ;;  %v8076_v5 = vld [vmem:[%s9188_s9 + $0x30] sm:$0xff]  ;;  %v8075_v9 = vld [vmem:[%s9188_s9 + $0x28] sm:$0xff] }
  0x64   : > { %v8085_v2 = vld [vmem:[%s9188_s9 + $0x78] sm:$0xff]  ;;  %4843 = vmatpush.bf16.msra.mxu0 %v8077_v1  ;;  %v8084_v6 = vld [vmem:[%s9188_s9 + $0x70] sm:$0xff]  ;;  %v8083_v10 = vld [vmem:[%s9188_s9 + $0x68] sm:$0xff] }
  0x65   : > { %v8093_v3 = vld [vmem:[%s9188_s9 + $0xb8] sm:$0xff]  ;;  %4856 = vmatpush.bf16.msra.mxu1 %v8085_v2  ;;  %v8092_v7 = vld [vmem:[%s9188_s9 + $0xb0] sm:$0xff]  ;;  %v8091_v11 = vld [vmem:[%s9188_s9 + $0xa8] sm:$0xff] }
  0x66   : > { %v8101_v4 = vld [vmem:[%s9188_s9 + $0xf8] sm:$0xff]  ;;  %4869 = vmatpush.bf16.msra.mxu2 %v8093_v3  ;;  %v8100_v8 = vld [vmem:[%s9188_s9 + $0xf0] sm:$0xff]  ;;  %v8099_v12 = vld [vmem:[%s9188_s9 + $0xe8] sm:$0xff] }
  0x67   : > { %4882 = vmatpush.bf16.msra.mxu3 %v8101_v4  ;;  %v8074_v13 = vld [vmem:[%s9188_s9 + $0x20] sm:$0xff]  ;;  %v8073_v17 = vld [vmem:[%s9188_s9 + $0x18] sm:$0xff]  ;;  %v8072_v22 = vld [vmem:[%s9188_s9 + $0x10] sm:$0xff] }
  0x68   : > { %4844 = vmatpush.bf16.msra.mxu0 %v8076_v5  ;;  %v8082_v14 = vld [vmem:[%s9188_s9 + $0x60] sm:$0xff]  ;;  %v8081_v18 = vld [vmem:[%s9188_s9 + $0x58] sm:$0xff]  ;;  %v8080_v23 = vld [vmem:[%s9188_s9 + $0x50] sm:$0xff] }
  0x69   : > { %4857 = vmatpush.bf16.msra.mxu1 %v8084_v6  ;;  %v8090_v15 = vld [vmem:[%s9188_s9 + $0xa0] sm:$0xff]  ;;  %v8089_v19 = vld [vmem:[%s9188_s9 + $0x98] sm:$0xff]  ;;  %v8088_v24 = vld [vmem:[%s9188_s9 + $0x90] sm:$0xff] }
  0x6a   : > { %4870 = vmatpush.bf16.msra.mxu2 %v8092_v7  ;;  %v8098_v16 = vld [vmem:[%s9188_s9 + $0xe0] sm:$0xff]  ;;  %v8097_v20 = vld [vmem:[%s9188_s9 + $0xd8] sm:$0xff]  ;;  %v8096_v25 = vld [vmem:[%s9188_s9 + $0xd0] sm:$0xff] }
  0x6b   : > { %4883 = vmatpush.bf16.msra.mxu3 %v8100_v8  ;;  %v506_v21 = vld [vmem:[%s9217_s13] sm:$0xff]  ;;  %v8071_v26 = vld [vmem:[%s9188_s9 + $0x8] sm:$0xff]  ;;  %v8070_v30 = vld [vmem:[%s9188_s9] sm:$0xff] }
  0x6c   : > { %4845 = vmatpush.bf16.msra.mxu0 %v8075_v9  ;;  %538 = vst [vmem:[#allocation1] ss:$4 sm:$0xff] %v506_v21  ;;  %v8079_v27 = vld [vmem:[%s9188_s9 + $0x48] sm:$0xff]  ;;  %v8078_v31 = vld [vmem:[%s9188_s9 + $0x40] sm:$0xff]  ;;  %v8109_v39 = vld [vmem:[%s9188_s9 + $0x138] sm:$0xff] }
  0x6d   : > { %4858 = vmatpush.bf16.msra.mxu1 %v8083_v10  ;;  %v8087_v28 = vld [vmem:[%s9188_s9 + $0x88] sm:$0xff]  ;;  %v8086_v37 = vld [vmem:[%s9188_s9 + $0x80] sm:$0xff]  ;;  %v8117_v40 = vld [vmem:[%s9188_s9 + $0x178] sm:$0xff] }
  0x6e   : > { %4871 = vmatpush.bf16.msra.mxu2 %v8091_v11  ;;  %v8095_v29 = vld [vmem:[%s9188_s9 + $0xc8] sm:$0xff]  ;;  %v8094_v38 = vld [vmem:[%s9188_s9 + $0xc0] sm:$0xff]  ;;  %v8125_v41 = vld [vmem:[%s9188_s9 + $0x1b8] sm:$0xff] }
  0x6f   : > { %4884 = vmatpush.bf16.msra.mxu3 %v8099_v12  ;;  %v508_v32 = vld [vmem:[%s9217_s13 + $0x10] sm:$0xff]  ;;  %v8133_v42 = vld [vmem:[%s9188_s9 + $0x1f8] sm:$0xff]  ;;  %v8108_v48 = vld [vmem:[%s9188_s9 + $0x130] sm:$0xff] }
  0x70   : > { %4846 = vmatpush.bf16.msra.mxu0 %v8074_v13  ;;  %v507_v43 = vld [vmem:[%s9217_s13 + $0x8] sm:$0xff]  ;;  %v8116_v49 = vld [vmem:[%s9188_s9 + $0x170] sm:$0xff]  ;;  %v8107_v52 = vld [vmem:[%s9188_s9 + $0x128] sm:$0xff] }
  0x71   : > { %4859 = vmatpush.bf16.msra.mxu1 %v8082_v14  ;;  %540 = vst [vmem:[#allocation1 + $0x20] ss:$4 sm:$0xff] %v507_v43  ;;  %v8124_v50 = vld [vmem:[%s9188_s9 + $0x1b0] sm:$0xff]  ;;  %v8115_v53 = vld [vmem:[%s9188_s9 + $0x168] sm:$0xff]  ;;  %v8106_v61 = vld [vmem:[%s9188_s9 + $0x120] sm:$0xff] }
  0x72   : > { %4872 = vmatpush.bf16.msra.mxu2 %v8090_v15  ;;  %v8132_v51 = vld [vmem:[%s9188_s9 + $0x1f0] sm:$0xff]  ;;  %v8123_v54 = vld [vmem:[%s9188_s9 + $0x1a8] sm:$0xff]  ;;  %v8114_v62 = vld [vmem:[%s9188_s9 + $0x160] sm:$0xff] }
  0x73   : > { %4885 = vmatpush.bf16.msra.mxu3 %v8098_v16  ;;  %v543_v33 = vld.sshfl [vmem:[#allocation1 + $0x10] sm:$0xff pattern:$0x73625140]  ;;  %v541_v34 = vld.sshfl [vmem:[#allocation1] sm:$0xff pattern:$0x73625140] }
  0x74   : > { %4847 = vmatpush.bf16.msra.mxu0 %v8073_v17  ;;  %v544_v35 = vld.sshfl [vmem:[#allocation1 + $0x18] sm:$0xff pattern:$0x73625140]  ;;  %v542_v36 = vld.sshfl [vmem:[#allocation1 + $0x8] sm:$0xff pattern:$0x73625140]  ;;  %v685_v44 = vpack.c.bf16 %v543_v33, %v543_v33  ;;  %v683_v45 = vpack.c.bf16 %v541_v34, %v541_v34 }
  0x75   : > { %4860 = vmatpush.bf16.msra.mxu1 %v8081_v18  ;;  %549 = vst [vmem:[#allocation1] ss:$4 sm:$0xff] %v508_v32  ;;  %v686_v46 = vpack.c.bf16 %v544_v35, %v544_v35  ;;  %v684_v47 = vpack.c.bf16 %v542_v36, %v542_v36  ;;  %v8131_v55 = vld [vmem:[%s9188_s9 + $0x1e8] sm:$0xff]  ;;  %v8122_v63 = vld [vmem:[%s9188_s9 + $0x1a0] sm:$0xff]  ;;  %v8105_v1 = vld [vmem:[%s9188_s9 + $0x118] sm:$0xff] }
  0x76   : > { %4873 = vmatpush.bf16.msra.mxu2 %v8089_v19  ;;  %v509_v59 = vld [vmem:[%s9217_s13 + $0x18] sm:$0xff]  ;;  %v8130_v0 = vld [vmem:[%s9188_s9 + $0x1e0] sm:$0xff]  ;;  %v8113_v2 = vld [vmem:[%s9188_s9 + $0x158] sm:$0xff] }
  0x77   : > { %4886 = vmatpush.bf16.msra.mxu3 %v8097_v20  ;;  %v8121_v3 = vld [vmem:[%s9188_s9 + $0x198] sm:$0xff]  ;;  %v8104_v5 = vld [vmem:[%s9188_s9 + $0x110] sm:$0xff]  ;;  %v8103_v9 = vld [vmem:[%s9188_s9 + $0x108] sm:$0xff] }
  0x78   : > { %4848 = vmatpush.bf16.msra.mxu0 %v8072_v22  ;;  %v9280_v56 = vld.sshfl [vmem:[#allocation1 + $0x30] sm:$0xff pattern:$0x73625140]  ;;  %v9282_v57 = vld.sshfl [vmem:[#allocation1 + $0x20] sm:$0xff pattern:$0x73625140] }
  0x79   : > { %4861 = vmatpush.bf16.msra.mxu1 %v8080_v23  ;;  %v9284_v58 = vld.sshfl [vmem:[#allocation1 + $0x38] sm:$0xff pattern:$0x73625140]  ;;  %v9287_v60 = vld.sshfl [vmem:[#allocation1 + $0x28] sm:$0xff pattern:$0x73625140]  ;;  %v689_v22 = vpack.c.bf16 %v9280_v56, %v9280_v56  ;;  %v687_v23 = vpack.c.bf16 %v9282_v57, %v9282_v57 }
  0x7a   : > { %4874 = vmatpush.bf16.msra.mxu2 %v8088_v24  ;;  %550 = vst [vmem:[#allocation1 + $0x20] ss:$4 sm:$0xff] %v509_v59  ;;  %v8129_v4 = vld [vmem:[%s9188_s9 + $0x1d8] sm:$0xff]  ;;  %v8112_v6 = vld [vmem:[%s9188_s9 + $0x150] sm:$0xff]  ;;  %v8111_v10 = vld [vmem:[%s9188_s9 + $0x148] sm:$0xff] }
  0x7b   : > { %4887 = vmatpush.bf16.msra.mxu3 %v8096_v25  ;;  %v8120_v7 = vld [vmem:[%s9188_s9 + $0x190] sm:$0xff]  ;;  %v8119_v11 = vld [vmem:[%s9188_s9 + $0x188] sm:$0xff]  ;;  %v8102_v13 = vld [vmem:[%s9188_s9 + $0x100] sm:$0xff] }
  0x7c   : > { %4849 = vmatpush.bf16.msra.mxu0 %v8071_v26  ;;  %v8128_v8 = vld [vmem:[%s9188_s9 + $0x1d0] sm:$0xff]  ;;  %v8127_v12 = vld [vmem:[%s9188_s9 + $0x1c8] sm:$0xff]  ;;  %v8110_v14 = vld [vmem:[%s9188_s9 + $0x140] sm:$0xff]  ;;  %v690_v26 = vpack.c.bf16 %v9284_v58, %v9284_v58 }
  0x7d   : > { %4862 = vmatpush.bf16.msra.mxu1 %v8079_v27  ;;  %v8118_v15 = vld [vmem:[%s9188_s9 + $0x180] sm:$0xff]  ;;  %v8141_v17 = vld [vmem:[%s9188_s9 + $0x238] sm:$0xff]  ;;  %v8140_v21 = vld [vmem:[%s9188_s9 + $0x230] sm:$0xff]  ;;  %v688_v27 = vpack.c.bf16 %v9287_v60, %v9287_v60 }
  0x7e   : > { %4875 = vmatpush.bf16.msra.mxu2 %v8087_v28  ;;  %v8126_v16 = vld [vmem:[%s9188_s9 + $0x1c0] sm:$0xff]  ;;  %v8149_v18 = vld [vmem:[%s9188_s9 + $0x278] sm:$0xff]  ;;  %v8148_v24 = vld [vmem:[%s9188_s9 + $0x270] sm:$0xff] }
  0x7f   : > { %4888 = vmatpush.bf16.msra.mxu3 %v8095_v29  ;;  %v8157_v19 = vld [vmem:[%s9188_s9 + $0x2b8] sm:$0xff]  ;;  %v8156_v25 = vld [vmem:[%s9188_s9 + $0x2b0] sm:$0xff]  ;;  %v9326_v29 = vld.sshfl [vmem:[#allocation1 + $0x10] sm:$0xff pattern:$0x73625140] }
  0x80   : > { %4850 = vmatpush.bf16.msra.mxu0 %v8070_v30  ;;  %v8165_v20 = vld [vmem:[%s9188_s9 + $0x2f8] sm:$0xff]  ;;  %v9332_v33 = vld.sshfl [vmem:[#allocation1 + $0x18] sm:$0xff pattern:$0x73625140]  ;;  %v8150_v56 = vld [vmem:[%s9188_s9 + $0x280] sm:$0xff] }
  0x81   : > { %4863 = vmatpush.bf16.msra.mxu1 %v8078_v31  ;;  %v9324_v28 = vld.sshfl [vmem:[#allocation1] sm:$0xff pattern:$0x73625140]  ;;  %v9328_v30 = vld.sshfl [vmem:[#allocation1 + $0x8] sm:$0xff pattern:$0x73625140] }
  0x82   : > { %4876 = vmatpush.bf16.msra.mxu2 %v8086_v37  ;;  %v8164_v31 = vld [vmem:[%s9188_s9 + $0x2f0] sm:$0xff]  ;;  %v8139_v34 = vld [vmem:[%s9188_s9 + $0x228] sm:$0xff]  ;;  %v8145_v43 = vld [vmem:[%s9188_s9 + $0x258] sm:$0xff] }
  0x83   : > { %4889 = vmatpush.bf16.msra.mxu3 %v8094_v38  ;;  %4851 = vmatmul.bf16.vlgmr.msra.gmra.mxu0 %v683_v45  ;;  %v510_v32 = vld [vmem:[%s9217_s13 + $0x20] sm:$0xff]  ;;  %v8147_v35 = vld [vmem:[%s9188_s9 + $0x268] sm:$0xff]  ;;  %v8138_v38 = vld [vmem:[%s9188_s9 + $0x220] sm:$0xff] }
  0x84   : > { %4895 = vmatpush.bf16.msrb.mxu0 %v8109_v39  ;;  %4864 = vmatmul.bf16.vlgmr.msra.gmra.mxu1 %v684_v47  ;;  %559 = vst [vmem:[#allocation1] ss:$4 sm:$0xff] %v510_v32  ;;  %v8155_v36 = vld [vmem:[%s9188_s9 + $0x2a8] sm:$0xff]  ;;  %v8146_v39 = vld [vmem:[%s9188_s9 + $0x260] sm:$0xff]  ;;  %v8161_v45 = vld [vmem:[%s9188_s9 + $0x2d8] sm:$0xff] }
  0x85   : > { %4908 = vmatpush.bf16.msrb.mxu1 %v8117_v40  ;;  %4877 = vmatmul.bf16.vlgmr.msra.gmra.mxu2 %v685_v44  ;;  %v8163_v37 = vld [vmem:[%s9188_s9 + $0x2e8] sm:$0xff]  ;;  %v8154_v40 = vld [vmem:[%s9188_s9 + $0x2a0] sm:$0xff]  ;;  %v8153_v44 = vld [vmem:[%s9188_s9 + $0x298] sm:$0xff] }
  0x86   : > { %4921 = vmatpush.bf16.msrb.mxu2 %v8125_v41  ;;  %4890 = vmatmul.bf16.vlgmr.msra.gmra.mxu3 %v686_v46  ;;  %v8162_v41 = vld [vmem:[%s9188_s9 + $0x2e0] sm:$0xff]  ;;  %v8136_v46 = vld [vmem:[%s9188_s9 + $0x210] sm:$0xff]  ;;  %v8173_v58 = vld [vmem:[%s9188_s9 + $0x338] sm:$0xff] }
  0x87   : > { %4934 = vmatpush.bf16.msrb.mxu3 %v8133_v42  ;;  %v8137_v42 = vld [vmem:[%s9188_s9 + $0x218] sm:$0xff]  ;;  %v8144_v47 = vld [vmem:[%s9188_s9 + $0x250] sm:$0xff]  ;;  %v8158_v57 = vld [vmem:[%s9188_s9 + $0x2c0] sm:$0xff] }
  0x88   : > { %4896 = vmatpush.bf16.msrb.mxu0 %v8108_v48  ;;  %v8152_v48 = vld [vmem:[%s9188_s9 + $0x290] sm:$0xff]  ;;  %v8181_v59 = vld [vmem:[%s9188_s9 + $0x378] sm:$0xff]  ;;  %v8174_v32 = vld [vmem:[%s9188_s9 + $0x340] sm:$0xff] }
  0x89   : > { %4909 = vmatpush.bf16.msrb.mxu1 %v8116_v49  ;;  %v8160_v49 = vld [vmem:[%s9188_s9 + $0x2d0] sm:$0xff]  ;;  %v8189_v60 = vld [vmem:[%s9188_s9 + $0x3b8] sm:$0xff] }
  0x8a   : > { %4922 = vmatpush.bf16.msrb.mxu2 %v8124_v50  ;;  %v8135_v50 = vld [vmem:[%s9188_s9 + $0x208] sm:$0xff] }
  0x8b   : > { %4935 = vmatpush.bf16.msrb.mxu3 %v8132_v51  ;;  %v8143_v51 = vld [vmem:[%s9188_s9 + $0x248] sm:$0xff] }
  0x8c   : > { %4897 = vmatpush.bf16.msrb.mxu0 %v8107_v52  ;;  %v8151_v52 = vld [vmem:[%s9188_s9 + $0x288] sm:$0xff] }
  0x8d   : > { %4910 = vmatpush.bf16.msrb.mxu1 %v8115_v53  ;;  %v8159_v53 = vld [vmem:[%s9188_s9 + $0x2c8] sm:$0xff] }
  0x8e   : > { %4923 = vmatpush.bf16.msrb.mxu2 %v8123_v54  ;;  %v8134_v54 = vld [vmem:[%s9188_s9 + $0x200] sm:$0xff] }
  0x8f   : > { %4936 = vmatpush.bf16.msrb.mxu3 %v8131_v55  ;;  %v8142_v55 = vld [vmem:[%s9188_s9 + $0x240] sm:$0xff] }
  0x90   : > { %4898 = vmatpush.bf16.msrb.mxu0 %v8106_v61  ;;  %v8197_v61 = vld [vmem:[%s9188_s9 + $0x3f8] sm:$0xff] }
  0x91   : > { %4911 = vmatpush.bf16.msrb.mxu1 %v8114_v62  ;;  %v691_v62 = vpack.c.bf16 %v9324_v28, %v9324_v28  ;;  %v8175_v28 = vld [vmem:[%s9188_s9 + $0x348] sm:$0xff] }
  0x92   : > { %4924 = vmatpush.bf16.msrb.mxu2 %v8122_v63  ;;  %v693_v63 = vpack.c.bf16 %v9326_v29, %v9326_v29  ;;  %v8183_v29 = vld [vmem:[%s9188_s9 + $0x388] sm:$0xff] }
  0x93   : > { %4937 = vmatpush.bf16.msrb.mxu3 %v8130_v0  ;;  %v8172_v0 = vld [vmem:[%s9188_s9 + $0x330] sm:$0xff] }
  0x94   : > { %4899 = vmatpush.bf16.msrb.mxu0 %v8105_v1  ;;  %v692_v1 = vpack.c.bf16 %v9328_v30, %v9328_v30  ;;  %v8191_v30 = vld [vmem:[%s9188_s9 + $0x3c8] sm:$0xff] }
  0x95   : > { %4912 = vmatpush.bf16.msrb.mxu1 %v8113_v2  ;;  %v694_v2 = vpack.c.bf16 %v9332_v33, %v9332_v33  ;;  %v8182_v33 = vld [vmem:[%s9188_s9 + $0x380] sm:$0xff] }
  0x96   : > { %4925 = vmatpush.bf16.msrb.mxu2 %v8121_v3  ;;  %v8180_v3 = vld [vmem:[%s9188_s9 + $0x370] sm:$0xff] }
  0x97   : > { %4938 = vmatpush.bf16.msrb.mxu3 %v8129_v4  ;;  %v8188_v4 = vld [vmem:[%s9188_s9 + $0x3b0] sm:$0xff] }
  0x98   : > { %4900 = vmatpush.bf16.msrb.mxu0 %v8104_v5  ;;  %v9373_v5 = vld.sshfl [vmem:[#allocation1 + $0x20] sm:$0xff pattern:$0x73625140] }
  0x99   : > { %4913 = vmatpush.bf16.msrb.mxu1 %v8112_v6  ;;  %v9375_v6 = vld.sshfl [vmem:[#allocation1 + $0x30] sm:$0xff pattern:$0x73625140] }
  0x9a   : > { %4926 = vmatpush.bf16.msrb.mxu2 %v8120_v7  ;;  %v9377_v7 = vld.sshfl [vmem:[#allocation1 + $0x28] sm:$0xff pattern:$0x73625140] }
  0x9b   : > { %4939 = vmatpush.bf16.msrb.mxu3 %v8128_v8  ;;  %v8196_v8 = vld [vmem:[%s9188_s9 + $0x3f0] sm:$0xff] }
  0x9c   : > { %4901 = vmatpush.bf16.msrb.mxu0 %v8103_v9  ;;  %v511_v9 = vld [vmem:[%s9217_s13 + $0x28] sm:$0xff] }
  0x9d   : > { %4914 = vmatpush.bf16.msrb.mxu1 %v8111_v10  ;;  %v9381_v10 = vld.sshfl [vmem:[#allocation1 + $0x38] sm:$0xff pattern:$0x73625140] }
  0x9e   : > { %4927 = vmatpush.bf16.msrb.mxu2 %v8119_v11  ;;  %560 = vst [vmem:[#allocation1 + $0x20] ss:$4 sm:$0xff] %v511_v9  ;;  %v8171_v11 = vld [vmem:[%s9188_s9 + $0x328] sm:$0xff]  ;;  %v561_v9 = vld.sshfl [vmem:[#allocation1] sm:$0xff pattern:$0x73625140] }
  0x9f   : > { %4940 = vmatpush.bf16.msrb.mxu3 %v8127_v12  ;;  %v8179_v12 = vld [vmem:[%s9188_s9 + $0x368] sm:$0xff] }
  0xa0   : > { %4902 = vmatpush.bf16.msrb.mxu0 %v8102_v13  ;;  %v8187_v13 = vld [vmem:[%s9188_s9 + $0x3a8] sm:$0xff] }
  0xa1   : > { %4915 = vmatpush.bf16.msrb.mxu1 %v8110_v14  ;;  %v8195_v14 = vld [vmem:[%s9188_s9 + $0x3e8] sm:$0xff] }
  0xa2   : > { %4928 = vmatpush.bf16.msrb.mxu2 %v8118_v15  ;;  %v8170_v15 = vld [vmem:[%s9188_s9 + $0x320] sm:$0xff] }
  0xa3   : > { %4941 = vmatpush.bf16.msrb.mxu3 %v8126_v16  ;;  %4903 = vmatmul.bf16.vlgmr.msrb.gmra.mxu0 %v687_v23  ;;  %v8178_v16 = vld [vmem:[%s9188_s9 + $0x360] sm:$0xff]  ;;  %v8168_v23 = vld [vmem:[%s9188_s9 + $0x310] sm:$0xff] }
  0xa4   : > { %4947 = vmatpush.bf16.msra.mxu0 %v8141_v17  ;;  %4916 = vmatmul.bf16.vlgmr.msrb.gmra.mxu1 %v688_v27  ;;  %v8186_v17 = vld [vmem:[%s9188_s9 + $0x3a0] sm:$0xff]  ;;  %v8167_v27 = vld [vmem:[%s9188_s9 + $0x308] sm:$0xff] }
  0xa5   : > { %4960 = vmatpush.bf16.msra.mxu1 %v8149_v18  ;;  %4929 = vmatmul.bf16.vlgmr.msrb.gmra.mxu2 %v689_v22  ;;  %v8194_v18 = vld [vmem:[%s9188_s9 + $0x3e0] sm:$0xff]  ;;  %v8193_v22 = vld [vmem:[%s9188_s9 + $0x3d8] sm:$0xff] }
  0xa6   : > { %4973 = vmatpush.bf16.msra.mxu2 %v8157_v19  ;;  %4942 = vmatmul.bf16.vlgmr.msrb.gmra.mxu3 %v690_v26  ;;  %v8169_v19 = vld [vmem:[%s9188_s9 + $0x318] sm:$0xff]  ;;  %v8192_v26 = vld [vmem:[%s9188_s9 + $0x3d0] sm:$0xff] }
  0xa7   : > { %4986 = vmatpush.bf16.msra.mxu3 %v8165_v20  ;;  %v8177_v20 = vld [vmem:[%s9188_s9 + $0x358] sm:$0xff] }
  0xa8   : > { %4948 = vmatpush.bf16.msra.mxu0 %v8140_v21  ;;  %v8185_v21 = vld [vmem:[%s9188_s9 + $0x398] sm:$0xff] }
  0xa9   : > { %4961 = vmatpush.bf16.msra.mxu1 %v8148_v24  ;;  %v8176_v24 = vld [vmem:[%s9188_s9 + $0x350] sm:$0xff] }
  0xaa   : > { %4974 = vmatpush.bf16.msra.mxu2 %v8156_v25  ;;  %v8184_v25 = vld [vmem:[%s9188_s9 + $0x390] sm:$0xff] }
  0xab   : > { %4987 = vmatpush.bf16.msra.mxu3 %v8164_v31  ;;  %v8166_v31 = vld [vmem:[%s9188_s9 + $0x300] sm:$0xff] }
  0xac   : > { %4949 = vmatpush.bf16.msra.mxu0 %v8139_v34  ;;  %v8190_v34 = vld [vmem:[%s9188_s9 + $0x3c0] sm:$0xff] }
  0xad   : > { %4962 = vmatpush.bf16.msra.mxu1 %v8147_v35  ;;  %v8205_v35 = vld [vmem:[%s9188_s9 + $0x438] sm:$0xff] }
  0xae   : > { %4975 = vmatpush.bf16.msra.mxu2 %v8155_v36  ;;  %v8213_v36 = vld [vmem:[%s9188_s9 + $0x478] sm:$0xff] }
  0xaf   : > { %4988 = vmatpush.bf16.msra.mxu3 %v8163_v37  ;;  %v8221_v37 = vld [vmem:[%s9188_s9 + $0x4b8] sm:$0xff] }
  0xb0   : > { %4950 = vmatpush.bf16.msra.mxu0 %v8138_v38  ;;  %v8229_v38 = vld [vmem:[%s9188_s9 + $0x4f8] sm:$0xff] }
  0xb1   : > { %4963 = vmatpush.bf16.msra.mxu1 %v8146_v39  ;;  %v695_v39 = vpack.c.bf16 %v9373_v5, %v9373_v5  ;;  %v8214_v5 = vld [vmem:[%s9188_s9 + $0x480] sm:$0xff] }
  0xb2   : > { %4976 = vmatpush.bf16.msra.mxu2 %v8154_v40  ;;  %v697_v40 = vpack.c.bf16 %v9375_v6, %v9375_v6  ;;  %v8222_v6 = vld [vmem:[%s9188_s9 + $0x4c0] sm:$0xff] }
  0xb3   : > { %4989 = vmatpush.bf16.msra.mxu3 %v8162_v41  ;;  %v696_v41 = vpack.c.bf16 %v9377_v7, %v9377_v7  ;;  %v8237_v7 = vld [vmem:[%s9188_s9 + $0x538] sm:$0xff] }
  0xb4   : > { %4951 = vmatpush.bf16.msra.mxu0 %v8137_v42  ;;  %v698_v42 = vpack.c.bf16 %v9381_v10, %v9381_v10  ;;  %v563_v10 = vld.sshfl [vmem:[#allocation1 + $0x10] sm:$0xff pattern:$0x73625140] }
  0xb5   : > { %4964 = vmatpush.bf16.msra.mxu1 %v8145_v43  ;;  %v8204_v43 = vld [vmem:[%s9188_s9 + $0x430] sm:$0xff] }
  0xb6   : > { %4977 = vmatpush.bf16.msra.mxu2 %v8153_v44  ;;  %v8212_v44 = vld [vmem:[%s9188_s9 + $0x470] sm:$0xff] }
  0xb7   : > { %4990 = vmatpush.bf16.msra.mxu3 %v8161_v45  ;;  %v8220_v45 = vld [vmem:[%s9188_s9 + $0x4b0] sm:$0xff] }
  0xb8   : > { %4952 = vmatpush.bf16.msra.mxu0 %v8136_v46  ;;  %v8228_v46 = vld [vmem:[%s9188_s9 + $0x4f0] sm:$0xff] }
  0xb9   : > { %4965 = vmatpush.bf16.msra.mxu1 %v8144_v47  ;;  %v8203_v47 = vld [vmem:[%s9188_s9 + $0x428] sm:$0xff] }
  0xba   : > { %4978 = vmatpush.bf16.msra.mxu2 %v8152_v48  ;;  %v8211_v48 = vld [vmem:[%s9188_s9 + $0x468] sm:$0xff] }
  0xbb   : > { %4991 = vmatpush.bf16.msra.mxu3 %v8160_v49  ;;  %v8219_v49 = vld [vmem:[%s9188_s9 + $0x4a8] sm:$0xff] }
  0xbc   : > { %4953 = vmatpush.bf16.msra.mxu0 %v8135_v50  ;;  %v8227_v50 = vld [vmem:[%s9188_s9 + $0x4e8] sm:$0xff] }
  0xbd   : > { %4966 = vmatpush.bf16.msra.mxu1 %v8143_v51  ;;  %v8202_v51 = vld [vmem:[%s9188_s9 + $0x420] sm:$0xff] }
  0xbe   : > { %4979 = vmatpush.bf16.msra.mxu2 %v8151_v52  ;;  %v8210_v52 = vld [vmem:[%s9188_s9 + $0x460] sm:$0xff] }
  0xbf   : > { %4992 = vmatpush.bf16.msra.mxu3 %v8159_v53  ;;  %v8218_v53 = vld [vmem:[%s9188_s9 + $0x4a0] sm:$0xff] }
  0xc0   : > { %4954 = vmatpush.bf16.msra.mxu0 %v8134_v54  ;;  %v8226_v54 = vld [vmem:[%s9188_s9 + $0x4e0] sm:$0xff] }
  0xc1   : > { %4967 = vmatpush.bf16.msra.mxu1 %v8142_v55  ;;  %v8201_v55 = vld [vmem:[%s9188_s9 + $0x418] sm:$0xff] }
  0xc2   : > { %4980 = vmatpush.bf16.msra.mxu2 %v8150_v56  ;;  %v8209_v56 = vld [vmem:[%s9188_s9 + $0x458] sm:$0xff] }
  0xc3   : > { %4993 = vmatpush.bf16.msra.mxu3 %v8158_v57  ;;  %4955 = vmatmul.bf16.vlgmr.msra.gmra.mxu0 %v691_v62  ;;  %v8217_v57 = vld [vmem:[%s9188_s9 + $0x498] sm:$0xff]  ;;  %v8224_v62 = vld [vmem:[%s9188_s9 + $0x4d0] sm:$0xff] }
  0xc4   : > { %4999 = vmatpush.bf16.msrb.mxu0 %v8173_v58  ;;  %4968 = vmatmul.bf16.vlgmr.msra.gmra.mxu1 %v692_v1  ;;  %v8225_v58 = vld [vmem:[%s9188_s9 + $0x4d8] sm:$0xff]  ;;  %v8215_v1 = vld [vmem:[%s9188_s9 + $0x488] sm:$0xff] }
  0xc5   : > { %5012 = vmatpush.bf16.msrb.mxu1 %v8181_v59  ;;  %4981 = vmatmul.bf16.vlgmr.msra.gmra.mxu2 %v693_v63  ;;  %v8200_v59 = vld [vmem:[%s9188_s9 + $0x410] sm:$0xff]  ;;  %v8199_v63 = vld [vmem:[%s9188_s9 + $0x408] sm:$0xff] }
  0xc6   : > { %5025 = vmatpush.bf16.msrb.mxu2 %v8189_v60  ;;  %4994 = vmatmul.bf16.vlgmr.msra.gmra.mxu3 %v694_v2  ;;  %v8208_v60 = vld [vmem:[%s9188_s9 + $0x450] sm:$0xff]  ;;  %v8223_v2 = vld [vmem:[%s9188_s9 + $0x4c8] sm:$0xff] }
  0xc7   : > { %5038 = vmatpush.bf16.msrb.mxu3 %v8197_v61  ;;  %v8216_v61 = vld [vmem:[%s9188_s9 + $0x490] sm:$0xff] }
  0xc8   : > { %5000 = vmatpush.bf16.msrb.mxu0 %v8172_v0  ;;  %v8207_v0 = vld [vmem:[%s9188_s9 + $0x448] sm:$0xff] }
  0xc9   : > { %5013 = vmatpush.bf16.msrb.mxu1 %v8180_v3  ;;  %v8198_v3 = vld [vmem:[%s9188_s9 + $0x400] sm:$0xff] }
  0xca   : > { %5026 = vmatpush.bf16.msrb.mxu2 %v8188_v4  ;;  %v8206_v4 = vld [vmem:[%s9188_s9 + $0x440] sm:$0xff] }
  0xcb   : > { %5039 = vmatpush.bf16.msrb.mxu3 %v8196_v8  ;;  %v8245_v8 = vld [vmem:[%s9188_s9 + $0x578] sm:$0xff] }
  0xcc   : > { %5001 = vmatpush.bf16.msrb.mxu0 %v8171_v11  ;;  %v562_v11 = vld.sshfl [vmem:[#allocation1 + $0x8] sm:$0xff pattern:$0x73625140] }
  0xcd   : > { %5014 = vmatpush.bf16.msrb.mxu1 %v8179_v12  ;;  %v564_v12 = vld.sshfl [vmem:[#allocation1 + $0x18] sm:$0xff pattern:$0x73625140] }
  0xce   : > { %5027 = vmatpush.bf16.msrb.mxu2 %v8187_v13  ;;  %v8253_v13 = vld [vmem:[%s9188_s9 + $0x5b8] sm:$0xff] }
  0xcf   : > { %5040 = vmatpush.bf16.msrb.mxu3 %v8195_v14  ;;  %v8261_v14 = vld [vmem:[%s9188_s9 + $0x5f8] sm:$0xff] }
  0xd0   : > { %5002 = vmatpush.bf16.msrb.mxu0 %v8170_v15  ;;  %v699_v15 = vpack.c.bf16 %v561_v9, %v561_v9  ;;  %v8284_v9 = vld [vmem:[%s9188_s9 + $0x6b0] sm:$0xff] }
  0xd1   : > { %5015 = vmatpush.bf16.msrb.mxu1 %v8178_v16  ;;  %v701_v16 = vpack.c.bf16 %v563_v10, %v563_v10  ;;  %v8292_v10 = vld [vmem:[%s9188_s9 + $0x6f0] sm:$0xff] }
  0xd2   : > { %5028 = vmatpush.bf16.msrb.mxu2 %v8186_v17  ;;  %v700_v17 = vpack.c.bf16 %v562_v11, %v562_v11  ;;  %v8267_v11 = vld [vmem:[%s9188_s9 + $0x628] sm:$0xff] }
  0xd3   : > { %5041 = vmatpush.bf16.msrb.mxu3 %v8194_v18  ;;  %v702_v18 = vpack.c.bf16 %v564_v12, %v564_v12  ;;  %v8275_v12 = vld [vmem:[%s9188_s9 + $0x668] sm:$0xff] }
  0xd4   : > { %5003 = vmatpush.bf16.msrb.mxu0 %v8169_v19  ;;  %v8236_v19 = vld [vmem:[%s9188_s9 + $0x530] sm:$0xff] }
  0xd5   : > { %5016 = vmatpush.bf16.msrb.mxu1 %v8177_v20  ;;  %v8244_v20 = vld [vmem:[%s9188_s9 + $0x570] sm:$0xff] }
  0xd6   : > { %5029 = vmatpush.bf16.msrb.mxu2 %v8185_v21  ;;  %v8252_v21 = vld [vmem:[%s9188_s9 + $0x5b0] sm:$0xff] }
  0xd7   : > { %5042 = vmatpush.bf16.msrb.mxu3 %v8193_v22  ;;  %v8260_v22 = vld [vmem:[%s9188_s9 + $0x5f0] sm:$0xff] }
  0xd8   : > { %5004 = vmatpush.bf16.msrb.mxu0 %v8168_v23  ;;  %v8235_v23 = vld [vmem:[%s9188_s9 + $0x528] sm:$0xff] }
  0xd9   : > { %5017 = vmatpush.bf16.msrb.mxu1 %v8176_v24  ;;  %v8243_v24 = vld [vmem:[%s9188_s9 + $0x568] sm:$0xff] }
  0xda   : > { %5030 = vmatpush.bf16.msrb.mxu2 %v8184_v25  ;;  %v8251_v25 = vld [vmem:[%s9188_s9 + $0x5a8] sm:$0xff] }
  0xdb   : > { %5043 = vmatpush.bf16.msrb.mxu3 %v8192_v26  ;;  %v8259_v26 = vld [vmem:[%s9188_s9 + $0x5e8] sm:$0xff] }
  0xdc   : > { %5005 = vmatpush.bf16.msrb.mxu0 %v8167_v27 }
  0xdd   : > { %5018 = vmatpush.bf16.msrb.mxu1 %v8175_v28  ;;  %v8234_v28 = vld [vmem:[%s9188_s9 + $0x520] sm:$0xff] }
  0xde   : > { %5031 = vmatpush.bf16.msrb.mxu2 %v8183_v29  ;;  %v8242_v29 = vld [vmem:[%s9188_s9 + $0x560] sm:$0xff] }
  0xdf   : > { %5044 = vmatpush.bf16.msrb.mxu3 %v8191_v30 }
  0xe0   : > { %5006 = vmatpush.bf16.msrb.mxu0 %v8166_v31  ;;  %v8250_v31 = vld [vmem:[%s9188_s9 + $0x5a0] sm:$0xff] }
  0xe1   : > { %5019 = vmatpush.bf16.msrb.mxu1 %v8174_v32  ;;  %v8258_v32 = vld [vmem:[%s9188_s9 + $0x5e0] sm:$0xff] }
  0xe2   : > { %5032 = vmatpush.bf16.msrb.mxu2 %v8182_v33 }
  0xe3   : > { %5045 = vmatpush.bf16.msrb.mxu3 %v8190_v34  ;;  %5007 = vmatmul.bf16.vlgmr.msrb.gmra.mxu0 %v695_v39  ;;  %v8233_v34 = vld [vmem:[%s9188_s9 + $0x518] sm:$0xff] }
  0xe4   : > { %5051 = vmatpush.bf16.msra.mxu0 %v8205_v35  ;;  %5020 = vmatmul.bf16.vlgmr.msrb.gmra.mxu1 %v696_v41  ;;  %v8241_v35 = vld [vmem:[%s9188_s9 + $0x558] sm:$0xff] }
  0xe5   : > { %5064 = vmatpush.bf16.msra.mxu1 %v8213_v36  ;;  %5033 = vmatmul.bf16.vlgmr.msrb.gmra.mxu2 %v697_v40  ;;  %v8249_v36 = vld [vmem:[%s9188_s9 + $0x598] sm:$0xff] }
  0xe6   : > { %5077 = vmatpush.bf16.msra.mxu2 %v8221_v37  ;;  %5046 = vmatmul.bf16.vlgmr.msrb.gmra.mxu3 %v698_v42  ;;  %v8257_v37 = vld [vmem:[%s9188_s9 + $0x5d8] sm:$0xff]  ;;  %v8232_v42 = vld [vmem:[%s9188_s9 + $0x510] sm:$0xff] }
  0xe7   : > { %5090 = vmatpush.bf16.msra.mxu3 %v8229_v38 }
  0xe8   : > { %5052 = vmatpush.bf16.msra.mxu0 %v8204_v43  ;;  %v8240_v43 = vld [vmem:[%s9188_s9 + $0x550] sm:$0xff] }
  0xe9   : > { %5065 = vmatpush.bf16.msra.mxu1 %v8212_v44 }
  0xea   : > { %5078 = vmatpush.bf16.msra.mxu2 %v8220_v45 }
  0xeb   : > { %5091 = vmatpush.bf16.msra.mxu3 %v8228_v46  ;;  %v8248_v46 = vld [vmem:[%s9188_s9 + $0x590] sm:$0xff] }
  0xec   : > { %5053 = vmatpush.bf16.msra.mxu0 %v8203_v47  ;;  %v8256_v47 = vld [vmem:[%s9188_s9 + $0x5d0] sm:$0xff] }
  0xed   : > { %5066 = vmatpush.bf16.msra.mxu1 %v8211_v48  ;;  %v8231_v48 = vld [vmem:[%s9188_s9 + $0x508] sm:$0xff] }
  0xee   : > { %5079 = vmatpush.bf16.msra.mxu2 %v8219_v49  ;;  %v8239_v49 = vld [vmem:[%s9188_s9 + $0x548] sm:$0xff] }
  0xef   : > { %5092 = vmatpush.bf16.msra.mxu3 %v8227_v50  ;;  %v512_v50 = vld [vmem:[%s9217_s13 + $0x30] sm:$0xff] }
  0xf0   : > { %5054 = vmatpush.bf16.msra.mxu0 %v8202_v51  ;;  %v8247_v51 = vld [vmem:[%s9188_s9 + $0x588] sm:$0xff]  ;;  %569 = vst [vmem:[#allocation1] ss:$4 sm:$0xff] %v512_v50 }
  0xf1   : > { %5067 = vmatpush.bf16.msra.mxu1 %v8210_v52  ;;  %v8255_v52 = vld [vmem:[%s9188_s9 + $0x5c8] sm:$0xff] }
  0xf2   : > { %5080 = vmatpush.bf16.msra.mxu2 %v8218_v53 }
  0xf3   : > { %5093 = vmatpush.bf16.msra.mxu3 %v8226_v54 }
  0xf4   : > { %5055 = vmatpush.bf16.msra.mxu0 %v8201_v55  ;;  %v8230_v55 = vld [vmem:[%s9188_s9 + $0x500] sm:$0xff] }
  0xf5   : > { %5068 = vmatpush.bf16.msra.mxu1 %v8209_v56  ;;  %v8238_v56 = vld [vmem:[%s9188_s9 + $0x540] sm:$0xff] }
  0xf6   : > { %5081 = vmatpush.bf16.msra.mxu2 %v8217_v57  ;;  %v8246_v57 = vld [vmem:[%s9188_s9 + $0x580] sm:$0xff] }
  0xf7   : > { %5094 = vmatpush.bf16.msra.mxu3 %v8225_v58  ;;  %v8254_v58 = vld [vmem:[%s9188_s9 + $0x5c0] sm:$0xff]  ;;  %v571_v50 = vld.sshfl [vmem:[#allocation1] sm:$0xff pattern:$0x73625140] }
  0xf8   : > { %5056 = vmatpush.bf16.msra.mxu0 %v8200_v59  ;;  %v8269_v59 = vld [vmem:[%s9188_s9 + $0x638] sm:$0xff] }
  0xf9   : > { %5069 = vmatpush.bf16.msra.mxu1 %v8208_v60  ;;  %v8277_v60 = vld [vmem:[%s9188_s9 + $0x678] sm:$0xff] }
  0xfa   : > { %5082 = vmatpush.bf16.msra.mxu2 %v8216_v61  ;;  %v565_v61 = vld.sshfl [vmem:[#allocation1 + $0x20] sm:$0xff pattern:$0x73625140] }
  0xfb   : > { %5095 = vmatpush.bf16.msra.mxu3 %v8224_v62  ;;  %v567_v62 = vld.sshfl [vmem:[#allocation1 + $0x30] sm:$0xff pattern:$0x73625140] }
  0xfc   : > { %5057 = vmatpush.bf16.msra.mxu0 %v8199_v63  ;;  %v566_v63 = vld.sshfl [vmem:[#allocation1 + $0x28] sm:$0xff pattern:$0x73625140] }
  0xfd   : > { %5070 = vmatpush.bf16.msra.mxu1 %v8207_v0  ;;  %v568_v0 = vld.sshfl [vmem:[#allocation1 + $0x38] sm:$0xff pattern:$0x73625140] }
  0xfe   : > { %5083 = vmatpush.bf16.msra.mxu2 %v8215_v1  ;;  %v8285_v1 = vld [vmem:[%s9188_s9 + $0x6b8] sm:$0xff] }
  0xff   : > { %5096 = vmatpush.bf16.msra.mxu3 %v8223_v2  ;;  %v8293_v2 = vld [vmem:[%s9188_s9 + $0x6f8] sm:$0xff] }
 0x100   : > { %5058 = vmatpush.bf16.msra.mxu0 %v8198_v3  ;;  %v4852_v27 = vpop.f32.mrf.mxu0  ;;  %v703_v3 = vpack.c.bf16 %v565_v61, %v565_v61  ;;  %v8308_v61 = vld [vmem:[%s9188_s9 + $0x770] sm:$0xff] }
 0x101   : > { %5071 = vmatpush.bf16.msra.mxu1 %v8206_v4  ;;  %v4865_v30 = vpop.f32.mrf.mxu1  ;;  %v705_v4 = vpack.c.bf16 %v567_v62, %v567_v62  ;;  %v8316_v62 = vld [vmem:[%s9188_s9 + $0x7b0] sm:$0xff] }
 0x102   : > { %5084 = vmatpush.bf16.msra.mxu2 %v8214_v5  ;;  %v4866_v33 = vadd.f32 %v4865_v30, %v4852_v27  ;;  %v704_v5 = vpack.c.bf16 %v566_v63, %v566_v63  ;;  %v8324_v63 = vld [vmem:[%s9188_s9 + $0x7f0] sm:$0xff] }
 0x103   : > { %5097 = vmatpush.bf16.msra.mxu3 %v8222_v6  ;;  %5059 = vmatmul.bf16.vlgmr.msra.gmra.mxu0 %v699_v15  ;;  %v706_v6 = vpack.c.bf16 %v568_v0, %v568_v0  ;;  %v8299_v0 = vld [vmem:[%s9188_s9 + $0x728] sm:$0xff] }
 0x104   : > { %5103 = vmatpush.bf16.msrb.mxu0 %v8237_v7  ;;  %5072 = vmatmul.bf16.vlgmr.msra.gmra.mxu1 %v700_v17  ;;  %v8268_v7 = vld [vmem:[%s9188_s9 + $0x630] sm:$0xff]  ;;  %v8274_v17 = vld [vmem:[%s9188_s9 + $0x660] sm:$0xff] }
 0x105   : > { %5116 = vmatpush.bf16.msrb.mxu1 %v8245_v8  ;;  %5085 = vmatmul.bf16.vlgmr.msra.gmra.mxu2 %v701_v16  ;;  %v8276_v8 = vld [vmem:[%s9188_s9 + $0x670] sm:$0xff]  ;;  %v8266_v16 = vld [vmem:[%s9188_s9 + $0x620] sm:$0xff] }
 0x106   : > { %5129 = vmatpush.bf16.msrb.mxu2 %v8253_v13  ;;  %5098 = vmatmul.bf16.vlgmr.msra.gmra.mxu3 %v702_v18  ;;  %v8283_v13 = vld [vmem:[%s9188_s9 + $0x6a8] sm:$0xff] }
 0x107   : > { %5142 = vmatpush.bf16.msrb.mxu3 %v8261_v14  ;;  %v8291_v14 = vld [vmem:[%s9188_s9 + $0x6e8] sm:$0xff] }
 0x108   : > { %5104 = vmatpush.bf16.msrb.mxu0 %v8236_v19  ;;  %v4878_v38 = vpop.f32.mrf.mxu2  ;;  %v4854_v41 = vpop.f32.mrf.mxu0 }
 0x109   : > { %5117 = vmatpush.bf16.msrb.mxu1 %v8244_v20  ;;  %v4879_v39 = vadd.f32 %v4878_v38, %v4866_v33  ;;  %v4891_v40 = vpop.f32.mrf.mxu3  ;;  %v4867_v45 = vpop.f32.mrf.mxu1  ;;  %v8282_v20 = vld [vmem:[%s9188_s9 + $0x6a0] sm:$0xff]  ;;  %v8271_v38 = vld [vmem:[%s9188_s9 + $0x648] sm:$0xff] }
 0x10a   : > { %5130 = vmatpush.bf16.msrb.mxu2 %v8252_v21  ;;  %v8290_v21 = vld [vmem:[%s9188_s9 + $0x6e0] sm:$0xff]  ;;  %v8287_v41 = vld [vmem:[%s9188_s9 + $0x6c8] sm:$0xff] }
 0x10b   : > { %5143 = vmatpush.bf16.msrb.mxu3 %v8260_v22  ;;  %v9469_v44 = vadd.f32 %v4891_v40, %v4879_v39  ;;  %v513_v39 = vld [vmem:[%s9217_s13 + $0x38] sm:$0xff]  ;;  %v8270_v45 = vld [vmem:[%s9188_s9 + $0x640] sm:$0xff] }
 0x10c   : > { %5105 = vmatpush.bf16.msrb.mxu0 %v8235_v23  ;;  %v8265_v23 = vld [vmem:[%s9188_s9 + $0x618] sm:$0xff]  ;;  %v8279_v40 = vld [vmem:[%s9188_s9 + $0x688] sm:$0xff]  ;;  %570 = vst [vmem:[#allocation1 + $0x20] ss:$4 sm:$0xff] %v513_v39 }
 0x10d   : > { %5118 = vmatpush.bf16.msrb.mxu1 %v8243_v24  ;;  %v8273_v24 = vld [vmem:[%s9188_s9 + $0x658] sm:$0xff] }
 0x10e   : > { %5131 = vmatpush.bf16.msrb.mxu2 %v8251_v25  ;;  %v8281_v25 = vld [vmem:[%s9188_s9 + $0x698] sm:$0xff] }
 0x10f   : > { %5144 = vmatpush.bf16.msrb.mxu3 %v8259_v26  ;;  %v8289_v26 = vld [vmem:[%s9188_s9 + $0x6d8] sm:$0xff] }
 0x110   : > { %5106 = vmatpush.bf16.msrb.mxu0 %v8234_v28  ;;  %v4880_v53 = vpop.f32.mrf.mxu2 }
 0x111   : > { %5119 = vmatpush.bf16.msrb.mxu1 %v8242_v29  ;;  %v4893_v54 = vpop.f32.mrf.mxu3  ;;  %v574_v53 = vld.sshfl [vmem:[#allocation1 + $0x18] sm:$0xff pattern:$0x73625140] }
 0x112   : > { %5132 = vmatpush.bf16.msrb.mxu2 %v8250_v31  ;;  %v8264_v31 = vld [vmem:[%s9188_s9 + $0x610] sm:$0xff]  ;;  %v8317_v54 = vld [vmem:[%s9188_s9 + $0x7b8] sm:$0xff] }
 0x113   : > { %5145 = vmatpush.bf16.msrb.mxu3 %v8258_v32  ;;  %v8272_v32 = vld [vmem:[%s9188_s9 + $0x650] sm:$0xff] }
 0x114   : > { %5107 = vmatpush.bf16.msrb.mxu0 %v8233_v34  ;;  %v575_v39 = vld.sshfl [vmem:[#allocation1 + $0x20] sm:$0xff pattern:$0x73625140] }
 0x115   : > { %5120 = vmatpush.bf16.msrb.mxu1 %v8241_v35  ;;  %v8280_v35 = vld [vmem:[%s9188_s9 + $0x690] sm:$0xff] }
 0x116   : > { %5133 = vmatpush.bf16.msrb.mxu2 %v8249_v36  ;;  %v8288_v36 = vld [vmem:[%s9188_s9 + $0x6d0] sm:$0xff] }
 0x117   : > { %5146 = vmatpush.bf16.msrb.mxu3 %v8257_v37  ;;  %v8263_v37 = vld [vmem:[%s9188_s9 + $0x608] sm:$0xff] }
 0x118   : > { %5108 = vmatpush.bf16.msrb.mxu0 %v8232_v42 }
 0x119   : > { %5121 = vmatpush.bf16.msrb.mxu1 %v8240_v43 }
 0x11a   : > { %5134 = vmatpush.bf16.msrb.mxu2 %v8248_v46  ;;  %v8278_v46 = vld [vmem:[%s9188_s9 + $0x680] sm:$0xff] }
 0x11b   : > { %5147 = vmatpush.bf16.msrb.mxu3 %v8256_v47  ;;  %v8286_v47 = vld [vmem:[%s9188_s9 + $0x6c0] sm:$0xff] }
 0x11c   : > { %5109 = vmatpush.bf16.msrb.mxu0 %v8231_v48  ;;  %v8301_v48 = vld [vmem:[%s9188_s9 + $0x738] sm:$0xff] }
 0x11d   : > { %5122 = vmatpush.bf16.msrb.mxu1 %v8239_v49  ;;  %v8309_v49 = vld [vmem:[%s9188_s9 + $0x778] sm:$0xff] }
 0x11e   : > { %5135 = vmatpush.bf16.msrb.mxu2 %v8247_v51  ;;  %v573_v51 = vld.sshfl [vmem:[#allocation1 + $0x10] sm:$0xff pattern:$0x73625140] }
 0x11f   : > { %5148 = vmatpush.bf16.msrb.mxu3 %v8255_v52  ;;  %v572_v52 = vld.sshfl [vmem:[#allocation1 + $0x8] sm:$0xff pattern:$0x73625140] }
 0x120   : > { %5110 = vmatpush.bf16.msrb.mxu0 %v8230_v55  ;;  %v4904_v15 = vpop.f32.mrf.mxu0  ;;  %v8325_v55 = vld [vmem:[%s9188_s9 + $0x7f8] sm:$0xff] }
 0x121   : > { %5123 = vmatpush.bf16.msrb.mxu1 %v8238_v56  ;;  %v4905_v18 = vadd.f32 %v4904_v15, %v9469_v44  ;;  %v4917_v19 = vpop.f32.mrf.mxu1  ;;  %v8262_v44 = vld [vmem:[%s9188_s9 + $0x600] sm:$0xff]  ;;  %v707_v56 = vpack.c.bf16 %v571_v50, %v571_v50  ;;  %v8321_v15 = vld [vmem:[%s9188_s9 + $0x7d8] sm:$0xff]  ;;  %v8340_v50 = vld [vmem:[%s9188_s9 + $0x870] sm:$0xff] }
 0x122   : > { %5136 = vmatpush.bf16.msrb.mxu2 %v8246_v57  ;;  %v709_v57 = vpack.c.bf16 %v573_v51, %v573_v51  ;;  %v8348_v51 = vld [vmem:[%s9188_s9 + $0x8b0] sm:$0xff] }
 0x123   : > { %5149 = vmatpush.bf16.msrb.mxu3 %v8254_v58  ;;  %5111 = vmatmul.bf16.vlgmr.msrb.gmra.mxu0 %v703_v3  ;;  %v4918_v22 = vadd.f32 %v4917_v19, %v4905_v18  ;;  %v708_v58 = vpack.c.bf16 %v572_v52, %v572_v52  ;;  %v8323_v3 = vld [vmem:[%s9188_s9 + $0x7e8] sm:$0xff]  ;;  %v8356_v52 = vld [vmem:[%s9188_s9 + $0x8f0] sm:$0xff] }
 0x124   : > { %5155 = vmatpush.bf16.msra.mxu0 %v8269_v59  ;;  %5124 = vmatmul.bf16.vlgmr.msrb.gmra.mxu1 %v704_v5  ;;  %v710_v59 = vpack.c.bf16 %v574_v53, %v574_v53  ;;  %v8331_v53 = vld [vmem:[%s9188_s9 + $0x828] sm:$0xff] }
 0x125   : > { %5168 = vmatpush.bf16.msra.mxu1 %v8277_v60  ;;  %5137 = vmatmul.bf16.vlgmr.msrb.gmra.mxu2 %v705_v4  ;;  %v8300_v60 = vld [vmem:[%s9188_s9 + $0x730] sm:$0xff] }
 0x126   : > { %5181 = vmatpush.bf16.msra.mxu2 %v8285_v1  ;;  %5150 = vmatmul.bf16.vlgmr.msrb.gmra.mxu3 %v706_v6  ;;  %v8307_v1 = vld [vmem:[%s9188_s9 + $0x768] sm:$0xff]  ;;  %v8298_v6 = vld [vmem:[%s9188_s9 + $0x720] sm:$0xff] }
 0x127   : > { %5194 = vmatpush.bf16.msra.mxu3 %v8293_v2  ;;  %v8315_v2 = vld [vmem:[%s9188_s9 + $0x7a8] sm:$0xff] }
 0x128   : > { %5156 = vmatpush.bf16.msra.mxu0 %v8268_v7  ;;  %v4930_v27 = vpop.f32.mrf.mxu2  ;;  %v4906_v30 = vpop.f32.mrf.mxu0  ;;  %v8306_v7 = vld [vmem:[%s9188_s9 + $0x760] sm:$0xff] }
 0x129   : > { %5169 = vmatpush.bf16.msra.mxu1 %v8276_v8  ;;  %v4931_v28 = vadd.f32 %v4930_v27, %v4918_v22  ;;  %v4943_v29 = vpop.f32.mrf.mxu3  ;;  %v4919_v34 = vpop.f32.mrf.mxu1  ;;  %v8304_v22 = vld [vmem:[%s9188_s9 + $0x750] sm:$0xff]  ;;  %v8303_v27 = vld [vmem:[%s9188_s9 + $0x748] sm:$0xff] }
 0x12a   : > { %5182 = vmatpush.bf16.msra.mxu2 %v8284_v9  ;;  %v8314_v9 = vld [vmem:[%s9188_s9 + $0x7a0] sm:$0xff]  ;;  %v8319_v30 = vld [vmem:[%s9188_s9 + $0x7c8] sm:$0xff] }
 0x12b   : > { %5195 = vmatpush.bf16.msra.mxu3 %v8292_v10  ;;  %v9505_v33 = vadd.f32 %v4943_v29, %v4931_v28  ;;  %v8322_v10 = vld [vmem:[%s9188_s9 + $0x7e0] sm:$0xff]  ;;  %v514_v28 = vld [vmem:[%s9217_s13 + $0x40] sm:$0xff]  ;;  %v8311_v29 = vld [vmem:[%s9188_s9 + $0x788] sm:$0xff] }
 0x12c   : > { %5157 = vmatpush.bf16.msra.mxu0 %v8267_v11  ;;  %579 = vst [vmem:[#allocation1] ss:$4 sm:$0xff] %v514_v28  ;;  %v8302_v34 = vld [vmem:[%s9188_s9 + $0x740] sm:$0xff] }
 0x12d   : > { %5170 = vmatpush.bf16.msra.mxu1 %v8275_v12  ;;  %v8297_v12 = vld [vmem:[%s9188_s9 + $0x718] sm:$0xff] }
 0x12e   : > { %5183 = vmatpush.bf16.msra.mxu2 %v8283_v13  ;;  %v8305_v13 = vld [vmem:[%s9188_s9 + $0x758] sm:$0xff] }
 0x12f   : > { %5196 = vmatpush.bf16.msra.mxu3 %v8291_v14  ;;  %v8313_v14 = vld [vmem:[%s9188_s9 + $0x798] sm:$0xff] }
 0x130   : > { %5158 = vmatpush.bf16.msra.mxu0 %v8266_v16  ;;  %v4932_v42 = vpop.f32.mrf.mxu2 }
 0x131   : > { %5171 = vmatpush.bf16.msra.mxu1 %v8274_v17  ;;  %v4945_v43 = vpop.f32.mrf.mxu3  ;;  %v578_v42 = vld.sshfl [vmem:[#allocation1 + $0x38] sm:$0xff pattern:$0x73625140] }
 0x132   : > { %5184 = vmatpush.bf16.msra.mxu2 %v8282_v20  ;;  %v8349_v43 = vld [vmem:[%s9188_s9 + $0x8b8] sm:$0xff] }
 0x133   : > { %5197 = vmatpush.bf16.msra.mxu3 %v8290_v21  ;;  %v8296_v21 = vld [vmem:[%s9188_s9 + $0x710] sm:$0xff] }
 0x134   : > { %5159 = vmatpush.bf16.msra.mxu0 %v8265_v23  ;;  %v581_v28 = vld.sshfl [vmem:[#allocation1] sm:$0xff pattern:$0x73625140] }
 0x135   : > { %5172 = vmatpush.bf16.msra.mxu1 %v8273_v24  ;;  %v8312_v24 = vld [vmem:[%s9188_s9 + $0x790] sm:$0xff] }
 0x136   : > { %5185 = vmatpush.bf16.msra.mxu2 %v8281_v25  ;;  %v8320_v25 = vld [vmem:[%s9188_s9 + $0x7d0] sm:$0xff] }
 0x137   : > { %5198 = vmatpush.bf16.msra.mxu3 %v8289_v26  ;;  %v8295_v26 = vld [vmem:[%s9188_s9 + $0x708] sm:$0xff] }
 0x138   : > { %5160 = vmatpush.bf16.msra.mxu0 %v8264_v31 }
 0x139   : > { %5173 = vmatpush.bf16.msra.mxu1 %v8272_v32 }
 0x13a   : > { %5186 = vmatpush.bf16.msra.mxu2 %v8280_v35  ;;  %v8310_v35 = vld [vmem:[%s9188_s9 + $0x780] sm:$0xff] }
 0x13b   : > { %5199 = vmatpush.bf16.msra.mxu3 %v8288_v36  ;;  %v8318_v36 = vld [vmem:[%s9188_s9 + $0x7c0] sm:$0xff] }
 0x13c   : > { %5161 = vmatpush.bf16.msra.mxu0 %v8263_v37  ;;  %v8333_v37 = vld [vmem:[%s9188_s9 + $0x838] sm:$0xff] }
 0x13d   : > { %5174 = vmatpush.bf16.msra.mxu1 %v8271_v38  ;;  %v8341_v38 = vld [vmem:[%s9188_s9 + $0x878] sm:$0xff] }
 0x13e   : > { %5187 = vmatpush.bf16.msra.mxu2 %v8279_v40  ;;  %v577_v40 = vld.sshfl [vmem:[#allocation1 + $0x30] sm:$0xff pattern:$0x73625140] }
 0x13f   : > { %5200 = vmatpush.bf16.msra.mxu3 %v8287_v41  ;;  %v576_v41 = vld.sshfl [vmem:[#allocation1 + $0x28] sm:$0xff pattern:$0x73625140] }
 0x140   : > { %5162 = vmatpush.bf16.msra.mxu0 %v8262_v44  ;;  %v4956_v4 = vpop.f32.mrf.mxu0  ;;  %v8357_v44 = vld [vmem:[%s9188_s9 + $0x8f8] sm:$0xff] }
 0x141   : > { %5175 = vmatpush.bf16.msra.mxu1 %v8270_v45  ;;  %v4957_v5 = vadd.f32 %v4956_v4, %v9505_v33  ;;  %v4969_v8 = vpop.f32.mrf.mxu1  ;;  %v8294_v33 = vld [vmem:[%s9188_s9 + $0x700] sm:$0xff]  ;;  %v711_v45 = vpack.c.bf16 %v575_v39, %v575_v39  ;;  %v8353_v4 = vld [vmem:[%s9188_s9 + $0x8d8] sm:$0xff]  ;;  %v8372_v39 = vld [vmem:[%s9188_s9 + $0x970] sm:$0xff] }
 0x142   : > { %5188 = vmatpush.bf16.msra.mxu2 %v8278_v46  ;;  %v713_v46 = vpack.c.bf16 %v577_v40, %v577_v40  ;;  %v8380_v40 = vld [vmem:[%s9188_s9 + $0x9b0] sm:$0xff] }
 0x143   : > { %5201 = vmatpush.bf16.msra.mxu3 %v8286_v47  ;;  %5163 = vmatmul.bf16.vlgmr.msra.gmra.mxu0 %v707_v56  ;;  %v4970_v11 = vadd.f32 %v4969_v8, %v4957_v5  ;;  %v712_v47 = vpack.c.bf16 %v576_v41, %v576_v41  ;;  %v8355_v56 = vld [vmem:[%s9188_s9 + $0x8e8] sm:$0xff]  ;;  %v8388_v41 = vld [vmem:[%s9188_s9 + $0x9f0] sm:$0xff] }
 0x144   : > { %5207 = vmatpush.bf16.msrb.mxu0 %v8301_v48  ;;  %5176 = vmatmul.bf16.vlgmr.msra.gmra.mxu1 %v708_v58  ;;  %v714_v48 = vpack.c.bf16 %v578_v42, %v578_v42  ;;  %v8363_v42 = vld [vmem:[%s9188_s9 + $0x928] sm:$0xff] }
 0x145   : > { %5220 = vmatpush.bf16.msrb.mxu1 %v8309_v49  ;;  %5189 = vmatmul.bf16.vlgmr.msra.gmra.mxu2 %v709_v57  ;;  %v8332_v49 = vld [vmem:[%s9188_s9 + $0x830] sm:$0xff] }
 0x146   : > { %5233 = vmatpush.bf16.msrb.mxu2 %v8317_v54  ;;  %5202 = vmatmul.bf16.vlgmr.msra.gmra.mxu3 %v710_v59  ;;  %v8339_v54 = vld [vmem:[%s9188_s9 + $0x868] sm:$0xff]  ;;  %v8330_v59 = vld [vmem:[%s9188_s9 + $0x820] sm:$0xff] }
 0x147   : > { %5246 = vmatpush.bf16.msrb.mxu3 %v8325_v55  ;;  %v8347_v55 = vld [vmem:[%s9188_s9 + $0x8a8] sm:$0xff] }
 0x148   : > { %5208 = vmatpush.bf16.msrb.mxu0 %v8300_v60  ;;  %v4982_v16 = vpop.f32.mrf.mxu2  ;;  %v4958_v19 = vpop.f32.mrf.mxu0  ;;  %v8338_v60 = vld [vmem:[%s9188_s9 + $0x860] sm:$0xff] }
 0x149   : > { %5221 = vmatpush.bf16.msrb.mxu1 %v8308_v61  ;;  %v4983_v17 = vadd.f32 %v4982_v16, %v4970_v11  ;;  %v4995_v18 = vpop.f32.mrf.mxu3  ;;  %v4971_v23 = vpop.f32.mrf.mxu1  ;;  %v8336_v11 = vld [vmem:[%s9188_s9 + $0x850] sm:$0xff]  ;;  %v8335_v16 = vld [vmem:[%s9188_s9 + $0x848] sm:$0xff] }
 0x14a   : > { %5234 = vmatpush.bf16.msrb.mxu2 %v8316_v62  ;;  %v8346_v62 = vld [vmem:[%s9188_s9 + $0x8a0] sm:$0xff]  ;;  %v8351_v19 = vld [vmem:[%s9188_s9 + $0x8c8] sm:$0xff] }
 0x14b   : > { %5247 = vmatpush.bf16.msrb.mxu3 %v8324_v63  ;;  %v9539_v20 = vadd.f32 %v4995_v18, %v4983_v17  ;;  %v8354_v63 = vld [vmem:[%s9188_s9 + $0x8e0] sm:$0xff]  ;;  %v8343_v18 = vld [vmem:[%s9188_s9 + $0x888] sm:$0xff] }
 0x14c   : > { %5209 = vmatpush.bf16.msrb.mxu0 %v8299_v0  ;;  %v515_v17 = vld [vmem:[%s9217_s13 + $0x48] sm:$0xff] }
 0x14d   : > { %5222 = vmatpush.bf16.msrb.mxu1 %v8307_v1  ;;  %v8329_v1 = vld [vmem:[%s9188_s9 + $0x818] sm:$0xff]  ;;  %580 = vst [vmem:[#allocation1 + $0x20] ss:$4 sm:$0xff] %v515_v17  ;;  %v8334_v23 = vld [vmem:[%s9188_s9 + $0x840] sm:$0xff] }
 0x14e   : > { %5235 = vmatpush.bf16.msrb.mxu2 %v8315_v2  ;;  %v8337_v2 = vld [vmem:[%s9188_s9 + $0x858] sm:$0xff] }
 0x14f   : > { %5248 = vmatpush.bf16.msrb.mxu3 %v8323_v3  ;;  %v8345_v3 = vld [vmem:[%s9188_s9 + $0x898] sm:$0xff] }
 0x150   : > { %5210 = vmatpush.bf16.msrb.mxu0 %v8298_v6  ;;  %v4984_v31 = vpop.f32.mrf.mxu2 }
 0x151   : > { %5223 = vmatpush.bf16.msrb.mxu1 %v8306_v7  ;;  %v4997_v32 = vpop.f32.mrf.mxu3  ;;  %v584_v31 = vld.sshfl [vmem:[#allocation1 + $0x18] sm:$0xff pattern:$0x73625140] }
 0x152   : > { %5236 = vmatpush.bf16.msrb.mxu2 %v8314_v9  ;;  %v8381_v32 = vld [vmem:[%s9188_s9 + $0x9b8] sm:$0xff] }
 0x153   : > { %5249 = vmatpush.bf16.msrb.mxu3 %v8322_v10  ;;  %v8328_v10 = vld [vmem:[%s9188_s9 + $0x810] sm:$0xff] }
 0x154   : > { %5211 = vmatpush.bf16.msrb.mxu0 %v8297_v12  ;;  %v585_v17 = vld.sshfl [vmem:[#allocation1 + $0x20] sm:$0xff pattern:$0x73625140] }
 0x155   : > { %5224 = vmatpush.bf16.msrb.mxu1 %v8305_v13  ;;  %v8344_v13 = vld [vmem:[%s9188_s9 + $0x890] sm:$0xff] }
 0x156   : > { %5237 = vmatpush.bf16.msrb.mxu2 %v8313_v14  ;;  %v8352_v14 = vld [vmem:[%s9188_s9 + $0x8d0] sm:$0xff] }
 0x157   : > { %5250 = vmatpush.bf16.msrb.mxu3 %v8321_v15  ;;  %v8327_v15 = vld [vmem:[%s9188_s9 + $0x808] sm:$0xff] }
 0x158   : > { %5212 = vmatpush.bf16.msrb.mxu0 %v8296_v21 }
 0x159   : > { %5225 = vmatpush.bf16.msrb.mxu1 %v8304_v22  ;;  %v8326_v22 = vld [vmem:[%s9188_s9 + $0x800] sm:$0xff] }
 0x15a   : > { %5238 = vmatpush.bf16.msrb.mxu2 %v8312_v24  ;;  %v8342_v24 = vld [vmem:[%s9188_s9 + $0x880] sm:$0xff] }
 0x15b   : > { %5251 = vmatpush.bf16.msrb.mxu3 %v8320_v25  ;;  %v8350_v25 = vld [vmem:[%s9188_s9 + $0x8c0] sm:$0xff] }
 0x15c   : > { %5213 = vmatpush.bf16.msrb.mxu0 %v8295_v26  ;;  %v8365_v26 = vld [vmem:[%s9188_s9 + $0x938] sm:$0xff] }
 0x15d   : > { %5226 = vmatpush.bf16.msrb.mxu1 %v8303_v27  ;;  %v8373_v27 = vld [vmem:[%s9188_s9 + $0x978] sm:$0xff] }
 0x15e   : > { %5239 = vmatpush.bf16.msrb.mxu2 %v8311_v29  ;;  %v583_v29 = vld.sshfl [vmem:[#allocation1 + $0x10] sm:$0xff pattern:$0x73625140] }
 0x15f   : > { %5252 = vmatpush.bf16.msrb.mxu3 %v8319_v30  ;;  %v582_v30 = vld.sshfl [vmem:[#allocation1 + $0x8] sm:$0xff pattern:$0x73625140] }
 0x160   : > { %5214 = vmatpush.bf16.msrb.mxu0 %v8294_v33  ;;  %v5008_v57 = vpop.f32.mrf.mxu0  ;;  %v8389_v33 = vld [vmem:[%s9188_s9 + $0x9f8] sm:$0xff] }
 0x161   : > { %5227 = vmatpush.bf16.msrb.mxu1 %v8302_v34  ;;  %v5009_v58 = vadd.f32 %v5008_v57, %v9539_v20  ;;  %v5021_v61 = vpop.f32.mrf.mxu1  ;;  %v715_v34 = vpack.c.bf16 %v581_v28, %v581_v28  ;;  %v8385_v57 = vld [vmem:[%s9188_s9 + $0x9d8] sm:$0xff]  ;;  %v8404_v28 = vld [vmem:[%s9188_s9 + $0xa70] sm:$0xff] }
 0x162   : > { %5240 = vmatpush.bf16.msrb.mxu2 %v8310_v35  ;;  %v717_v35 = vpack.c.bf16 %v583_v29, %v583_v29  ;;  %v8412_v29 = vld [vmem:[%s9188_s9 + $0xab0] sm:$0xff] }
 0x163   : > { %5253 = vmatpush.bf16.msrb.mxu3 %v8318_v36  ;;  %5215 = vmatmul.bf16.vlgmr.msrb.gmra.mxu0 %v711_v45  ;;  %v5022_v0 = vadd.f32 %v5021_v61, %v5009_v58  ;;  %v716_v36 = vpack.c.bf16 %v582_v30, %v582_v30  ;;  %v8387_v45 = vld [vmem:[%s9188_s9 + $0x9e8] sm:$0xff]  ;;  %v8420_v30 = vld [vmem:[%s9188_s9 + $0xaf0] sm:$0xff] }
 0x164   : > { %5259 = vmatpush.bf16.msra.mxu0 %v8333_v37  ;;  %5228 = vmatmul.bf16.vlgmr.msrb.gmra.mxu1 %v712_v47  ;;  %v718_v37 = vpack.c.bf16 %v584_v31, %v584_v31  ;;  %v8395_v31 = vld [vmem:[%s9188_s9 + $0xa28] sm:$0xff] }
 0x165   : > { %5272 = vmatpush.bf16.msra.mxu1 %v8341_v38  ;;  %5241 = vmatmul.bf16.vlgmr.msrb.gmra.mxu2 %v713_v46  ;;  %v8364_v38 = vld [vmem:[%s9188_s9 + $0x930] sm:$0xff] }
 0x166   : > { %5285 = vmatpush.bf16.msra.mxu2 %v8349_v43  ;;  %5254 = vmatmul.bf16.vlgmr.msrb.gmra.mxu3 %v714_v48  ;;  %v8371_v43 = vld [vmem:[%s9188_s9 + $0x968] sm:$0xff]  ;;  %v8362_v48 = vld [vmem:[%s9188_s9 + $0x920] sm:$0xff] }
 0x167   : > { %5298 = vmatpush.bf16.msra.mxu3 %v8357_v44  ;;  %v8379_v44 = vld [vmem:[%s9188_s9 + $0x9a8] sm:$0xff] }
 0x168   : > { %5260 = vmatpush.bf16.msra.mxu0 %v8332_v49  ;;  %v5034_v5 = vpop.f32.mrf.mxu2  ;;  %v5010_v8 = vpop.f32.mrf.mxu0  ;;  %v8370_v49 = vld [vmem:[%s9188_s9 + $0x960] sm:$0xff] }
 0x169   : > { %5273 = vmatpush.bf16.msra.mxu1 %v8340_v50  ;;  %v5035_v6 = vadd.f32 %v5034_v5, %v5022_v0  ;;  %v5047_v7 = vpop.f32.mrf.mxu3  ;;  %v5023_v12 = vpop.f32.mrf.mxu1  ;;  %v8368_v0 = vld [vmem:[%s9188_s9 + $0x950] sm:$0xff]  ;;  %v8367_v5 = vld [vmem:[%s9188_s9 + $0x948] sm:$0xff] }
 0x16a   : > { %5286 = vmatpush.bf16.msra.mxu2 %v8348_v51  ;;  %v8378_v51 = vld [vmem:[%s9188_s9 + $0x9a0] sm:$0xff]  ;;  %v8383_v8 = vld [vmem:[%s9188_s9 + $0x9c8] sm:$0xff] }
 0x16b   : > { %5299 = vmatpush.bf16.msra.mxu3 %v8356_v52  ;;  %v9575_v9 = vadd.f32 %v5047_v7, %v5035_v6  ;;  %v8386_v52 = vld [vmem:[%s9188_s9 + $0x9e0] sm:$0xff]  ;;  %v8375_v7 = vld [vmem:[%s9188_s9 + $0x988] sm:$0xff] }
 0x16c   : > { %5261 = vmatpush.bf16.msra.mxu0 %v8331_v53  ;;  %v516_v6 = vld [vmem:[%s9217_s13 + $0x50] sm:$0xff] }
 0x16d   : > { %5274 = vmatpush.bf16.msra.mxu1 %v8339_v54  ;;  %v8361_v54 = vld [vmem:[%s9188_s9 + $0x918] sm:$0xff]  ;;  %589 = vst [vmem:[#allocation1] ss:$4 sm:$0xff] %v516_v6  ;;  %v8366_v12 = vld [vmem:[%s9188_s9 + $0x940] sm:$0xff] }
 0x16e   : > { %5287 = vmatpush.bf16.msra.mxu2 %v8347_v55  ;;  %v8369_v55 = vld [vmem:[%s9188_s9 + $0x958] sm:$0xff] }
 0x16f   : > { %5300 = vmatpush.bf16.msra.mxu3 %v8355_v56  ;;  %v8377_v56 = vld [vmem:[%s9188_s9 + $0x998] sm:$0xff] }
 0x170   : > { %5262 = vmatpush.bf16.msra.mxu0 %v8330_v59  ;;  %v5036_v20 = vpop.f32.mrf.mxu2 }
 0x171   : > { %5275 = vmatpush.bf16.msra.mxu1 %v8338_v60  ;;  %v5049_v21 = vpop.f32.mrf.mxu3  ;;  %v588_v20 = vld.sshfl [vmem:[#allocation1 + $0x38] sm:$0xff pattern:$0x73625140] }
 0x172   : > { %5288 = vmatpush.bf16.msra.mxu2 %v8346_v62  ;;  %v8413_v21 = vld [vmem:[%s9188_s9 + $0xab8] sm:$0xff] }
 0x173   : > { %5301 = vmatpush.bf16.msra.mxu3 %v8354_v63  ;;  %v8360_v63 = vld [vmem:[%s9188_s9 + $0x910] sm:$0xff] }
 0x174   : > { %5263 = vmatpush.bf16.msra.mxu0 %v8329_v1  ;;  %v591_v6 = vld.sshfl [vmem:[#allocation1] sm:$0xff pattern:$0x73625140] }
 0x175   : > { %5276 = vmatpush.bf16.msra.mxu1 %v8337_v2  ;;  %v8376_v2 = vld [vmem:[%s9188_s9 + $0x990] sm:$0xff] }
 0x176   : > { %5289 = vmatpush.bf16.msra.mxu2 %v8345_v3  ;;  %v8384_v3 = vld [vmem:[%s9188_s9 + $0x9d0] sm:$0xff] }
 0x177   : > { %5302 = vmatpush.bf16.msra.mxu3 %v8353_v4  ;;  %v8359_v4 = vld [vmem:[%s9188_s9 + $0x908] sm:$0xff] }
 0x178   : > { %5264 = vmatpush.bf16.msra.mxu0 %v8328_v10 }
 0x179   : > { %5277 = vmatpush.bf16.msra.mxu1 %v8336_v11  ;;  %v8358_v11 = vld [vmem:[%s9188_s9 + $0x900] sm:$0xff] }
 0x17a   : > { %5290 = vmatpush.bf16.msra.mxu2 %v8344_v13  ;;  %v8374_v13 = vld [vmem:[%s9188_s9 + $0x980] sm:$0xff] }
 0x17b   : > { %5303 = vmatpush.bf16.msra.mxu3 %v8352_v14  ;;  %v8382_v14 = vld [vmem:[%s9188_s9 + $0x9c0] sm:$0xff] }
 0x17c   : > { %5265 = vmatpush.bf16.msra.mxu0 %v8327_v15  ;;  %v8397_v15 = vld [vmem:[%s9188_s9 + $0xa38] sm:$0xff] }
 0x17d   : > { %5278 = vmatpush.bf16.msra.mxu1 %v8335_v16  ;;  %v8405_v16 = vld [vmem:[%s9188_s9 + $0xa78] sm:$0xff] }
 0x17e   : > { %5291 = vmatpush.bf16.msra.mxu2 %v8343_v18  ;;  %v587_v18 = vld.sshfl [vmem:[#allocation1 + $0x30] sm:$0xff pattern:$0x73625140] }
 0x17f   : > { %5304 = vmatpush.bf16.msra.mxu3 %v8351_v19  ;;  %v586_v19 = vld.sshfl [vmem:[#allocation1 + $0x28] sm:$0xff pattern:$0x73625140] }
 0x180   : > { %5266 = vmatpush.bf16.msra.mxu0 %v8326_v22  ;;  %v5060_v46 = vpop.f32.mrf.mxu0  ;;  %v8421_v22 = vld [vmem:[%s9188_s9 + $0xaf8] sm:$0xff] }
 0x181   : > { %5279 = vmatpush.bf16.msra.mxu1 %v8334_v23  ;;  %v5061_v47 = vadd.f32 %v5060_v46, %v9575_v9  ;;  %v5073_v50 = vpop.f32.mrf.mxu1  ;;  %v719_v23 = vpack.c.bf16 %v585_v17, %v585_v17  ;;  %v8417_v46 = vld [vmem:[%s9188_s9 + $0xad8] sm:$0xff]  ;;  %v8436_v17 = vld [vmem:[%s9188_s9 + $0xb70] sm:$0xff] }
 0x182   : > { %5292 = vmatpush.bf16.msra.mxu2 %v8342_v24  ;;  %v721_v24 = vpack.c.bf16 %v587_v18, %v587_v18  ;;  %v8444_v18 = vld [vmem:[%s9188_s9 + $0xbb0] sm:$0xff] }
 0x183   : > { %5305 = vmatpush.bf16.msra.mxu3 %v8350_v25  ;;  %5267 = vmatmul.bf16.vlgmr.msra.gmra.mxu0 %v715_v34  ;;  %v5074_v53 = vadd.f32 %v5073_v50, %v5061_v47  ;;  %v720_v25 = vpack.c.bf16 %v586_v19, %v586_v19  ;;  %v8419_v34 = vld [vmem:[%s9188_s9 + $0xae8] sm:$0xff]  ;;  %v8452_v19 = vld [vmem:[%s9188_s9 + $0xbf0] sm:$0xff] }
 0x184   : > { %5311 = vmatpush.bf16.msrb.mxu0 %v8365_v26  ;;  %5280 = vmatmul.bf16.vlgmr.msra.gmra.mxu1 %v716_v36  ;;  %v722_v26 = vpack.c.bf16 %v588_v20, %v588_v20  ;;  %v8427_v20 = vld [vmem:[%s9188_s9 + $0xb28] sm:$0xff] }
 0x185   : > { %5324 = vmatpush.bf16.msrb.mxu1 %v8373_v27  ;;  %5293 = vmatmul.bf16.vlgmr.msra.gmra.mxu2 %v717_v35  ;;  %v8396_v27 = vld [vmem:[%s9188_s9 + $0xa30] sm:$0xff] }
 0x186   : > { %5337 = vmatpush.bf16.msrb.mxu2 %v8381_v32  ;;  %5306 = vmatmul.bf16.vlgmr.msra.gmra.mxu3 %v718_v37  ;;  %v8403_v32 = vld [vmem:[%s9188_s9 + $0xa68] sm:$0xff]  ;;  %v8394_v37 = vld [vmem:[%s9188_s9 + $0xa20] sm:$0xff] }
 0x187   : > { %5350 = vmatpush.bf16.msrb.mxu3 %v8389_v33  ;;  %v8411_v33 = vld [vmem:[%s9188_s9 + $0xaa8] sm:$0xff] }
 0x188   : > { %5312 = vmatpush.bf16.msrb.mxu0 %v8364_v38  ;;  %v5086_v58 = vpop.f32.mrf.mxu2  ;;  %v5062_v61 = vpop.f32.mrf.mxu0  ;;  %v8402_v38 = vld [vmem:[%s9188_s9 + $0xa60] sm:$0xff] }
 0x189   : > { %5325 = vmatpush.bf16.msrb.mxu1 %v8372_v39  ;;  %v5087_v59 = vadd.f32 %v5086_v58, %v5074_v53  ;;  %v5099_v60 = vpop.f32.mrf.mxu3  ;;  %v5075_v1 = vpop.f32.mrf.mxu1  ;;  %v8400_v53 = vld [vmem:[%s9188_s9 + $0xa50] sm:$0xff]  ;;  %v8399_v58 = vld [vmem:[%s9188_s9 + $0xa48] sm:$0xff] }
 0x18a   : > { %5338 = vmatpush.bf16.msrb.mxu2 %v8380_v40  ;;  %v8410_v40 = vld [vmem:[%s9188_s9 + $0xaa0] sm:$0xff]  ;;  %v8415_v61 = vld [vmem:[%s9188_s9 + $0xac8] sm:$0xff] }
 0x18b   : > { %5351 = vmatpush.bf16.msrb.mxu3 %v8388_v41  ;;  %v9611_v62 = vadd.f32 %v5099_v60, %v5087_v59  ;;  %v8418_v41 = vld [vmem:[%s9188_s9 + $0xae0] sm:$0xff]  ;;  %v517_v59 = vld [vmem:[%s9217_s13 + $0x58] sm:$0xff] }
 0x18c   : > { %5313 = vmatpush.bf16.msrb.mxu0 %v8363_v42  ;;  %v8407_v60 = vld [vmem:[%s9188_s9 + $0xa88] sm:$0xff]  ;;  %590 = vst [vmem:[#allocation1 + $0x20] ss:$4 sm:$0xff] %v517_v59  ;;  %v8398_v1 = vld [vmem:[%s9188_s9 + $0xa40] sm:$0xff] }
 0x18d   : > { %5326 = vmatpush.bf16.msrb.mxu1 %v8371_v43  ;;  %v8393_v43 = vld [vmem:[%s9188_s9 + $0xa18] sm:$0xff] }
 0x18e   : > { %5339 = vmatpush.bf16.msrb.mxu2 %v8379_v44  ;;  %v8401_v44 = vld [vmem:[%s9188_s9 + $0xa58] sm:$0xff] }
 0x18f   : > { %5352 = vmatpush.bf16.msrb.mxu3 %v8387_v45  ;;  %v8409_v45 = vld [vmem:[%s9188_s9 + $0xa98] sm:$0xff] }
 0x190   : > { %5314 = vmatpush.bf16.msrb.mxu0 %v8362_v48  ;;  %v5088_v9 = vpop.f32.mrf.mxu2 }
 0x191   : > { %5327 = vmatpush.bf16.msrb.mxu1 %v8370_v49  ;;  %v5101_v10 = vpop.f32.mrf.mxu3  ;;  %v594_v9 = vld.sshfl [vmem:[#allocation1 + $0x18] sm:$0xff pattern:$0x73625140] }
 0x192   : > { %5340 = vmatpush.bf16.msrb.mxu2 %v8378_v51  ;;  %v8445_v10 = vld [vmem:[%s9188_s9 + $0xbb8] sm:$0xff] }
 0x193   : > { %5353 = vmatpush.bf16.msrb.mxu3 %v8386_v52  ;;  %v8392_v52 = vld [vmem:[%s9188_s9 + $0xa10] sm:$0xff] }
 0x194   : > { %5315 = vmatpush.bf16.msrb.mxu0 %v8361_v54  ;;  %v595_v59 = vld.sshfl [vmem:[#allocation1 + $0x20] sm:$0xff pattern:$0x73625140] }
 0x195   : > { %5328 = vmatpush.bf16.msrb.mxu1 %v8369_v55  ;;  %v8408_v55 = vld [vmem:[%s9188_s9 + $0xa90] sm:$0xff] }
 0x196   : > { %5341 = vmatpush.bf16.msrb.mxu2 %v8377_v56  ;;  %v8416_v56 = vld [vmem:[%s9188_s9 + $0xad0] sm:$0xff] }
 0x197   : > { %5354 = vmatpush.bf16.msrb.mxu3 %v8385_v57  ;;  %v8391_v57 = vld [vmem:[%s9188_s9 + $0xa08] sm:$0xff] }
 0x198   : > { %5316 = vmatpush.bf16.msrb.mxu0 %v8360_v63 }
 0x199   : > { %5329 = vmatpush.bf16.msrb.mxu1 %v8368_v0  ;;  %v8390_v0 = vld [vmem:[%s9188_s9 + $0xa00] sm:$0xff] }
 0x19a   : > { %5342 = vmatpush.bf16.msrb.mxu2 %v8376_v2  ;;  %v8406_v2 = vld [vmem:[%s9188_s9 + $0xa80] sm:$0xff] }
 0x19b   : > { %5355 = vmatpush.bf16.msrb.mxu3 %v8384_v3  ;;  %v8414_v3 = vld [vmem:[%s9188_s9 + $0xac0] sm:$0xff] }
 0x19c   : > { %5317 = vmatpush.bf16.msrb.mxu0 %v8359_v4  ;;  %v8429_v4 = vld [vmem:[%s9188_s9 + $0xb38] sm:$0xff] }
 0x19d   : > { %5330 = vmatpush.bf16.msrb.mxu1 %v8367_v5  ;;  %v8437_v5 = vld [vmem:[%s9188_s9 + $0xb78] sm:$0xff] }
 0x19e   : > { %5343 = vmatpush.bf16.msrb.mxu2 %v8375_v7  ;;  %v593_v7 = vld.sshfl [vmem:[#allocation1 + $0x10] sm:$0xff pattern:$0x73625140] }
 0x19f   : > { %5356 = vmatpush.bf16.msrb.mxu3 %v8383_v8  ;;  %v592_v8 = vld.sshfl [vmem:[#allocation1 + $0x8] sm:$0xff pattern:$0x73625140] }
 0x1a0   : > { %5318 = vmatpush.bf16.msrb.mxu0 %v8358_v11  ;;  %v5112_v35 = vpop.f32.mrf.mxu0  ;;  %v8453_v11 = vld [vmem:[%s9188_s9 + $0xbf8] sm:$0xff] }
 0x1a1   : > { %5331 = vmatpush.bf16.msrb.mxu1 %v8366_v12  ;;  %v5113_v36 = vadd.f32 %v5112_v35, %v9611_v62  ;;  %v5125_v39 = vpop.f32.mrf.mxu1  ;;  %v723_v12 = vpack.c.bf16 %v591_v6, %v591_v6  ;;  %v8449_v35 = vld [vmem:[%s9188_s9 + $0xbd8] sm:$0xff]  ;;  %v8468_v6 = vld [vmem:[%s9188_s9 + $0xc70] sm:$0xff] }
 0x1a2   : > { %5344 = vmatpush.bf16.msrb.mxu2 %v8374_v13  ;;  %v725_v13 = vpack.c.bf16 %v593_v7, %v593_v7  ;;  %v8476_v7 = vld [vmem:[%s9188_s9 + $0xcb0] sm:$0xff] }
 0x1a3   : > { %5357 = vmatpush.bf16.msrb.mxu3 %v8382_v14  ;;  %5319 = vmatmul.bf16.vlgmr.msrb.gmra.mxu0 %v719_v23  ;;  %v5126_v42 = vadd.f32 %v5125_v39, %v5113_v36  ;;  %v724_v14 = vpack.c.bf16 %v592_v8, %v592_v8  ;;  %v8451_v23 = vld [vmem:[%s9188_s9 + $0xbe8] sm:$0xff]  ;;  %v8484_v8 = vld [vmem:[%s9188_s9 + $0xcf0] sm:$0xff] }
 0x1a4   : > { %5363 = vmatpush.bf16.msra.mxu0 %v8397_v15  ;;  %5332 = vmatmul.bf16.vlgmr.msrb.gmra.mxu1 %v720_v25  ;;  %v726_v15 = vpack.c.bf16 %v594_v9, %v594_v9  ;;  %v8459_v9 = vld [vmem:[%s9188_s9 + $0xc28] sm:$0xff] }
 0x1a5   : > { %5376 = vmatpush.bf16.msra.mxu1 %v8405_v16  ;;  %5345 = vmatmul.bf16.vlgmr.msrb.gmra.mxu2 %v721_v24  ;;  %v8428_v16 = vld [vmem:[%s9188_s9 + $0xb30] sm:$0xff] }
 0x1a6   : > { %5389 = vmatpush.bf16.msra.mxu2 %v8413_v21  ;;  %5358 = vmatmul.bf16.vlgmr.msrb.gmra.mxu3 %v722_v26  ;;  %v8435_v21 = vld [vmem:[%s9188_s9 + $0xb68] sm:$0xff]  ;;  %v8426_v26 = vld [vmem:[%s9188_s9 + $0xb20] sm:$0xff] }
 0x1a7   : > { %5402 = vmatpush.bf16.msra.mxu3 %v8421_v22  ;;  %v8443_v22 = vld [vmem:[%s9188_s9 + $0xba8] sm:$0xff] }
 0x1a8   : > { %5364 = vmatpush.bf16.msra.mxu0 %v8396_v27  ;;  %v5138_v47 = vpop.f32.mrf.mxu2  ;;  %v5114_v50 = vpop.f32.mrf.mxu0  ;;  %v8434_v27 = vld [vmem:[%s9188_s9 + $0xb60] sm:$0xff] }
 0x1a9   : > { %5377 = vmatpush.bf16.msra.mxu1 %v8404_v28  ;;  %v5139_v48 = vadd.f32 %v5138_v47, %v5126_v42  ;;  %v5151_v49 = vpop.f32.mrf.mxu3  ;;  %v5127_v54 = vpop.f32.mrf.mxu1  ;;  %v8432_v42 = vld [vmem:[%s9188_s9 + $0xb50] sm:$0xff]  ;;  %v8431_v47 = vld [vmem:[%s9188_s9 + $0xb48] sm:$0xff] }
 0x1aa   : > { %5390 = vmatpush.bf16.msra.mxu2 %v8412_v29  ;;  %v8442_v29 = vld [vmem:[%s9188_s9 + $0xba0] sm:$0xff]  ;;  %v8447_v50 = vld [vmem:[%s9188_s9 + $0xbc8] sm:$0xff] }
 0x1ab   : > { %5403 = vmatpush.bf16.msra.mxu3 %v8420_v30  ;;  %v9647_v51 = vadd.f32 %v5151_v49, %v5139_v48  ;;  %v8450_v30 = vld [vmem:[%s9188_s9 + $0xbe0] sm:$0xff]  ;;  %v518_v48 = vld [vmem:[%s9217_s13 + $0x60] sm:$0xff]  ;;  %v8439_v49 = vld [vmem:[%s9188_s9 + $0xb88] sm:$0xff] }
 0x1ac   : > { %5365 = vmatpush.bf16.msra.mxu0 %v8395_v31  ;;  %599 = vst [vmem:[#allocation1] ss:$4 sm:$0xff] %v518_v48  ;;  %v8430_v54 = vld [vmem:[%s9188_s9 + $0xb40] sm:$0xff] }
 0x1ad   : > { %5378 = vmatpush.bf16.msra.mxu1 %v8403_v32  ;;  %v8425_v32 = vld [vmem:[%s9188_s9 + $0xb18] sm:$0xff] }
 0x1ae   : > { %5391 = vmatpush.bf16.msra.mxu2 %v8411_v33  ;;  %v8433_v33 = vld [vmem:[%s9188_s9 + $0xb58] sm:$0xff] }
 0x1af   : > { %5404 = vmatpush.bf16.msra.mxu3 %v8419_v34  ;;  %v8441_v34 = vld [vmem:[%s9188_s9 + $0xb98] sm:$0xff] }
 0x1b0   : > { %5366 = vmatpush.bf16.msra.mxu0 %v8394_v37  ;;  %v5140_v62 = vpop.f32.mrf.mxu2 }
 0x1b1   : > { %5379 = vmatpush.bf16.msra.mxu1 %v8402_v38  ;;  %v5153_v63 = vpop.f32.mrf.mxu3  ;;  %v598_v62 = vld.sshfl [vmem:[#allocation1 + $0x38] sm:$0xff pattern:$0x73625140] }
 0x1b2   : > { %5392 = vmatpush.bf16.msra.mxu2 %v8410_v40  ;;  %v8477_v63 = vld [vmem:[%s9188_s9 + $0xcb8] sm:$0xff] }
 0x1b3   : > { %5405 = vmatpush.bf16.msra.mxu3 %v8418_v41  ;;  %v8424_v41 = vld [vmem:[%s9188_s9 + $0xb10] sm:$0xff] }
 0x1b4   : > { %5367 = vmatpush.bf16.msra.mxu0 %v8393_v43  ;;  %v601_v48 = vld.sshfl [vmem:[#allocation1] sm:$0xff pattern:$0x73625140] }
 0x1b5   : > { %5380 = vmatpush.bf16.msra.mxu1 %v8401_v44  ;;  %v8440_v44 = vld [vmem:[%s9188_s9 + $0xb90] sm:$0xff] }
 0x1b6   : > { %5393 = vmatpush.bf16.msra.mxu2 %v8409_v45  ;;  %v8448_v45 = vld [vmem:[%s9188_s9 + $0xbd0] sm:$0xff] }
 0x1b7   : > { %5406 = vmatpush.bf16.msra.mxu3 %v8417_v46  ;;  %v8423_v46 = vld [vmem:[%s9188_s9 + $0xb08] sm:$0xff] }
 0x1b8   : > { %5368 = vmatpush.bf16.msra.mxu0 %v8392_v52 }
 0x1b9   : > { %5381 = vmatpush.bf16.msra.mxu1 %v8400_v53  ;;  %v8422_v53 = vld [vmem:[%s9188_s9 + $0xb00] sm:$0xff] }
 0x1ba   : > { %5394 = vmatpush.bf16.msra.mxu2 %v8408_v55  ;;  %v8438_v55 = vld [vmem:[%s9188_s9 + $0xb80] sm:$0xff] }
 0x1bb   : > { %5407 = vmatpush.bf16.msra.mxu3 %v8416_v56  ;;  %v8446_v56 = vld [vmem:[%s9188_s9 + $0xbc0] sm:$0xff] }
 0x1bc   : > { %5369 = vmatpush.bf16.msra.mxu0 %v8391_v57  ;;  %v8461_v57 = vld [vmem:[%s9188_s9 + $0xc38] sm:$0xff] }
 0x1bd   : > { %5382 = vmatpush.bf16.msra.mxu1 %v8399_v58  ;;  %v8469_v58 = vld [vmem:[%s9188_s9 + $0xc78] sm:$0xff] }
 0x1be   : > { %5395 = vmatpush.bf16.msra.mxu2 %v8407_v60  ;;  %v597_v60 = vld.sshfl [vmem:[#allocation1 + $0x30] sm:$0xff pattern:$0x73625140] }
 0x1bf   : > { %5408 = vmatpush.bf16.msra.mxu3 %v8415_v61  ;;  %v596_v61 = vld.sshfl [vmem:[#allocation1 + $0x28] sm:$0xff pattern:$0x73625140] }
 0x1c0   : > { %5370 = vmatpush.bf16.msra.mxu0 %v8390_v0  ;;  %v5164_v24 = vpop.f32.mrf.mxu0  ;;  %v8485_v0 = vld [vmem:[%s9188_s9 + $0xcf8] sm:$0xff] }
 0x1c1   : > { %5383 = vmatpush.bf16.msra.mxu1 %v8398_v1  ;;  %v5165_v25 = vadd.f32 %v5164_v24, %v9647_v51  ;;  %v5177_v28 = vpop.f32.mrf.mxu1  ;;  %v727_v1 = vpack.c.bf16 %v595_v59, %v595_v59  ;;  %v8481_v24 = vld [vmem:[%s9188_s9 + $0xcd8] sm:$0xff]  ;;  %v8500_v59 = vld [vmem:[%s9188_s9 + $0xd70] sm:$0xff] }
 0x1c2   : > { %5396 = vmatpush.bf16.msra.mxu2 %v8406_v2  ;;  %v729_v2 = vpack.c.bf16 %v597_v60, %v597_v60  ;;  %v8508_v60 = vld [vmem:[%s9188_s9 + $0xdb0] sm:$0xff] }
 0x1c3   : > { %5409 = vmatpush.bf16.msra.mxu3 %v8414_v3  ;;  %5371 = vmatmul.bf16.vlgmr.msra.gmra.mxu0 %v723_v12  ;;  %v5178_v31 = vadd.f32 %v5177_v28, %v5165_v25  ;;  %v728_v3 = vpack.c.bf16 %v596_v61, %v596_v61  ;;  %v8483_v12 = vld [vmem:[%s9188_s9 + $0xce8] sm:$0xff]  ;;  %v8516_v61 = vld [vmem:[%s9188_s9 + $0xdf0] sm:$0xff] }
 0x1c4   : > { %5415 = vmatpush.bf16.msrb.mxu0 %v8429_v4  ;;  %5384 = vmatmul.bf16.vlgmr.msra.gmra.mxu1 %v724_v14  ;;  %v730_v4 = vpack.c.bf16 %v598_v62, %v598_v62  ;;  %v8491_v62 = vld [vmem:[%s9188_s9 + $0xd28] sm:$0xff] }
 0x1c5   : > { %5428 = vmatpush.bf16.msrb.mxu1 %v8437_v5  ;;  %5397 = vmatmul.bf16.vlgmr.msra.gmra.mxu2 %v725_v13  ;;  %v8460_v5 = vld [vmem:[%s9188_s9 + $0xc30] sm:$0xff] }
 0x1c6   : > { %5441 = vmatpush.bf16.msrb.mxu2 %v8445_v10  ;;  %5410 = vmatmul.bf16.vlgmr.msra.gmra.mxu3 %v726_v15  ;;  %v8467_v10 = vld [vmem:[%s9188_s9 + $0xc68] sm:$0xff]  ;;  %v8458_v15 = vld [vmem:[%s9188_s9 + $0xc20] sm:$0xff] }
 0x1c7   : > { %5454 = vmatpush.bf16.msrb.mxu3 %v8453_v11  ;;  %v8475_v11 = vld [vmem:[%s9188_s9 + $0xca8] sm:$0xff] }
 0x1c8   : > { %5416 = vmatpush.bf16.msrb.mxu0 %v8428_v16  ;;  %v5190_v36 = vpop.f32.mrf.mxu2  ;;  %v5166_v39 = vpop.f32.mrf.mxu0  ;;  %v8466_v16 = vld [vmem:[%s9188_s9 + $0xc60] sm:$0xff] }
 0x1c9   : > { %5429 = vmatpush.bf16.msrb.mxu1 %v8436_v17  ;;  %v5191_v37 = vadd.f32 %v5190_v36, %v5178_v31  ;;  %v5203_v38 = vpop.f32.mrf.mxu3  ;;  %v5179_v43 = vpop.f32.mrf.mxu1  ;;  %v8464_v31 = vld [vmem:[%s9188_s9 + $0xc50] sm:$0xff]  ;;  %v8463_v36 = vld [vmem:[%s9188_s9 + $0xc48] sm:$0xff] }
 0x1ca   : > { %5442 = vmatpush.bf16.msrb.mxu2 %v8444_v18  ;;  %v8474_v18 = vld [vmem:[%s9188_s9 + $0xca0] sm:$0xff]  ;;  %v8479_v39 = vld [vmem:[%s9188_s9 + $0xcc8] sm:$0xff] }
 0x1cb   : > { %5455 = vmatpush.bf16.msrb.mxu3 %v8452_v19  ;;  %v9683_v40 = vadd.f32 %v5203_v38, %v5191_v37  ;;  %v8482_v19 = vld [vmem:[%s9188_s9 + $0xce0] sm:$0xff]  ;;  %v8471_v38 = vld [vmem:[%s9188_s9 + $0xc88] sm:$0xff] }
 0x1cc   : > { %5417 = vmatpush.bf16.msrb.mxu0 %v8427_v20  ;;  %v519_v37 = vld [vmem:[%s9217_s13 + $0x68] sm:$0xff] }
 0x1cd   : > { %5430 = vmatpush.bf16.msrb.mxu1 %v8435_v21  ;;  %v8457_v21 = vld [vmem:[%s9188_s9 + $0xc18] sm:$0xff]  ;;  %600 = vst [vmem:[#allocation1 + $0x20] ss:$4 sm:$0xff] %v519_v37  ;;  %v8462_v43 = vld [vmem:[%s9188_s9 + $0xc40] sm:$0xff] }
 0x1ce   : > { %5443 = vmatpush.bf16.msrb.mxu2 %v8443_v22  ;;  %v8465_v22 = vld [vmem:[%s9188_s9 + $0xc58] sm:$0xff] }
 0x1cf   : > { %5456 = vmatpush.bf16.msrb.mxu3 %v8451_v23  ;;  %v8473_v23 = vld [vmem:[%s9188_s9 + $0xc98] sm:$0xff] }
 0x1d0   : > { %5418 = vmatpush.bf16.msrb.mxu0 %v8426_v26  ;;  %v5192_v51 = vpop.f32.mrf.mxu2 }
 0x1d1   : > { %5431 = vmatpush.bf16.msrb.mxu1 %v8434_v27  ;;  %v5205_v52 = vpop.f32.mrf.mxu3  ;;  %v604_v51 = vld.sshfl [vmem:[#allocation1 + $0x18] sm:$0xff pattern:$0x73625140] }
 0x1d2   : > { %5444 = vmatpush.bf16.msrb.mxu2 %v8442_v29  ;;  %v8509_v52 = vld [vmem:[%s9188_s9 + $0xdb8] sm:$0xff] }
 0x1d3   : > { %5457 = vmatpush.bf16.msrb.mxu3 %v8450_v30  ;;  %v8456_v30 = vld [vmem:[%s9188_s9 + $0xc10] sm:$0xff] }
 0x1d4   : > { %5419 = vmatpush.bf16.msrb.mxu0 %v8425_v32  ;;  %v605_v37 = vld.sshfl [vmem:[#allocation1 + $0x20] sm:$0xff pattern:$0x73625140] }
 0x1d5   : > { %5432 = vmatpush.bf16.msrb.mxu1 %v8433_v33  ;;  %v8472_v33 = vld [vmem:[%s9188_s9 + $0xc90] sm:$0xff] }
 0x1d6   : > { %5445 = vmatpush.bf16.msrb.mxu2 %v8441_v34  ;;  %v8480_v34 = vld [vmem:[%s9188_s9 + $0xcd0] sm:$0xff] }
 0x1d7   : > { %5458 = vmatpush.bf16.msrb.mxu3 %v8449_v35  ;;  %v8455_v35 = vld [vmem:[%s9188_s9 + $0xc08] sm:$0xff] }
 0x1d8   : > { %5420 = vmatpush.bf16.msrb.mxu0 %v8424_v41 }
 0x1d9   : > { %5433 = vmatpush.bf16.msrb.mxu1 %v8432_v42  ;;  %v8454_v42 = vld [vmem:[%s9188_s9 + $0xc00] sm:$0xff] }
 0x1da   : > { %5446 = vmatpush.bf16.msrb.mxu2 %v8440_v44  ;;  %v8470_v44 = vld [vmem:[%s9188_s9 + $0xc80] sm:$0xff] }
 0x1db   : > { %5459 = vmatpush.bf16.msrb.mxu3 %v8448_v45  ;;  %v8478_v45 = vld [vmem:[%s9188_s9 + $0xcc0] sm:$0xff] }
 0x1dc   : > { %5421 = vmatpush.bf16.msrb.mxu0 %v8423_v46  ;;  %v8493_v46 = vld [vmem:[%s9188_s9 + $0xd38] sm:$0xff] }
 0x1dd   : > { %5434 = vmatpush.bf16.msrb.mxu1 %v8431_v47  ;;  %v8501_v47 = vld [vmem:[%s9188_s9 + $0xd78] sm:$0xff] }
 0x1de   : > { %5447 = vmatpush.bf16.msrb.mxu2 %v8439_v49  ;;  %v603_v49 = vld.sshfl [vmem:[#allocation1 + $0x10] sm:$0xff pattern:$0x73625140] }
 0x1df   : > { %5460 = vmatpush.bf16.msrb.mxu3 %v8447_v50  ;;  %v602_v50 = vld.sshfl [vmem:[#allocation1 + $0x8] sm:$0xff pattern:$0x73625140] }
 0x1e0   : > { %5422 = vmatpush.bf16.msrb.mxu0 %v8422_v53  ;;  %v5216_v13 = vpop.f32.mrf.mxu0  ;;  %v8517_v53 = vld [vmem:[%s9188_s9 + $0xdf8] sm:$0xff] }
 0x1e1   : > { %5435 = vmatpush.bf16.msrb.mxu1 %v8430_v54  ;;  %v5217_v14 = vadd.f32 %v5216_v13, %v9683_v40  ;;  %v5229_v17 = vpop.f32.mrf.mxu1  ;;  %v731_v54 = vpack.c.bf16 %v601_v48, %v601_v48  ;;  %v8513_v13 = vld [vmem:[%s9188_s9 + $0xdd8] sm:$0xff]  ;;  %v8532_v48 = vld [vmem:[%s9188_s9 + $0xe70] sm:$0xff] }
 0x1e2   : > { %5448 = vmatpush.bf16.msrb.mxu2 %v8438_v55  ;;  %v733_v55 = vpack.c.bf16 %v603_v49, %v603_v49  ;;  %v8540_v49 = vld [vmem:[%s9188_s9 + $0xeb0] sm:$0xff] }
 0x1e3   : > { %5461 = vmatpush.bf16.msrb.mxu3 %v8446_v56  ;;  %5423 = vmatmul.bf16.vlgmr.msrb.gmra.mxu0 %v727_v1  ;;  %v5230_v20 = vadd.f32 %v5229_v17, %v5217_v14  ;;  %v732_v56 = vpack.c.bf16 %v602_v50, %v602_v50  ;;  %v8515_v1 = vld [vmem:[%s9188_s9 + $0xde8] sm:$0xff]  ;;  %v8548_v50 = vld [vmem:[%s9188_s9 + $0xef0] sm:$0xff] }
 0x1e4   : > { %5467 = vmatpush.bf16.msra.mxu0 %v8461_v57  ;;  %5436 = vmatmul.bf16.vlgmr.msrb.gmra.mxu1 %v728_v3  ;;  %v734_v57 = vpack.c.bf16 %v604_v51, %v604_v51  ;;  %v8523_v51 = vld [vmem:[%s9188_s9 + $0xe28] sm:$0xff] }
 0x1e5   : > { %5480 = vmatpush.bf16.msra.mxu1 %v8469_v58  ;;  %5449 = vmatmul.bf16.vlgmr.msrb.gmra.mxu2 %v729_v2  ;;  %v8492_v58 = vld [vmem:[%s9188_s9 + $0xd30] sm:$0xff] }
 0x1e6   : > { %5493 = vmatpush.bf16.msra.mxu2 %v8477_v63  ;;  %5462 = vmatmul.bf16.vlgmr.msrb.gmra.mxu3 %v730_v4  ;;  %v8499_v63 = vld [vmem:[%s9188_s9 + $0xd68] sm:$0xff]  ;;  %v8490_v4 = vld [vmem:[%s9188_s9 + $0xd20] sm:$0xff] }
 0x1e7   : > { %5506 = vmatpush.bf16.msra.mxu3 %v8485_v0  ;;  %v8507_v0 = vld [vmem:[%s9188_s9 + $0xda8] sm:$0xff] }
 0x1e8   : > { %5468 = vmatpush.bf16.msra.mxu0 %v8460_v5  ;;  %v5242_v25 = vpop.f32.mrf.mxu2  ;;  %v5218_v28 = vpop.f32.mrf.mxu0  ;;  %v8498_v5 = vld [vmem:[%s9188_s9 + $0xd60] sm:$0xff] }
 0x1e9   : > { %5481 = vmatpush.bf16.msra.mxu1 %v8468_v6  ;;  %v5243_v26 = vadd.f32 %v5242_v25, %v5230_v20  ;;  %v5255_v27 = vpop.f32.mrf.mxu3  ;;  %v5231_v32 = vpop.f32.mrf.mxu1  ;;  %v8496_v20 = vld [vmem:[%s9188_s9 + $0xd50] sm:$0xff]  ;;  %v8495_v25 = vld [vmem:[%s9188_s9 + $0xd48] sm:$0xff] }
 0x1ea   : > { %5494 = vmatpush.bf16.msra.mxu2 %v8476_v7  ;;  %v8506_v7 = vld [vmem:[%s9188_s9 + $0xda0] sm:$0xff]  ;;  %v8511_v28 = vld [vmem:[%s9188_s9 + $0xdc8] sm:$0xff] }
 0x1eb   : > { %5507 = vmatpush.bf16.msra.mxu3 %v8484_v8  ;;  %v9719_v29 = vadd.f32 %v5255_v27, %v5243_v26  ;;  %v8514_v8 = vld [vmem:[%s9188_s9 + $0xde0] sm:$0xff]  ;;  %v8503_v27 = vld [vmem:[%s9188_s9 + $0xd88] sm:$0xff] }
 0x1ec   : > { %5469 = vmatpush.bf16.msra.mxu0 %v8459_v9  ;;  %v520_v26 = vld [vmem:[%s9217_s13 + $0x70] sm:$0xff] }
 0x1ed   : > { %5482 = vmatpush.bf16.msra.mxu1 %v8467_v10  ;;  %v8489_v10 = vld [vmem:[%s9188_s9 + $0xd18] sm:$0xff]  ;;  %609 = vst [vmem:[#allocation1] ss:$4 sm:$0xff] %v520_v26  ;;  %v8494_v32 = vld [vmem:[%s9188_s9 + $0xd40] sm:$0xff] }
 0x1ee   : > { %5495 = vmatpush.bf16.msra.mxu2 %v8475_v11  ;;  %v8497_v11 = vld [vmem:[%s9188_s9 + $0xd58] sm:$0xff] }
 0x1ef   : > { %5508 = vmatpush.bf16.msra.mxu3 %v8483_v12  ;;  %v8505_v12 = vld [vmem:[%s9188_s9 + $0xd98] sm:$0xff] }
 0x1f0   : > { %5470 = vmatpush.bf16.msra.mxu0 %v8458_v15  ;;  %v5244_v40 = vpop.f32.mrf.mxu2 }
 0x1f1   : > { %5483 = vmatpush.bf16.msra.mxu1 %v8466_v16  ;;  %v5257_v41 = vpop.f32.mrf.mxu3  ;;  %v608_v40 = vld.sshfl [vmem:[#allocation1 + $0x38] sm:$0xff pattern:$0x73625140] }
 0x1f2   : > { %5496 = vmatpush.bf16.msra.mxu2 %v8474_v18  ;;  %v8541_v41 = vld [vmem:[%s9188_s9 + $0xeb8] sm:$0xff] }
 0x1f3   : > { %5509 = vmatpush.bf16.msra.mxu3 %v8482_v19  ;;  %v8488_v19 = vld [vmem:[%s9188_s9 + $0xd10] sm:$0xff] }
 0x1f4   : > { %5471 = vmatpush.bf16.msra.mxu0 %v8457_v21  ;;  %v611_v26 = vld.sshfl [vmem:[#allocation1] sm:$0xff pattern:$0x73625140] }
 0x1f5   : > { %5484 = vmatpush.bf16.msra.mxu1 %v8465_v22  ;;  %v8504_v22 = vld [vmem:[%s9188_s9 + $0xd90] sm:$0xff] }
 0x1f6   : > { %5497 = vmatpush.bf16.msra.mxu2 %v8473_v23  ;;  %v8512_v23 = vld [vmem:[%s9188_s9 + $0xdd0] sm:$0xff] }
 0x1f7   : > { %5510 = vmatpush.bf16.msra.mxu3 %v8481_v24  ;;  %v8487_v24 = vld [vmem:[%s9188_s9 + $0xd08] sm:$0xff] }
 0x1f8   : > { %5472 = vmatpush.bf16.msra.mxu0 %v8456_v30 }
 0x1f9   : > { %5485 = vmatpush.bf16.msra.mxu1 %v8464_v31  ;;  %v8486_v31 = vld [vmem:[%s9188_s9 + $0xd00] sm:$0xff] }
 0x1fa   : > { %5498 = vmatpush.bf16.msra.mxu2 %v8472_v33  ;;  %v8502_v33 = vld [vmem:[%s9188_s9 + $0xd80] sm:$0xff] }
 0x1fb   : > { %5511 = vmatpush.bf16.msra.mxu3 %v8480_v34  ;;  %v8510_v34 = vld [vmem:[%s9188_s9 + $0xdc0] sm:$0xff] }
 0x1fc   : > { %5473 = vmatpush.bf16.msra.mxu0 %v8455_v35  ;;  %v8525_v35 = vld [vmem:[%s9188_s9 + $0xe38] sm:$0xff] }
 0x1fd   : > { %5486 = vmatpush.bf16.msra.mxu1 %v8463_v36  ;;  %v8533_v36 = vld [vmem:[%s9188_s9 + $0xe78] sm:$0xff] }
 0x1fe   : > { %5499 = vmatpush.bf16.msra.mxu2 %v8471_v38  ;;  %v607_v38 = vld.sshfl [vmem:[#allocation1 + $0x30] sm:$0xff pattern:$0x73625140] }
 0x1ff   : > { %5512 = vmatpush.bf16.msra.mxu3 %v8479_v39  ;;  %v606_v39 = vld.sshfl [vmem:[#allocation1 + $0x28] sm:$0xff pattern:$0x73625140] }
 0x200   : > { %5474 = vmatpush.bf16.msra.mxu0 %v8454_v42  ;;  %v5268_v2 = vpop.f32.mrf.mxu0  ;;  %v8549_v42 = vld [vmem:[%s9188_s9 + $0xef8] sm:$0xff] }
 0x201   : > { %5487 = vmatpush.bf16.msra.mxu1 %v8462_v43  ;;  %v5269_v3 = vadd.f32 %v5268_v2, %v9719_v29  ;;  %v5281_v6 = vpop.f32.mrf.mxu1  ;;  %v735_v43 = vpack.c.bf16 %v605_v37, %v605_v37  ;;  %v8545_v2 = vld [vmem:[%s9188_s9 + $0xed8] sm:$0xff]  ;;  %v8564_v37 = vld [vmem:[%s9188_s9 + $0xf70] sm:$0xff] }
 0x202   : > { %5500 = vmatpush.bf16.msra.mxu2 %v8470_v44  ;;  %v737_v44 = vpack.c.bf16 %v607_v38, %v607_v38  ;;  %v8572_v38 = vld [vmem:[%s9188_s9 + $0xfb0] sm:$0xff] }
 0x203   : > { %5513 = vmatpush.bf16.msra.mxu3 %v8478_v45  ;;  %5475 = vmatmul.bf16.vlgmr.msra.gmra.mxu0 %v731_v54  ;;  %v5282_v9 = vadd.f32 %v5281_v6, %v5269_v3  ;;  %v736_v45 = vpack.c.bf16 %v606_v39, %v606_v39  ;;  %v8547_v54 = vld [vmem:[%s9188_s9 + $0xee8] sm:$0xff]  ;;  %v8580_v39 = vld [vmem:[%s9188_s9 + $0xff0] sm:$0xff] }
 0x204   : > { %5519 = vmatpush.bf16.msrb.mxu0 %v8493_v46  ;;  %5488 = vmatmul.bf16.vlgmr.msra.gmra.mxu1 %v732_v56  ;;  %v738_v46 = vpack.c.bf16 %v608_v40, %v608_v40  ;;  %v8555_v40 = vld [vmem:[%s9188_s9 + $0xf28] sm:$0xff] }
 0x205   : > { %5532 = vmatpush.bf16.msrb.mxu1 %v8501_v47  ;;  %5501 = vmatmul.bf16.vlgmr.msra.gmra.mxu2 %v733_v55  ;;  %v8524_v47 = vld [vmem:[%s9188_s9 + $0xe30] sm:$0xff] }
 0x206   : > { %5545 = vmatpush.bf16.msrb.mxu2 %v8509_v52  ;;  %5514 = vmatmul.bf16.vlgmr.msra.gmra.mxu3 %v734_v57  ;;  %v8531_v52 = vld [vmem:[%s9188_s9 + $0xe68] sm:$0xff]  ;;  %v8522_v57 = vld [vmem:[%s9188_s9 + $0xe20] sm:$0xff] }
 0x207   : > { %5558 = vmatpush.bf16.msrb.mxu3 %v8517_v53  ;;  %v8539_v53 = vld [vmem:[%s9188_s9 + $0xea8] sm:$0xff] }
 0x208   : > { %5520 = vmatpush.bf16.msrb.mxu0 %v8492_v58  ;;  %v5294_v14 = vpop.f32.mrf.mxu2  ;;  %v5270_v17 = vpop.f32.mrf.mxu0  ;;  %v8530_v58 = vld [vmem:[%s9188_s9 + $0xe60] sm:$0xff] }
 0x209   : > { %5533 = vmatpush.bf16.msrb.mxu1 %v8500_v59  ;;  %v5295_v15 = vadd.f32 %v5294_v14, %v5282_v9  ;;  %v5307_v16 = vpop.f32.mrf.mxu3  ;;  %v5283_v21 = vpop.f32.mrf.mxu1  ;;  %v8528_v9 = vld [vmem:[%s9188_s9 + $0xe50] sm:$0xff]  ;;  %v8519_v14 = vld [vmem:[%s9188_s9 + $0xe08] sm:$0xff] }
 0x20a   : > { %5546 = vmatpush.bf16.msrb.mxu2 %v8508_v60  ;;  %v8538_v60 = vld [vmem:[%s9188_s9 + $0xea0] sm:$0xff]  ;;  %v8543_v17 = vld [vmem:[%s9188_s9 + $0xec8] sm:$0xff] }
 0x20b   : > { %5559 = vmatpush.bf16.msrb.mxu3 %v8516_v61  ;;  %v9755_v18 = vadd.f32 %v5307_v16, %v5295_v15  ;;  %v8546_v61 = vld [vmem:[%s9188_s9 + $0xee0] sm:$0xff]  ;;  %v8527_v15 = vld [vmem:[%s9188_s9 + $0xe48] sm:$0xff] }
 0x20c   : > { %5521 = vmatpush.bf16.msrb.mxu0 %v8491_v62  ;;  %v8535_v16 = vld [vmem:[%s9188_s9 + $0xe88] sm:$0xff]  ;;  %v8526_v21 = vld [vmem:[%s9188_s9 + $0xe40] sm:$0xff] }
 0x20d   : > { %5534 = vmatpush.bf16.msrb.mxu1 %v8499_v63  ;;  %v8521_v63 = vld [vmem:[%s9188_s9 + $0xe18] sm:$0xff] }
 0x20e   : > { %5547 = vmatpush.bf16.msrb.mxu2 %v8507_v0  ;;  %v8529_v0 = vld [vmem:[%s9188_s9 + $0xe58] sm:$0xff] }
 0x20f   : > { %5560 = vmatpush.bf16.msrb.mxu3 %v8515_v1  ;;  %v8537_v1 = vld [vmem:[%s9188_s9 + $0xe98] sm:$0xff] }
 0x210   : > { %5522 = vmatpush.bf16.msrb.mxu0 %v8490_v4  ;;  %v5296_v29 = vpop.f32.mrf.mxu2 }
 0x211   : > { %5535 = vmatpush.bf16.msrb.mxu1 %v8498_v5  ;;  %v5309_v30 = vpop.f32.mrf.mxu3  ;;  %v614_v29 = vld.sshfl [vmem:[#allocation1 + $0x18] sm:$0xff pattern:$0x73625140] }
 0x212   : > { %5548 = vmatpush.bf16.msrb.mxu2 %v8506_v7  ;;  %v8573_v30 = vld [vmem:[%s9188_s9 + $0xfb8] sm:$0xff] }
 0x213   : > { %5561 = vmatpush.bf16.msrb.mxu3 %v8514_v8  ;;  %v8520_v8 = vld [vmem:[%s9188_s9 + $0xe10] sm:$0xff] }
 0x214   : > { %5523 = vmatpush.bf16.msrb.mxu0 %v8489_v10 }
 0x215   : > { %5536 = vmatpush.bf16.msrb.mxu1 %v8497_v11  ;;  %v8536_v11 = vld [vmem:[%s9188_s9 + $0xe90] sm:$0xff] }
 0x216   : > { %5549 = vmatpush.bf16.msrb.mxu2 %v8505_v12  ;;  %v8544_v12 = vld [vmem:[%s9188_s9 + $0xed0] sm:$0xff] }
 0x217   : > { %5562 = vmatpush.bf16.msrb.mxu3 %v8513_v13  ;;  %v521_v13 = vld [vmem:[%s9217_s13 + $0x78] sm:$0xff] }
 0x218   : > { %5524 = vmatpush.bf16.msrb.mxu0 %v8488_v19  ;;  %610 = vst [vmem:[#allocation1 + $0x20] ss:$4 sm:$0xff] %v521_v13 }
 0x219   : > { %5537 = vmatpush.bf16.msrb.mxu1 %v8496_v20  ;;  %v8518_v20 = vld [vmem:[%s9188_s9 + $0xe00] sm:$0xff] }
 0x21a   : > { %5550 = vmatpush.bf16.msrb.mxu2 %v8504_v22  ;;  %v8534_v22 = vld [vmem:[%s9188_s9 + $0xe80] sm:$0xff] }
 0x21b   : > { %5563 = vmatpush.bf16.msrb.mxu3 %v8512_v23  ;;  %v8542_v23 = vld [vmem:[%s9188_s9 + $0xec0] sm:$0xff] }
 0x21c   : > { %5525 = vmatpush.bf16.msrb.mxu0 %v8487_v24  ;;  %v8557_v24 = vld [vmem:[%s9188_s9 + $0xf38] sm:$0xff] }
 0x21d   : > { %5538 = vmatpush.bf16.msrb.mxu1 %v8495_v25  ;;  %v8565_v25 = vld [vmem:[%s9188_s9 + $0xf78] sm:$0xff] }
 0x21e   : > { %5551 = vmatpush.bf16.msrb.mxu2 %v8503_v27  ;;  %v613_v27 = vld.sshfl [vmem:[#allocation1 + $0x10] sm:$0xff pattern:$0x73625140] }
 0x21f   : > { %5564 = vmatpush.bf16.msrb.mxu3 %v8511_v28  ;;  %v612_v28 = vld.sshfl [vmem:[#allocation1 + $0x8] sm:$0xff pattern:$0x73625140] }
 0x220   : > { %5526 = vmatpush.bf16.msrb.mxu0 %v8486_v31  ;;  %v5320_v55 = vpop.f32.mrf.mxu0  ;;  %v8581_v31 = vld [vmem:[%s9188_s9 + $0xff8] sm:$0xff] }
 0x221   : > { %5539 = vmatpush.bf16.msrb.mxu1 %v8494_v32  ;;  %v5321_v56 = vadd.f32 %v5320_v55, %v9755_v18  ;;  %v5333_v59 = vpop.f32.mrf.mxu1  ;;  %v739_v32 = vpack.c.bf16 %v611_v26, %v611_v26  ;;  %v8577_v55 = vld [vmem:[%s9188_s9 + $0xfd8] sm:$0xff] }
 0x222   : > { %5552 = vmatpush.bf16.msrb.mxu2 %v8502_v33  ;;  %v741_v33 = vpack.c.bf16 %v613_v27, %v613_v27  ;;  %v616_v13 = vld.sshfl [vmem:[#allocation1 + $0x28] sm:$0xff pattern:$0x73625140] }
 0x223   : > { %5565 = vmatpush.bf16.msrb.mxu3 %v8510_v34  ;;  %5527 = vmatmul.bf16.vlgmr.msrb.gmra.mxu0 %v735_v43  ;;  %v5334_v62 = vadd.f32 %v5333_v59, %v5321_v56  ;;  %v740_v34 = vpack.c.bf16 %v612_v28, %v612_v28  ;;  %v8579_v43 = vld [vmem:[%s9188_s9 + $0xfe8] sm:$0xff] }
 0x224   : > { %5571 = vmatpush.bf16.msra.mxu0 %v8525_v35  ;;  %5540 = vmatmul.bf16.vlgmr.msrb.gmra.mxu1 %v736_v45  ;;  %v742_v35 = vpack.c.bf16 %v614_v29, %v614_v29 }
 0x225   : > { %5584 = vmatpush.bf16.msra.mxu1 %v8533_v36  ;;  %5553 = vmatmul.bf16.vlgmr.msrb.gmra.mxu2 %v737_v44  ;;  %v8556_v36 = vld [vmem:[%s9188_s9 + $0xf30] sm:$0xff] }
 0x226   : > { %5597 = vmatpush.bf16.msra.mxu2 %v8541_v41  ;;  %5566 = vmatmul.bf16.vlgmr.msrb.gmra.mxu3 %v738_v46  ;;  %v8563_v41 = vld [vmem:[%s9188_s9 + $0xf68] sm:$0xff]  ;;  %v8554_v46 = vld [vmem:[%s9188_s9 + $0xf20] sm:$0xff] }
 0x227   : > { %5610 = vmatpush.bf16.msra.mxu3 %v8549_v42  ;;  %v8571_v42 = vld [vmem:[%s9188_s9 + $0xfa8] sm:$0xff] }
 0x228   : > { %5572 = vmatpush.bf16.msra.mxu0 %v8524_v47  ;;  %v5346_v3 = vpop.f32.mrf.mxu2  ;;  %v5322_v6 = vpop.f32.mrf.mxu0  ;;  %v8562_v47 = vld [vmem:[%s9188_s9 + $0xf60] sm:$0xff] }
 0x229   : > { %5585 = vmatpush.bf16.msra.mxu1 %v8532_v48  ;;  %v5347_v4 = vadd.f32 %v5346_v3, %v5334_v62  ;;  %v5359_v5 = vpop.f32.mrf.mxu3  ;;  %v5335_v10 = vpop.f32.mrf.mxu1  ;;  %v8560_v62 = vld [vmem:[%s9188_s9 + $0xf50] sm:$0xff]  ;;  %v8559_v3 = vld [vmem:[%s9188_s9 + $0xf48] sm:$0xff] }
 0x22a   : > { %5598 = vmatpush.bf16.msra.mxu2 %v8540_v49  ;;  %v8570_v49 = vld [vmem:[%s9188_s9 + $0xfa0] sm:$0xff] }
 0x22b   : > { %5611 = vmatpush.bf16.msra.mxu3 %v8548_v50  ;;  %v9791_v7 = vadd.f32 %v5359_v5, %v5347_v4  ;;  %v8578_v50 = vld [vmem:[%s9188_s9 + $0xfe0] sm:$0xff]  ;;  %v8567_v4 = vld [vmem:[%s9188_s9 + $0xf88] sm:$0xff] }
 0x22c   : > { %5573 = vmatpush.bf16.msra.mxu0 %v8523_v51  ;;  %v8575_v5 = vld [vmem:[%s9188_s9 + $0xfc8] sm:$0xff]  ;;  %v8566_v10 = vld [vmem:[%s9188_s9 + $0xf80] sm:$0xff] }
 0x22d   : > { %5586 = vmatpush.bf16.msra.mxu1 %v8531_v52  ;;  %v8553_v52 = vld [vmem:[%s9188_s9 + $0xf18] sm:$0xff] }
 0x22e   : > { %5599 = vmatpush.bf16.msra.mxu2 %v8539_v53  ;;  %v8561_v53 = vld [vmem:[%s9188_s9 + $0xf58] sm:$0xff] }
 0x22f   : > { %5612 = vmatpush.bf16.msra.mxu3 %v8547_v54  ;;  %v8569_v54 = vld [vmem:[%s9188_s9 + $0xf98] sm:$0xff] }
 0x230   : > { %5574 = vmatpush.bf16.msra.mxu0 %v8522_v57  ;;  %v5348_v18 = vpop.f32.mrf.mxu2 }
 0x231   : > { %5587 = vmatpush.bf16.msra.mxu1 %v8530_v58  ;;  %v5361_v19 = vpop.f32.mrf.mxu3 }
 0x232   : > { %5600 = vmatpush.bf16.msra.mxu2 %v8538_v60 }
 0x233   : > { %5613 = vmatpush.bf16.msra.mxu3 %v8546_v61  ;;  %v8552_v61 = vld [vmem:[%s9188_s9 + $0xf10] sm:$0xff] }
 0x234   : > { %5575 = vmatpush.bf16.msra.mxu0 %v8521_v63 }
 0x235   : > { %5588 = vmatpush.bf16.msra.mxu1 %v8529_v0  ;;  %v8568_v0 = vld [vmem:[%s9188_s9 + $0xf90] sm:$0xff] }
 0x236   : > { %5601 = vmatpush.bf16.msra.mxu2 %v8537_v1  ;;  %v8576_v1 = vld [vmem:[%s9188_s9 + $0xfd0] sm:$0xff] }
 0x237   : > { %5614 = vmatpush.bf16.msra.mxu3 %v8545_v2  ;;  %v8551_v2 = vld [vmem:[%s9188_s9 + $0xf08] sm:$0xff] }
 0x238   : > { %5576 = vmatpush.bf16.msra.mxu0 %v8520_v8 }
 0x239   : > { %5589 = vmatpush.bf16.msra.mxu1 %v8528_v9  ;;  %v8558_v9 = vld [vmem:[%s9188_s9 + $0xf40] sm:$0xff] }
 0x23a   : > { %5602 = vmatpush.bf16.msra.mxu2 %v8536_v11  ;;  %v8574_v11 = vld [vmem:[%s9188_s9 + $0xfc0] sm:$0xff] }
 0x23b   : > { %5615 = vmatpush.bf16.msra.mxu3 %v8544_v12  ;;  %v615_v12 = vld.sshfl [vmem:[#allocation1 + $0x20] sm:$0xff pattern:$0x73625140] }
 0x23c   : > { %5577 = vmatpush.bf16.msra.mxu0 %v8519_v14  ;;  %v617_v14 = vld.sshfl [vmem:[#allocation1 + $0x30] sm:$0xff pattern:$0x73625140] }
 0x23d   : > { %5590 = vmatpush.bf16.msra.mxu1 %v8527_v15  ;;  %v618_v15 = vld.sshfl [vmem:[#allocation1 + $0x38] sm:$0xff pattern:$0x73625140]  ;;  %v745_v18 = vpack.c.bf16 %v617_v14, %v617_v14 }
 0x23e   : > { %5603 = vmatpush.bf16.msra.mxu2 %v8535_v16  ;;  %v743_v16 = vpack.c.bf16 %v615_v12, %v615_v12  ;;  %v746_v19 = vpack.c.bf16 %v618_v15, %v618_v15 }
 0x23f   : > { %5616 = vmatpush.bf16.msra.mxu3 %v8543_v17  ;;  %v744_v17 = vpack.c.bf16 %v616_v13, %v616_v13  ;;  %v505_v13 = vld [vmem:[#allocation2] sm:$0x3] }
 0x240   : > { %5578 = vmatpush.bf16.msra.mxu0 %v8518_v20  ;;  %v5372_v44 = vpop.f32.mrf.mxu0 }
 0x241   : > { %5591 = vmatpush.bf16.msra.mxu1 %v8526_v21  ;;  %v5373_v45 = vadd.f32 %v5372_v44, %v9791_v7  ;;  %v5385_v48 = vpop.f32.mrf.mxu1  ;;  %v8550_v7 = vld [vmem:[%s9188_s9 + $0xf00] sm:$0xff]  ;;  %s9950_s9 = sld [smem:[#allocation16_spill]] }
 0x242   : > { %5604 = vmatpush.bf16.msra.mxu2 %v8534_v22 }
 0x243   : > { %5617 = vmatpush.bf16.msra.mxu3 %v8542_v23  ;;  %5579 = vmatmul.bf16.vlgmr.msra.gmra.mxu0 %v739_v32  ;;  %v5386_v51 = vadd.f32 %v5385_v48, %v5373_v45 }
 0x244   : > { %5623 = vmatpush.bf16.msrb.mxu0 %v8557_v24  ;;  %5592 = vmatmul.bf16.vlgmr.msra.gmra.mxu1 %v740_v34 }
 0x245   : > { %5636 = vmatpush.bf16.msrb.mxu1 %v8565_v25  ;;  %5605 = vmatmul.bf16.vlgmr.msra.gmra.mxu2 %v741_v33 }
 0x246   : > { %5649 = vmatpush.bf16.msrb.mxu2 %v8573_v30  ;;  %5618 = vmatmul.bf16.vlgmr.msra.gmra.mxu3 %v742_v35 }
 0x247   : > { %5662 = vmatpush.bf16.msrb.mxu3 %v8581_v31  ;;  %p8064_p10 = scmp.ne.s32.totalorder %s9950_s9, 3 }
 0x248   : > { %5624 = vmatpush.bf16.msrb.mxu0 %v8556_v36  ;;  %v5398_v56 = vpop.f32.mrf.mxu2  ;;  %v5374_v59 = vpop.f32.mrf.mxu0 }
 0x249   : > { %5637 = vmatpush.bf16.msrb.mxu1 %v8564_v37  ;;  %v5399_v57 = vadd.f32 %v5398_v56, %v5386_v51  ;;  %v5411_v58 = vpop.f32.mrf.mxu3  ;;  %v5387_v63 = vpop.f32.mrf.mxu1 }
 0x24a   : > { %5650 = vmatpush.bf16.msrb.mxu2 %v8572_v38 }
 0x24b   : > { %5663 = vmatpush.bf16.msrb.mxu3 %v8580_v39  ;;  %v5412_v60 = vadd.f32 %v5411_v58, %v5399_v57 }
 0x24c   : > { %5625 = vmatpush.bf16.msrb.mxu0 %v8555_v40 }
 0x24d   : > { %5638 = vmatpush.bf16.msrb.mxu1 %v8563_v41 }
 0x24e   : > { %5651 = vmatpush.bf16.msrb.mxu2 %v8571_v42 }
 0x24f   : > { %5664 = vmatpush.bf16.msrb.mxu3 %v8579_v43 }
 0x250   : > { %5626 = vmatpush.bf16.msrb.mxu0 %v8554_v46  ;;  %v5400_v6 = vpop.f32.mrf.mxu2 }
 0x251   : > { %5639 = vmatpush.bf16.msrb.mxu1 %v8562_v47  ;;  %v5413_v8 = vpop.f32.mrf.mxu3 }
 0x252   : > { %5652 = vmatpush.bf16.msrb.mxu2 %v8570_v49 }
 0x253   : > { %5665 = vmatpush.bf16.msrb.mxu3 %v8578_v50 }
 0x254   : > { %5627 = vmatpush.bf16.msrb.mxu0 %v8553_v52 }
 0x255   : > { %5640 = vmatpush.bf16.msrb.mxu1 %v8561_v53 }
 0x256   : > { %5653 = vmatpush.bf16.msrb.mxu2 %v8569_v54 }
 0x257   : > { %5666 = vmatpush.bf16.msrb.mxu3 %v8577_v55 }
 0x258   : > { %5628 = vmatpush.bf16.msrb.mxu0 %v8552_v61 }
 0x259   : > { %5641 = vmatpush.bf16.msrb.mxu1 %v8560_v62 }
 0x25a   : > { %5654 = vmatpush.bf16.msrb.mxu2 %v8568_v0 }
 0x25b   : > { %5667 = vmatpush.bf16.msrb.mxu3 %v8576_v1 }
 0x25c   : > { %5629 = vmatpush.bf16.msrb.mxu0 %v8551_v2 }
 0x25d   : > { %5642 = vmatpush.bf16.msrb.mxu1 %v8559_v3 }
 0x25e   : > { %5655 = vmatpush.bf16.msrb.mxu2 %v8567_v4 }
 0x25f   : > { %5668 = vmatpush.bf16.msrb.mxu3 %v8575_v5 }
 0x260   : > { %5630 = vmatpush.bf16.msrb.mxu0 %v8550_v7  ;;  %v5424_v20 = vpop.f32.mrf.mxu0 }
 0x261   : > { %5643 = vmatpush.bf16.msrb.mxu1 %v8558_v9  ;;  %v5425_v21 = vadd.f32 %v5424_v20, %v5412_v60  ;;  %v5437_v22 = vpop.f32.mrf.mxu1 }
 0x262   : > { %5656 = vmatpush.bf16.msrb.mxu2 %v8566_v10 }
 0x263   : > { %5669 = vmatpush.bf16.msrb.mxu3 %v8574_v11  ;;  %5631 = vmatmul.bf16.vlgmr.msrb.gmra.mxu0 %v743_v16  ;;  %v5438_v23 = vadd.f32 %v5437_v22, %v5425_v21 }
 0x264   : > { %5644 = vmatmul.bf16.vlgmr.msrb.gmra.mxu1 %v744_v17 }
 0x265   : > { %5657 = vmatmul.bf16.vlgmr.msrb.gmra.mxu2 %v745_v18 }
 0x266   : > { %5670 = vmatmul.bf16.vlgmr.msrb.gmra.mxu3 %v746_v19 }
 0x268   : > { %v5450_v24 = vpop.f32.mrf.mxu2  ;;  %v5426_v27 = vpop.f32.mrf.mxu0 }
 0x269   : > { %v5451_v25 = vadd.f32 %v5450_v24, %v5438_v23  ;;  %v5463_v26 = vpop.f32.mrf.mxu3  ;;  %v5439_v29 = vpop.f32.mrf.mxu1 }
 0x26b   : > { %v5464_v28 = vadd.f32 %v5463_v26, %v5451_v25 }
 0x270   : > { %v5452_v30 = vpop.f32.mrf.mxu2 }
 0x271   : > { %v5465_v31 = vpop.f32.mrf.mxu3 }
 0x280   : > { %v5476_v32 = vpop.f32.mrf.mxu0 }
 0x281   : > { %v5477_v33 = vadd.f32 %v5476_v32, %v5464_v28  ;;  %v5489_v34 = vpop.f32.mrf.mxu1 }
 0x283   : > { %v5490_v35 = vadd.f32 %v5489_v34, %v5477_v33 }
 0x288   : > { %v5502_v36 = vpop.f32.mrf.mxu2  ;;  %v5478_v39 = vpop.f32.mrf.mxu0 }
 0x289   : > { %v5503_v37 = vadd.f32 %v5502_v36, %v5490_v35  ;;  %v5515_v38 = vpop.f32.mrf.mxu3  ;;  %v5491_v41 = vpop.f32.mrf.mxu1 }
 0x28b   : > { %v5516_v40 = vadd.f32 %v5515_v38, %v5503_v37 }
 0x290   : > { %v5504_v42 = vpop.f32.mrf.mxu2 }
 0x291   : > { %v5517_v43 = vpop.f32.mrf.mxu3 }
 0x2a0   : > { %v5528_v44 = vpop.f32.mrf.mxu0 }
 0x2a1   : > { %v5541_v45 = vpop.f32.mrf.mxu1  ;;  %v5529_v55 = vadd.f32 %v5528_v44, %v5516_v40 }
 0x2a3   : > { %v5542_v59 = vadd.f32 %v5541_v45, %v5529_v55 }
 0x2a8   : > { %v5554_v46 = vpop.f32.mrf.mxu2  ;;  %v5530_v48 = vpop.f32.mrf.mxu0 }
 0x2a9   : > { %v5567_v47 = vpop.f32.mrf.mxu3  ;;  %v5543_v49 = vpop.f32.mrf.mxu1  ;;  %v5555_v60 = vadd.f32 %v5554_v46, %v5542_v59 }
 0x2ab   : > { %v5568_v63 = vadd.f32 %v5567_v47, %v5555_v60 }
 0x2b0   : > { %v5556_v50 = vpop.f32.mrf.mxu2 }
 0x2b1   : > { %v5569_v51 = vpop.f32.mrf.mxu3 }
 0x2c0   : > { %v5580_v52 = vpop.f32.mrf.mxu0 }
 0x2c1   : > { %v5593_v53 = vpop.f32.mrf.mxu1  ;;  %v5581_v0 = vadd.f32 %v5580_v52, %v5568_v63 }
 0x2c3   : > { %v5594_v1 = vadd.f32 %v5593_v53, %v5581_v0 }
 0x2c8   : > { %v5606_v54 = vpop.f32.mrf.mxu2  ;;  %v5582_v57 = vpop.f32.mrf.mxu0 }
 0x2c9   : > { %v5619_v56 = vpop.f32.mrf.mxu3  ;;  %v5595_v58 = vpop.f32.mrf.mxu1  ;;  %v5607_v2 = vadd.f32 %v5606_v54, %v5594_v1 }
 0x2cb   : > { %v5620_v3 = vadd.f32 %v5619_v56, %v5607_v2 }
 0x2d0   : > { %v5608_v61 = vpop.f32.mrf.mxu2 }
 0x2d1   : > { %v5621_v62 = vpop.f32.mrf.mxu3 }
 0x2e0   : > { %v5632_v4 = vpop.f32.mrf.mxu0 }
 0x2e1   : > { %v5645_v5 = vpop.f32.mrf.mxu1  ;;  %v5633_v6 = vadd.f32 %v5632_v4, %v5620_v3 }
 0x2e3   : > { %v5646_v7 = vadd.f32 %v5645_v5, %v5633_v6 }
 0x2e8   : > { %v5658_v8 = vpop.f32.mrf.mxu2  ;;  %v5634_v11 = vpop.f32.mrf.mxu0 }
 0x2e9   : > { %v5671_v9 = vpop.f32.mrf.mxu3  ;;  %v5659_v10 = vadd.f32 %v5658_v8, %v5646_v7  ;;  %v5647_v12 = vpop.f32.mrf.mxu1 }
 0x2eb   : > { %v5672_v14 = vadd.f32 %v5671_v9, %v5659_v10 }
 0x2ed   : > { %v5675_v15 = vadd.f32 %v5672_v14, %v505_v13  ;;  %5680 = sbr.rel (%p8064_p10) target bundleno = 1340 (0x53c), region = 76 }
 0x2ef   : > { %5676 = vst [vmem:[#allocation2] sm:$0x3] %v5675_v15 }
 0x2f0   : > { %v5660_v16 = vpop.f32.mrf.mxu2 }
 0x2f1   : > { %v5673_v17 = vpop.f32.mrf.mxu3 }
 0x2f2   : > { %v5702_v18 = vld [vmem:[%s9223_s21 + $0x78] sm:$0xff]  ;;  %v5701_v19 = vld [vmem:[%s9223_s21 + $0x70] sm:$0xff]  ;;  %v5700_v20 = vld [vmem:[%s9223_s21 + $0x68] sm:$0xff]  ;;  %vm5726_vm0 = vcmask 130048  }
 0x2f3   : > { %5705 = vmatpush.msra.mxu0 %v5702_v18  ;;  %5752 = vmatpush.msra.mxu2 %v5702_v18  ;;  %v5699_v21 = vld [vmem:[%s9223_s21 + $0x60] sm:$0xff]  ;;  %v5698_v22 = vld [vmem:[%s9223_s21 + $0x58] sm:$0xff]  ;;  %v5697_v23 = vld [vmem:[%s9223_s21 + $0x50] sm:$0xff] }
 0x2f4   : > { %v5696_v24 = vld [vmem:[%s9223_s21 + $0x48] sm:$0xff]  ;;  %v5695_v25 = vld [vmem:[%s9223_s21 + $0x40] sm:$0xff]  ;;  %v5694_v26 = vld [vmem:[%s9223_s21 + $0x38] sm:$0xff] }
 0x2f5   : > { %5706 = vmatpush.msra.mxu0 %v5701_v19  ;;  %5753 = vmatpush.msra.mxu2 %v5701_v19  ;;  %v5693_v27 = vld [vmem:[%s9223_s21 + $0x30] sm:$0xff]  ;;  %v5692_v28 = vld [vmem:[%s9223_s21 + $0x28] sm:$0xff]  ;;  %v5691_v29 = vld [vmem:[%s9223_s21 + $0x20] sm:$0xff] }
 0x2f6   : > { %v5690_v30 = vld [vmem:[%s9223_s21 + $0x18] sm:$0xff]  ;;  %v5689_v31 = vld [vmem:[%s9223_s21 + $0x10] sm:$0xff]  ;;  %v8703_v32 = vld [vmem:[%s397_s12] ss:$0 sm:$0xff] }
 0x2f7   : > { %5707 = vmatpush.msra.mxu0 %v5700_v20  ;;  %5754 = vmatpush.msra.mxu2 %v5700_v20  ;;  %v5681_v33 = vld [vmem:[#allocation2] sm:$0x3]  ;;  %v5687_v35 = vld [vmem:[%s9223_s21] sm:$0xff] }
 0x2f8   : > { %v5688_v34 = vld [vmem:[%s9223_s21 + $0x8] sm:$0xff]  ;;  %v5686_v36 = vadd.f32 %v8703_v32, %v5681_v33  ;;  %v5703_v38 = vld [vmem:[%s9230_s8] sm:$0xff] }
 0x2f9   : > { %5708 = vmatpush.msra.mxu0 %v5699_v21  ;;  %5755 = vmatpush.msra.mxu2 %v5699_v21  ;;  %v5704_v37 = vld [vmem:[%s9230_s8 + $0x8] sm:$0xff]  ;;  %v8704_v54 = vld [vmem:[%s406_s19] ss:$0 sm:$0xff] }
 0x2fa   : > { %5744 = vmatpush.msra.mxu1 %v5704_v37  ;;  %5790 = vmatpush.msra.mxu3 %v5704_v37  ;;  %v8705_v57 = vld [vmem:[%s415_s0] ss:$0 sm:$0xff] }
 0x2fb   : > { %5709 = vmatpush.msra.mxu0 %v5698_v22  ;;  %5756 = vmatpush.msra.mxu2 %v5698_v22 }
 0x2fc   : > { %5745 = vmatpush.msra.mxu1 %v5703_v38  ;;  %5791 = vmatpush.msra.mxu3 %v5703_v38 }
 0x2fd   : > { %5710 = vmatpush.msra.mxu0 %v5697_v23  ;;  %5757 = vmatpush.msra.mxu2 %v5697_v23 }
 0x2ff   : > { %5711 = vmatpush.msra.mxu0 %v5696_v24  ;;  %5758 = vmatpush.msra.mxu2 %v5696_v24 }
 0x301   : > { %5712 = vmatpush.msra.mxu0 %v5695_v25  ;;  %5759 = vmatpush.msra.mxu2 %v5695_v25 }
 0x303   : > { %5713 = vmatpush.msra.mxu0 %v5694_v26  ;;  %5760 = vmatpush.msra.mxu2 %v5694_v26 }
 0x305   : > { %5714 = vmatpush.msra.mxu0 %v5693_v27  ;;  %5761 = vmatpush.msra.mxu2 %v5693_v27 }
 0x307   : > { %5715 = vmatpush.msra.mxu0 %v5692_v28  ;;  %5762 = vmatpush.msra.mxu2 %v5692_v28 }
 0x309   : > { %5716 = vmatpush.msra.mxu0 %v5691_v29  ;;  %5763 = vmatpush.msra.mxu2 %v5691_v29 }
 0x30b   : > { %5717 = vmatpush.msra.mxu0 %v5690_v30  ;;  %5764 = vmatpush.msra.mxu2 %v5690_v30 }
 0x30d   : > { %5718 = vmatpush.msra.mxu0 %v5689_v31  ;;  %5765 = vmatpush.msra.mxu2 %v5689_v31 }
 0x30f   : > { %5719 = vmatpush.msra.mxu0 %v5688_v34  ;;  %5766 = vmatpush.msra.mxu2 %v5688_v34 }
 0x311   : > { %5720 = vmatpush.msra.mxu0 %v5687_v35  ;;  %5767 = vmatpush.msra.mxu2 %v5687_v35 }
 0x312   : > { %5721 = vmatmul.f32.vlgmr.msra.gmra.mxu0 %v5686_v36 }
 0x38f   : > { %v5722_v39 = vpop.f32.mrf.mxu0 }
 0x390   : > { %v5725_v40 = vmul.f32 0.0625, %v5722_v39 }
 0x392   : > { %8065 = vmatmul.msk.f32.vlgmr.msra.gmra.mxu1 %vm5726_vm0, %v5725_v40 }
 0x40f   : > { %v5747_v41 = vpop.f32.mrf.mxu1 }
 0x410   : > { %v5750_v42 = vsub.f32 %v5686_v36, %v5747_v41 }
 0x412   : > { %v5751_v43 = vmul.f32 %v5750_v42, %v5750_v42 }
 0x414   : > { %5768 = vmatmul.f32.vlgmr.msra.gmra.mxu2 %v5751_v43 }
 0x497   : > { %v5769_v44 = vpop.f32.mrf.mxu2 }
 0x498   : > { %v5772_v45 = vmul.f32 0.0625, %v5769_v44 }
 0x49a   : > { %8066 = vmatmul.msk.f32.vlgmr.msra.gmra.mxu3 %vm5726_vm0, %v5772_v45 }
 0x51d   : > { %v5793_v46 = vpop.f32.mrf.mxu3 }
 0x51e   : > { %v5794_v47 = vadd.f32 1e-05, %v5793_v46 }
 0x520   : > { %8706 = vrsqrt.f32 %v5794_v47  ;;  %vm5802_vm2 = vweird.f32 %v5794_v47 }
 0x526   : > { %v8707_v48 = vpop.eup %8706 }
 0x527   : > { %v5797_v49 = vmul.f32 %v8707_v48, %v5794_v47  ;;  %vm5803_vm1 = vweird.f32 %v8707_v48 }
 0x528   : > { %vm5804_vm3 = vmor %vm5802_vm2, %vm5803_vm1 }
 0x529   : > { %v5798_v50 = vmul.f32 %v8707_v48, %v5797_v49 }
 0x52b   : > { %v5799_v51 = vmul.f32 0.5, %v5798_v50 }
 0x52d   : > { %v5800_v52 = vsub.f32 1.5, %v5799_v51 }
 0x52f   : > { %v5801_v53 = vmul.f32 %v8707_v48, %v5800_v52 }
 0x531   : > { %v5805_v55 = vsel %vm5804_vm3, %v8707_v48, %v5801_v53 }
 0x532   : > { %v5806_v56 = vmul.f32 %v5805_v55, %v5750_v42 }
 0x534   : > { %v5811_v58 = vmul.f32 %v8704_v54, %v5806_v56 }
 0x536   : > { %v5816_v59 = vadd.f32 %v8705_v57, %v5811_v58 }
 0x538   : > { %vm5817_vm4 = vcmp.ge.f32.partialorder %v5816_v59, 0.0  ;;  %v5818_v60 = vmul.f32 0.2, %v5816_v59 }
 0x53a   : > { %v5819_v61 = vsel %vm5817_vm4, %v5816_v59, %v5818_v60 }
 0x53b   : > { %5820 = vst [vmem:[%s9228_s2] sm:$0x3] %v5819_v61 }
 0x53c PF: > { %s26_s11 = sadd.s32 1, %s8956_s11   ;;  %s9951_s12 = sld [smem:[#allocation14_spill]] }
 0x53d   : > { %p23_p11 = scmp.ge.s32.totalorder %s26_s11, 10   ;;  %s9952_s26 = sld [smem:[#allocation21_spill]] }
 0x53e   : > { %s9953_s19 = sld [smem:[#allocation15_spill]]  ;;  %s9958_s24 = smov %s8920_s25 }
 0x53f   : > { %s9954_s29 = sld [smem:[#allocation22_spill]]  ;;  %s9960_s27 = smov %s8932_s28 }
 0x540   : > { %s9955_s30 = sld [smem:[#allocation18_spill]]  ;;  %s9962_s8 = smov %s8952_s10 }
 0x541   : > { %s9956_s9 = sld [smem:[#allocation19_spill]] }
 0x542   : > { %s9957_s0 = sld [smem:[#allocation20_spill]]  ;;  %s9959_s25 = smov %s9951_s12 }
 0x544   : > { %s9961_s28 = smov %s9953_s19  ;;  %25 = sbr.rel (!%p23_p11) target bundleno = 18 (0x12), region = 151 }
 0x548   : > { %s9963_s10 = smov %s9957_s0 }
 0x549   :  { %5840 = vsyncpa [#allocation4], 1 }
 0x54a   :  { %5842 = vsyncpa [#allocation4 + $0x1], 1 }
 0x54b   :  { %5843 = vsyncpa [#allocation6], 1 }
 0x54c   :  { %5845 = vsyncpa [#allocation6 + $0x1], 1 }
 0x54d   :  { %5846 = vsyncpa [#allocation9], 1 }
 0x54e   :  { %5848 = vsyncpa [#allocation9 + $0x1], 1 }

</bundles_post_ra>
